<compile_context>
chip_gen: v7x
topology: tpu7x:2x2x1
jax: 0.10.0
libtpu: 0.0.40
codegen_flags: <defaults>
</compile_context>

<pallas_src>
import functools

import jax
import jax.numpy as jnp
from jax.experimental import pallas as pl
from jax.experimental.pallas import tpu as pltpu


_MAX_LANES_PER_BLOCK = 16 * 1024   # per-grid-step lane budget (keeps im2col scratch modest)


def _gelu(x):
    # tanh-approximate GELU: runs on the EUP slot instead of a VALU erf polynomial.
    return jax.nn.gelu(x, approximate=True)


# ---------------------------------------------------------------------------
# fused kernel: one grid step = n_img images, everything stays in VMEM
# ---------------------------------------------------------------------------
def enhanced_resblock_kernel(x_ref, vecs_ref, mats_ref, wconv_ref, masks_ref, o_ref, *,
                             H, W, n_img, cin, cout, cse, cpg1, cpg2, w_off):
    HW = H * W
    L = n_img * HW

    x = x_ref[...]            # (Cin, L) f32, lane-dense
    vecs = vecs_ref[...]      # (Cout, 9)  f32: packed per-channel vectors
    mats = mats_ref[...]      # (Cout, .)  f32: packed gm1|gm2|se_w1|se_w2
    wconv = wconv_ref[...]    # (Cout, .)  bf16: packed conv1|conv2|downsample weights (128-aligned)
    masks = masks_ref[...]    # (9, L)     f32 {0,1}: per-tap boundary masks (host-built, shared)

    # --- unpack fused parameter blocks (static Python offsets -> cheap slices) ---
    gn1_w, gn1_b = vecs[:cin, 0:1], vecs[:cin, 1:2]
    gn2_w, gn2_b = vecs[:, 2:3], vecs[:, 3:4]
    b1, b2, down_b = vecs[:, 4:5], vecs[:, 5:6], vecs[:, 6:7]
    se_b1, se_b2 = vecs[:cse, 7:8], vecs[:, 8:9]

    off = 0
    gm1 = mats[:cin, off:off + cin] if cpg1 > 1 else None
    off += cin
    gm2 = mats[:, off:off + cout] if cpg2 > 1 else None
    off += cout
    se_w1 = mats[:cse, off:off + cout]
    off += cout
    se_w2 = mats[:, off:off + cse]

    w1 = wconv[:, w_off[0]:w_off[0] + 9 * cin]          # (Cout, 9*Cin)  bf16
    w2 = wconv[:, w_off[1]:w_off[1] + 9 * cout]         # (Cout, 9*Cout) bf16
    down_w = wconv[:, w_off[2]:w_off[2] + cin]          # (Cout, Cin)    bf16

    # --- per-image (segmented) lane reductions / broadcasts ---------------------------------
    def per_image_sum(v):     # (C, L) -> (C, n_img) lane sums per image (static unroll)
        return jnp.concatenate(
            [jnp.sum(v[:, b * HW:(b + 1) * HW], axis=1, keepdims=True)
             for b in range(n_img)], axis=1)

    def per_image_bcast(s):   # (C, n_img) -> (C, L): broadcast each image column over its lanes
        return jnp.concatenate(
            [jnp.broadcast_to(s[:, b:b + 1], (s.shape[0], HW))
             for b in range(n_img)], axis=1)

    def group_norm(v, gm, cpg, gamma, beta, eps=1e-5):
        # Two-pass (center first, then second moment) GroupNorm; gm bakes in 1/(cpg*HW).
        # When cpg == 1 the group mean IS the per-channel mean -> skip the group-mix dot.
        inv = 1.0 / (cpg * HW)
        s1 = per_image_sum(v)                                               # (C, n_img)
        mean = s1 * inv if cpg == 1 else jnp.dot(
            gm, s1, preferred_element_type=jnp.float32)
        vc = v - per_image_bcast(mean)
        s2 = per_image_sum(vc * vc)
        var = s2 * inv if cpg == 1 else jnp.dot(
            gm, s2, preferred_element_type=jnp.float32)
        scale = jax.lax.rsqrt(var + eps) * gamma                            # (C, n_img)
        return vc * per_image_bcast(scale) + beta

    def conv3x3(v, w_mat, bias):
        # 3x3 SAME conv on a (C_, L) tile as ONE im2col MXU matmul.
        taps = []
        for k in range(9):
            dy, dx = k // 3 - 1, k % 3 - 1
            if dy == 0 and dx == 0:
                taps.append(v)
                continue
            src_off = dy * W + dx                               # in-image flattened offset
            rolled = pltpu.roll(v, shift=(-src_off) % L, axis=1)  # rolled[:, p] = v[:, p+src_off]
            taps.append(rolled * masks[k:k + 1, :])             # zero pad + zero cross-image bleed
        patches = jnp.concatenate(taps, axis=0).astype(jnp.bfloat16)         # (9*C_, L)
        out = jnp.dot(w_mat, patches, preferred_element_type=jnp.float32)    # single MXU call
        return out + bias

    # identity = downsample(x): 1x1 conv, bf16 MXU operands, f32 accumulate
    identity = jnp.dot(down_w, x.astype(jnp.bfloat16),
                       preferred_element_type=jnp.float32) + down_b

    # out = conv1(act(norm1(x)));  Dropout2d (eval) = identity
    h = conv3x3(_gelu(group_norm(x, gm1, cpg1, gn1_w, gn1_b)), w1, b1)
    # out = conv2(act(norm2(out)))
    h = conv3x3(_gelu(group_norm(h, gm2, cpg2, gn2_w, gn2_b)), w2, b2)

    # squeeze-excite: per-image global avg pool -> 1x1 conv -> GELU -> 1x1 conv -> sigmoid
    pooled = per_image_sum(h) * (1.0 / HW)                                           # (Cout, n_img)
    s = _gelu(jnp.dot(se_w1, pooled, preferred_element_type=jnp.float32) + se_b1)    # (Cse,  n_img)
    s = jax.nn.sigmoid(jnp.dot(se_w2, s, preferred_element_type=jnp.float32) + se_b2)
    h = h * per_image_bcast(s)

    # drop_path (eval) = identity; residual add; lane-dense (HW-last) store
    o_ref[...] = (h + identity).astype(o_ref.dtype)


# ---------------------------------------------------------------------------
# host-side helpers (parameter packing, masks, group-average matrix)
# ---------------------------------------------------------------------------
def _pack_lane(blocks, rows, dtype):
    """Zero-pad each 2-D block to `rows` rows and concatenate along the lane axis."""
    padded = [jnp.pad(b, ((0, rows - b.shape[0]), (0, 0))) for b in blocks]
    return jnp.concatenate(padded, axis=1).astype(dtype)


def _pack_lane_aligned(blocks, rows, dtype, align=128):
    """Like _pack_lane but each block starts at a lane offset that is a multiple of `align`
    (keeps in-kernel slices of packed sub-32-bit data vreg-aligned).  Returns (array, offsets)."""
    cols, offsets, off = [], [], 0
    for b in blocks:
        offsets.append(off)
        w = b.shape[1]
        wpad = -(-w // align) * align
        cols.append(jnp.pad(b, ((0, rows - b.shape[0]), (0, wpad - w))))
        off += wpad
    return jnp.concatenate(cols, axis=1).astype(dtype), tuple(offsets)


def _group_avg_matrix(C, groups, HW):
    g = jnp.arange(C) // (C // groups)
    same = (g[:, None] == g[None, :]).astype(jnp.float32)
    return same / float((C // groups) * HW)


def _tap_masks(H, W, n_img):
    """(9, n_img*HW) {0,1} masks: tap k valid iff the shifted pixel stays inside its image."""
    q = jnp.arange(H * W)
    h, w = q // W, q % W
    rows = []
    for k in range(9):
        dy, dx = k // 3 - 1, k % 3 - 1
        rows.append((h + dy >= 0) & (h + dy < H) & (w + dx >= 0) & (w + dx < W))
    m = jnp.stack(rows, axis=0).astype(jnp.float32)          # (9, HW)
    return jnp.tile(m, (1, n_img))                           # same mask for every image


# ---------------------------------------------------------------------------
# wrapper
# ---------------------------------------------------------------------------
def enhanced_resblock(x_nchw, p, groups=8, images_per_block=None):
    N, Cin, H, W = x_nchw.shape
    Cout = p["conv1_w"].shape[-1]
    Cse = p["se_w1"].shape[0]
    HW = H * W
    assert Cin % groups == 0 and Cout % groups == 0, "GroupNorm(8, C) requires C % 8 == 0"
    assert HW % 128 == 0, "flattened spatial axis must be lane-aligned"

    if images_per_block is None:
        # widest lane axis that still leaves >= 2 'parallel' grid steps (v7x megacore) and keeps
        # the per-step im2col scratch modest.
        cap = max(1, min(N // 2 if N > 1 else 1, _MAX_LANES_PER_BLOCK // HW))
        images_per_block = max(d for d in range(1, N + 1) if N % d == 0 and d <= cap)
    n_img = images_per_block
    assert N % n_img == 0
    L = n_img * HW

    # lane-dense, image-batched view: (Cin, N*HW); image n occupies lanes [n*HW, (n+1)*HW)
    x_cf = jnp.transpose(x_nchw.reshape(N, Cin, HW), (1, 0, 2)).reshape(Cin, N * HW)

    # --- fused parameter blocks: 17 separate inputs -> 5 DMAs ---------------
    vecs = _pack_lane([p["gn1_w"], p["gn1_b"], p["gn2_w"], p["gn2_b"],
                       p["conv1_b"], p["conv2_b"], p["down_b"],
                       p["se_b1"], p["se_b2"]], Cout, jnp.float32)
    mats = _pack_lane([_group_avg_matrix(Cin, groups, HW),
                       _group_avg_matrix(Cout, groups, HW),
                       p["se_w1"], p["se_w2"]], Cout, jnp.float32)
    w1_mat = p["conv1_w"].reshape(9 * Cin, Cout).T          # (Cout, 9*Cin), HWIO -> im2col
    w2_mat = p["conv2_w"].reshape(9 * Cout, Cout).T
    wconv, w_off = _pack_lane_aligned([w1_mat, w2_mat, p["down_w"]], Cout, jnp.bfloat16)
    masks = _tap_masks(H, W, n_img)

    kernel = functools.partial(
        enhanced_resblock_kernel, H=H, W=W, n_img=n_img,
        cin=Cin, cout=Cout, cse=Cse,
        cpg1=Cin // groups, cpg2=Cout // groups, w_off=w_off)

    def call(single_buffer_weights):
        # Grid-invariant weights: constant index map (DMA'd once).  Single buffering drops the
        # redundant second VMEM buffer per weight (matters at large Cout).
        wkw = dict(pipeline_mode=pl.Buffered(1)) if single_buffer_weights else {}
        in_specs = [pl.BlockSpec((Cin, L), lambda g: (0, g))]
        in_specs += [pl.BlockSpec(a.shape, lambda g: (0, 0), **wkw)
                     for a in (vecs, mats, wconv, masks)]
        return pl.pallas_call(
            kernel,
            out_shape=jax.ShapeDtypeStruct((Cout, N * HW), jnp.float32),
            grid=(N // n_img,),
            in_specs=in_specs,
            out_specs=pl.BlockSpec((Cout, L), lambda g: (0, g)),
            compiler_params=pltpu.CompilerParams(
                dimension_semantics=("parallel",)),   # independent image chunks (v7x: both TCs)
        )(x_cf, vecs, mats, wconv, masks)

    try:
        out_cf = call(True)
    except Exception:
        # pl.Buffered(1) not supported by this jax version -> fall back to default buffering.
        out_cf = call(False)

    return jnp.transpose(out_cf.reshape(Cout, N, HW), (1, 0, 2)).reshape(N, Cout, H, W)


# ---------------------------------------------------------------------------
# pure-JAX reference (NCHW, exact erf GELU, f32 everywhere) for correctness check
# ---------------------------------------------------------------------------
def ref_forward(x, p, groups=8, eps=1e-5):
    def gn(h, gamma, beta):
        n, c, hh, ww = h.shape
        hg = h.reshape(n, groups, c // groups, hh, ww)
        mean = hg.mean(axis=(2, 3, 4), keepdims=True)
        var = ((hg - mean) ** 2).mean(axis=(2, 3, 4), keepdims=True)
        hn = ((hg - mean) / jnp.sqrt(var + eps)).reshape(n, c, hh, ww)
        return hn * gamma.reshape(1, c, 1, 1) + beta.reshape(1, c, 1, 1)

    def gelu(v):  # exact erf GELU (torch.nn.GELU default)
        return 0.5 * v * (1.0 + jax.lax.erf(v * 0.7071067811865475))

    def conv3x3(h, w_hwio, b):
        y = jax.lax.conv_general_dilated(h, w_hwio, (1, 1), "SAME",
                                         dimension_numbers=("NCHW", "HWIO", "NCHW"))
        return y + b.reshape(1, -1, 1, 1)

    identity = jnp.einsum("nchw,dc->ndhw", x, p["down_w"]) + p["down_b"].reshape(1, -1, 1, 1)
    h = conv3x3(gelu(gn(x, p["gn1_w"], p["gn1_b"])), p["conv1_w"], p["conv1_b"])
    h = conv3x3(gelu(gn(h, p["gn2_w"], p["gn2_b"])), p["conv2_w"], p["conv2_b"])
    pooled = h.mean(axis=(2, 3), keepdims=True)
    s = gelu(jnp.einsum("ncij,dc->ndij", pooled, p["se_w1"]) + p["se_b1"].reshape(1, -1, 1, 1))
    s = jax.nn.sigmoid(jnp.einsum("ncij,dc->ndij", s, p["se_w2"]) + p["se_b2"].reshape(1, -1, 1, 1))
    return h * s + identity


# ---------------------------------------------------------------------------
if __name__ == "__main__":
    N, H, W = 4, 16, 16
    Cin, Cout = 8, 16            # GroupNorm(8, .) requires channels % 8 == 0
    Cse = Cout // 4

    key = jax.random.PRNGKey(0)
    ks = jax.random.split(key, 16)
    f32 = jnp.float32

    params = {
        # GroupNorm affine params, stored (C, 1) for channels-first broadcast
        "gn1_w": 1.0 + 0.1 * jax.random.normal(ks[0], (Cin, 1), f32),
        "gn1_b": 0.1 * jax.random.normal(ks[1], (Cin, 1), f32),
        "gn2_w": 1.0 + 0.1 * jax.random.normal(ks[2], (Cout, 1), f32),
        "gn2_b": 0.1 * jax.random.normal(ks[3], (Cout, 1), f32),
        # conv weights in HWIO (== torch weight.permute(2, 3, 1, 0))
        "conv1_w": 0.1 * jax.random.normal(ks[4], (3, 3, Cin, Cout), f32),
        "conv1_b": 0.1 * jax.random.normal(ks[5], (Cout, 1), f32),
        "conv2_w": 0.1 * jax.random.normal(ks[6], (3, 3, Cout, Cout), f32),
        "conv2_b": 0.1 * jax.random.normal(ks[7], (Cout, 1), f32),
        # downsample 1x1 conv (in_channels != out_channels)
        "down_w": 0.1 * jax.random.normal(ks[8], (Cout, Cin), f32),
        "down_b": 0.1 * jax.random.normal(ks[9], (Cout, 1), f32),
        # squeeze-excite 1x1 convs
        "se_w1": 0.1 * jax.random.normal(ks[10], (Cse, Cout), f32),
        "se_b1": 0.1 * jax.random.normal(ks[11], (Cse, 1), f32),
        "se_w2": 0.1 * jax.random.normal(ks[12], (Cout, Cse), f32),
        "se_b2": 0.1 * jax.random.normal(ks[13], (Cout, 1), f32),
    }

    x = jax.random.normal(ks[14], (N, Cin, H, W), f32)   # NCHW, same layout as PyTorch

    out = jax.block_until_ready(enhanced_resblock(x, params))
    ref = jax.block_until_ready(ref_forward(x, params))

    err = float(jnp.max(jnp.abs(out - ref)))
    assert out.shape == (N, Cout, H, W)
    # tolerance covers bf16 conv / downsample MXU inputs (f32 accumulate) and tanh-approx GELU
    # in the kernel vs the exact erf f32 reference
    assert err < 3e-2, f"max abs err too large: {err}"

    print("KERNEL_OK")
</pallas_src>

<mosaic_0001>
module attributes {stable_mosaic.version = 11 : i64} {
  func.func @enhanced_resblock_kernel(%arg0: i32, %arg1: memref<8x512xf32, #tpu.memory_space<vmem>>, %arg2: memref<16x9xf32, #tpu.memory_space<vmem>>, %arg3: memref<16x44xf32, #tpu.memory_space<vmem>>, %arg4: memref<16x512xbf16, #tpu.memory_space<vmem>>, %arg5: memref<9x512xf32, #tpu.memory_space<vmem>>, %arg6: memref<16x512xf32, #tpu.memory_space<vmem>>) attributes {dimension_semantics = [#tpu.dimension_semantics<parallel>], iteration_bounds = array<i64: 2>, scalar_prefetch = 0 : i64, scratch_operands = 0 : i64, tpu.core_type = #tpu.core_type<tc>, window_params = [{transform_indices = @transform_0, window_bounds = array<i64: 8, 512>}, {pipeline_mode = #tpu.pipeline_mode<synchronous>, transform_indices = @transform_1, window_bounds = array<i64: 16, 9>}, {pipeline_mode = #tpu.pipeline_mode<synchronous>, transform_indices = @transform_2, window_bounds = array<i64: 16, 44>}, {pipeline_mode = #tpu.pipeline_mode<synchronous>, transform_indices = @transform_3, window_bounds = array<i64: 16, 512>}, {pipeline_mode = #tpu.pipeline_mode<synchronous>, transform_indices = @transform_4, window_bounds = array<i64: 9, 512>}, {transform_indices = @transform_5, window_bounds = array<i64: 16, 512>}]} {
    %c0 = arith.constant 0 : index
    %c0_0 = arith.constant 0 : index
    %0 = vector.load %arg1[%c0, %c0_0] : memref<8x512xf32, #tpu.memory_space<vmem>>, vector<8x512xf32>
    %c0_1 = arith.constant 0 : index
    %c0_2 = arith.constant 0 : index
    %1 = vector.load %arg2[%c0_1, %c0_2] : memref<16x9xf32, #tpu.memory_space<vmem>>, vector<16x9xf32>
    %c0_3 = arith.constant 0 : index
    %c0_4 = arith.constant 0 : index
    %2 = vector.load %arg3[%c0_3, %c0_4] : memref<16x44xf32, #tpu.memory_space<vmem>>, vector<16x44xf32>
    %c0_5 = arith.constant 0 : index
    %c0_6 = arith.constant 0 : index
    %3 = vector.load %arg4[%c0_5, %c0_6] : memref<16x512xbf16, #tpu.memory_space<vmem>>, vector<16x512xbf16>
    %c0_7 = arith.constant 0 : index
    %c0_8 = arith.constant 0 : index
    %4 = vector.load %arg5[%c0_7, %c0_8] : memref<9x512xf32, #tpu.memory_space<vmem>>, vector<9x512xf32>
    %5 = vector.extract_strided_slice %1 {offsets = [0, 0], sizes = [8, 1], strides = [1, 1]} : vector<16x9xf32> to vector<8x1xf32>
    %6 = vector.extract_strided_slice %1 {offsets = [0, 1], sizes = [8, 1], strides = [1, 1]} : vector<16x9xf32> to vector<8x1xf32>
    %7 = vector.extract_strided_slice %1 {offsets = [0, 2], sizes = [16, 1], strides = [1, 1]} : vector<16x9xf32> to vector<16x1xf32>
    %8 = vector.extract_strided_slice %1 {offsets = [0, 3], sizes = [16, 1], strides = [1, 1]} : vector<16x9xf32> to vector<16x1xf32>
    %9 = vector.extract_strided_slice %1 {offsets = [0, 4], sizes = [16, 1], strides = [1, 1]} : vector<16x9xf32> to vector<16x1xf32>
    %10 = vector.extract_strided_slice %1 {offsets = [0, 5], sizes = [16, 1], strides = [1, 1]} : vector<16x9xf32> to vector<16x1xf32>
    %11 = vector.extract_strided_slice %1 {offsets = [0, 6], sizes = [16, 1], strides = [1, 1]} : vector<16x9xf32> to vector<16x1xf32>
    %12 = vector.extract_strided_slice %1 {offsets = [0, 7], sizes = [4, 1], strides = [1, 1]} : vector<16x9xf32> to vector<4x1xf32>
    %13 = vector.extract_strided_slice %1 {offsets = [0, 8], sizes = [16, 1], strides = [1, 1]} : vector<16x9xf32> to vector<16x1xf32>
    %14 = vector.extract_strided_slice %2 {offsets = [0, 8], sizes = [16, 16], strides = [1, 1]} : vector<16x44xf32> to vector<16x16xf32>
    %15 = vector.extract_strided_slice %2 {offsets = [0, 24], sizes = [4, 16], strides = [1, 1]} : vector<16x44xf32> to vector<4x16xf32>
    %16 = vector.extract_strided_slice %2 {offsets = [0, 40], sizes = [16, 4], strides = [1, 1]} : vector<16x44xf32> to vector<16x4xf32>
    %17 = vector.extract_strided_slice %3 {offsets = [0, 0], sizes = [16, 72], strides = [1, 1]} : vector<16x512xbf16> to vector<16x72xbf16>
    %18 = vector.extract_strided_slice %3 {offsets = [0, 128], sizes = [16, 144], strides = [1, 1]} : vector<16x512xbf16> to vector<16x144xbf16>
    %19 = vector.extract_strided_slice %3 {offsets = [0, 384], sizes = [16, 8], strides = [1, 1]} : vector<16x512xbf16> to vector<16x8xbf16>
    %20 = arith.truncf %0 : vector<8x512xf32> to vector<8x512xbf16>
    %cst = arith.constant dense<0.000000e+00> : vector<16x512xf32>
    %21 = tpu.matmul %19, %20, %cst {dimension_numbers = #tpu.dot_dimension_numbers<[1], [0], [0], [1], [0, 0, 1, 1], [], []>} : vector<16x8xbf16>, vector<8x512xbf16>, vector<16x512xf32> -> vector<16x512xf32>
    %22 = vector.broadcast %11 : vector<16x1xf32> to vector<16x512xf32>
    %23 = arith.addf %21, %22 : vector<16x512xf32>
    %24 = vector.extract_strided_slice %0 {offsets = [0, 0], sizes = [8, 256], strides = [1, 1]} : vector<8x512xf32> to vector<8x256xf32>
    %cst_9 = arith.constant dense<0.000000e+00> : vector<8xf32>
    %25 = vector.multi_reduction <add>, %24, %cst_9 [1] : vector<8x256xf32> to vector<8xf32>
    %26 = vector.shape_cast %25 : vector<8xf32> to vector<8x1xf32>
    %27 = vector.extract_strided_slice %0 {offsets = [0, 256], sizes = [8, 256], strides = [1, 1]} : vector<8x512xf32> to vector<8x256xf32>
    %cst_10 = arith.constant dense<0.000000e+00> : vector<8xf32>
    %28 = vector.multi_reduction <add>, %27, %cst_10 [1] : vector<8x256xf32> to vector<8xf32>
    %29 = vector.shape_cast %28 : vector<8xf32> to vector<8x1xf32>
    %30 = tpu.concatenate %26, %29 in 1 : vector<8x1xf32>, vector<8x1xf32> -> vector<8x2xf32>
    %cst_11 = arith.constant 3.906250e-03 : f32
    %31 = vector.broadcast %cst_11 : f32 to vector<8x2xf32>
    %32 = arith.mulf %30, %31 : vector<8x2xf32>
    %33 = vector.extract_strided_slice %32 {offsets = [0, 0], sizes = [8, 1], strides = [1, 1]} : vector<8x2xf32> to vector<8x1xf32>
    %34 = vector.shape_cast %33 : vector<8x1xf32> to vector<8x1xf32>
    %35 = vector.broadcast %34 : vector<8x1xf32> to vector<8x256xf32>
    %36 = vector.extract_strided_slice %32 {offsets = [0, 1], sizes = [8, 1], strides = [1, 1]} : vector<8x2xf32> to vector<8x1xf32>
    %37 = vector.shape_cast %36 : vector<8x1xf32> to vector<8x1xf32>
    %38 = vector.broadcast %37 : vector<8x1xf32> to vector<8x256xf32>
    %39 = tpu.concatenate %35, %38 in 1 : vector<8x256xf32>, vector<8x256xf32> -> vector<8x512xf32>
    %40 = arith.subf %0, %39 : vector<8x512xf32>
    %41 = arith.mulf %40, %40 : vector<8x512xf32>
    %42 = vector.extract_strided_slice %41 {offsets = [0, 0], sizes = [8, 256], strides = [1, 1]} : vector<8x512xf32> to vector<8x256xf32>
    %cst_12 = arith.constant dense<0.000000e+00> : vector<8xf32>
    %43 = vector.multi_reduction <add>, %42, %cst_12 [1] : vector<8x256xf32> to vector<8xf32>
    %44 = vector.shape_cast %43 : vector<8xf32> to vector<8x1xf32>
    %45 = vector.extract_strided_slice %41 {offsets = [0, 256], sizes = [8, 256], strides = [1, 1]} : vector<8x512xf32> to vector<8x256xf32>
    %cst_13 = arith.constant dense<0.000000e+00> : vector<8xf32>
    %46 = vector.multi_reduction <add>, %45, %cst_13 [1] : vector<8x256xf32> to vector<8xf32>
    %47 = vector.shape_cast %46 : vector<8xf32> to vector<8x1xf32>
    %48 = tpu.concatenate %44, %47 in 1 : vector<8x1xf32>, vector<8x1xf32> -> vector<8x2xf32>
    %cst_14 = arith.constant 3.906250e-03 : f32
    %49 = vector.broadcast %cst_14 : f32 to vector<8x2xf32>
    %50 = arith.mulf %48, %49 : vector<8x2xf32>
    %cst_15 = arith.constant 9.99999974E-6 : f32
    %51 = vector.broadcast %cst_15 : f32 to vector<8x2xf32>
    %52 = arith.addf %50, %51 : vector<8x2xf32>
    %53 = math.rsqrt %52 : vector<8x2xf32>
    %54 = vector.broadcast %5 : vector<8x1xf32> to vector<8x2xf32>
    %55 = arith.mulf %53, %54 : vector<8x2xf32>
    %56 = vector.extract_strided_slice %55 {offsets = [0, 0], sizes = [8, 1], strides = [1, 1]} : vector<8x2xf32> to vector<8x1xf32>
    %57 = vector.shape_cast %56 : vector<8x1xf32> to vector<8x1xf32>
    %58 = vector.broadcast %57 : vector<8x1xf32> to vector<8x256xf32>
    %59 = vector.extract_strided_slice %55 {offsets = [0, 1], sizes = [8, 1], strides = [1, 1]} : vector<8x2xf32> to vector<8x1xf32>
    %60 = vector.shape_cast %59 : vector<8x1xf32> to vector<8x1xf32>
    %61 = vector.broadcast %60 : vector<8x1xf32> to vector<8x256xf32>
    %62 = tpu.concatenate %58, %61 in 1 : vector<8x256xf32>, vector<8x256xf32> -> vector<8x512xf32>
    %63 = arith.mulf %40, %62 : vector<8x512xf32>
    %64 = vector.broadcast %6 : vector<8x1xf32> to vector<8x512xf32>
    %65 = arith.addf %63, %64 : vector<8x512xf32>
    %66 = arith.mulf %65, %65 : vector<8x512xf32>
    %67 = arith.mulf %65, %66 : vector<8x512xf32>
    %cst_16 = arith.constant 4.471500e-02 : f32
    %68 = vector.broadcast %cst_16 : f32 to vector<8x512xf32>
    %69 = arith.mulf %68, %67 : vector<8x512xf32>
    %70 = arith.addf %65, %69 : vector<8x512xf32>
    %cst_17 = arith.constant 0.797884583 : f32
    %71 = vector.broadcast %cst_17 : f32 to vector<8x512xf32>
    %72 = arith.mulf %71, %70 : vector<8x512xf32>
    %73 = math.tanh %72 : vector<8x512xf32>
    %cst_18 = arith.constant 1.000000e+00 : f32
    %74 = vector.broadcast %cst_18 : f32 to vector<8x512xf32>
    %75 = arith.addf %74, %73 : vector<8x512xf32>
    %cst_19 = arith.constant 5.000000e-01 : f32
    %76 = vector.broadcast %cst_19 : f32 to vector<8x512xf32>
    %77 = arith.mulf %76, %75 : vector<8x512xf32>
    %78 = arith.mulf %65, %77 : vector<8x512xf32>
    %c17_i32 = arith.constant 17 : i32
    %79 = tpu.dynamic_rotate %78 by %c17_i32 dim 1 : vector<8x512xf32>, i32 -> vector<8x512xf32>
    %80 = vector.extract_strided_slice %4 {offsets = [0, 0], sizes = [1, 512], strides = [1, 1]} : vector<9x512xf32> to vector<1x512xf32>
    %81 = vector.broadcast %80 : vector<1x512xf32> to vector<8x512xf32>
    %82 = arith.mulf %79, %81 : vector<8x512xf32>
    %c16_i32 = arith.constant 16 : i32
    %83 = tpu.dynamic_rotate %78 by %c16_i32 dim 1 : vector<8x512xf32>, i32 -> vector<8x512xf32>
    %84 = vector.extract_strided_slice %4 {offsets = [1, 0], sizes = [1, 512], strides = [1, 1]} : vector<9x512xf32> to vector<1x512xf32>
    %85 = vector.broadcast %84 : vector<1x512xf32> to vector<8x512xf32>
    %86 = arith.mulf %83, %85 : vector<8x512xf32>
    %c15_i32 = arith.constant 15 : i32
    %87 = tpu.dynamic_rotate %78 by %c15_i32 dim 1 : vector<8x512xf32>, i32 -> vector<8x512xf32>
    %88 = vector.extract_strided_slice %4 {offsets = [2, 0], sizes = [1, 512], strides = [1, 1]} : vector<9x512xf32> to vector<1x512xf32>
    %89 = vector.broadcast %88 : vector<1x512xf32> to vector<8x512xf32>
    %90 = arith.mulf %87, %89 : vector<8x512xf32>
    %c1_i32 = arith.constant 1 : i32
    %91 = tpu.dynamic_rotate %78 by %c1_i32 dim 1 : vector<8x512xf32>, i32 -> vector<8x512xf32>
    %92 = vector.extract_strided_slice %4 {offsets = [3, 0], sizes = [1, 512], strides = [1, 1]} : vector<9x512xf32> to vector<1x512xf32>
    %93 = vector.broadcast %92 : vector<1x512xf32> to vector<8x512xf32>
    %94 = arith.mulf %91, %93 : vector<8x512xf32>
    %c511_i32 = arith.constant 511 : i32
    %95 = tpu.dynamic_rotate %78 by %c511_i32 dim 1 : vector<8x512xf32>, i32 -> vector<8x512xf32>
    %96 = vector.extract_strided_slice %4 {offsets = [5, 0], sizes = [1, 512], strides = [1, 1]} : vector<9x512xf32> to vector<1x512xf32>
    %97 = vector.broadcast %96 : vector<1x512xf32> to vector<8x512xf32>
    %98 = arith.mulf %95, %97 : vector<8x512xf32>
    %c497_i32 = arith.constant 497 : i32
    %99 = tpu.dynamic_rotate %78 by %c497_i32 dim 1 : vector<8x512xf32>, i32 -> vector<8x512xf32>
    %100 = vector.extract_strided_slice %4 {offsets = [6, 0], sizes = [1, 512], strides = [1, 1]} : vector<9x512xf32> to vector<1x512xf32>
    %101 = vector.broadcast %100 : vector<1x512xf32> to vector<8x512xf32>
    %102 = arith.mulf %99, %101 : vector<8x512xf32>
    %c496_i32 = arith.constant 496 : i32
    %103 = tpu.dynamic_rotate %78 by %c496_i32 dim 1 : vector<8x512xf32>, i32 -> vector<8x512xf32>
    %104 = vector.extract_strided_slice %4 {offsets = [7, 0], sizes = [1, 512], strides = [1, 1]} : vector<9x512xf32> to vector<1x512xf32>
    %105 = vector.broadcast %104 : vector<1x512xf32> to vector<8x512xf32>
    %106 = arith.mulf %103, %105 : vector<8x512xf32>
    %c495_i32 = arith.constant 495 : i32
    %107 = tpu.dynamic_rotate %78 by %c495_i32 dim 1 : vector<8x512xf32>, i32 -> vector<8x512xf32>
    %108 = vector.extract_strided_slice %4 {offsets = [8, 0], sizes = [1, 512], strides = [1, 1]} : vector<9x512xf32> to vector<1x512xf32>
    %109 = vector.broadcast %108 : vector<1x512xf32> to vector<8x512xf32>
    %110 = arith.mulf %107, %109 : vector<8x512xf32>
    %111 = tpu.concatenate %82, %86, %90, %94, %78, %98, %102, %106, %110 in 0 : vector<8x512xf32>, vector<8x512xf32>, vector<8x512xf32>, vector<8x512xf32>, vector<8x512xf32>, vector<8x512xf32>, vector<8x512xf32>, vector<8x512xf32>, vector<8x512xf32> -> vector<72x512xf32>
    %112 = arith.truncf %111 : vector<72x512xf32> to vector<72x512xbf16>
    %cst_20 = arith.constant dense<0.000000e+00> : vector<16x512xf32>
    %113 = tpu.matmul %17, %112, %cst_20 {dimension_numbers = #tpu.dot_dimension_numbers<[1], [0], [0], [1], [0, 0, 1, 1], [], []>} : vector<16x72xbf16>, vector<72x512xbf16>, vector<16x512xf32> -> vector<16x512xf32>
    %114 = vector.broadcast %9 : vector<16x1xf32> to vector<16x512xf32>
    %115 = arith.addf %113, %114 : vector<16x512xf32>
    %116 = vector.extract_strided_slice %115 {offsets = [0, 0], sizes = [16, 256], strides = [1, 1]} : vector<16x512xf32> to vector<16x256xf32>
    %cst_21 = arith.constant dense<0.000000e+00> : vector<16xf32>
    %117 = vector.multi_reduction <add>, %116, %cst_21 [1] : vector<16x256xf32> to vector<16xf32>
    %118 = vector.shape_cast %117 : vector<16xf32> to vector<16x1xf32>
    %119 = vector.extract_strided_slice %115 {offsets = [0, 256], sizes = [16, 256], strides = [1, 1]} : vector<16x512xf32> to vector<16x256xf32>
    %cst_22 = arith.constant dense<0.000000e+00> : vector<16xf32>
    %120 = vector.multi_reduction <add>, %119, %cst_22 [1] : vector<16x256xf32> to vector<16xf32>
    %121 = vector.shape_cast %120 : vector<16xf32> to vector<16x1xf32>
    %122 = tpu.concatenate %118, %121 in 1 : vector<16x1xf32>, vector<16x1xf32> -> vector<16x2xf32>
    %cst_23 = arith.constant dense<0.000000e+00> : vector<16x2xf32>
    %123 = tpu.matmul %14, %122, %cst_23 {dimension_numbers = #tpu.dot_dimension_numbers<[1], [0], [0], [1], [0, 0, 1, 1], [], []>} : vector<16x16xf32>, vector<16x2xf32>, vector<16x2xf32> -> vector<16x2xf32>
    %124 = vector.extract_strided_slice %123 {offsets = [0, 0], sizes = [16, 1], strides = [1, 1]} : vector<16x2xf32> to vector<16x1xf32>
    %125 = vector.shape_cast %124 : vector<16x1xf32> to vector<16x1xf32>
    %126 = vector.broadcast %125 : vector<16x1xf32> to vector<16x256xf32>
    %127 = vector.extract_strided_slice %123 {offsets = [0, 1], sizes = [16, 1], strides = [1, 1]} : vector<16x2xf32> to vector<16x1xf32>
    %128 = vector.shape_cast %127 : vector<16x1xf32> to vector<16x1xf32>
    %129 = vector.broadcast %128 : vector<16x1xf32> to vector<16x256xf32>
    %130 = tpu.concatenate %126, %129 in 1 : vector<16x256xf32>, vector<16x256xf32> -> vector<16x512xf32>
    %131 = arith.subf %115, %130 : vector<16x512xf32>
    %132 = arith.mulf %131, %131 : vector<16x512xf32>
    %133 = vector.extract_strided_slice %132 {offsets = [0, 0], sizes = [16, 256], strides = [1, 1]} : vector<16x512xf32> to vector<16x256xf32>
    %cst_24 = arith.constant dense<0.000000e+00> : vector<16xf32>
    %134 = vector.multi_reduction <add>, %133, %cst_24 [1] : vector<16x256xf32> to vector<16xf32>
    %135 = vector.shape_cast %134 : vector<16xf32> to vector<16x1xf32>
    %136 = vector.extract_strided_slice %132 {offsets = [0, 256], sizes = [16, 256], strides = [1, 1]} : vector<16x512xf32> to vector<16x256xf32>
    %cst_25 = arith.constant dense<0.000000e+00> : vector<16xf32>
    %137 = vector.multi_reduction <add>, %136, %cst_25 [1] : vector<16x256xf32> to vector<16xf32>
    %138 = vector.shape_cast %137 : vector<16xf32> to vector<16x1xf32>
    %139 = tpu.concatenate %135, %138 in 1 : vector<16x1xf32>, vector<16x1xf32> -> vector<16x2xf32>
    %cst_26 = arith.constant dense<0.000000e+00> : vector<16x2xf32>
    %140 = tpu.matmul %14, %139, %cst_26 {dimension_numbers = #tpu.dot_dimension_numbers<[1], [0], [0], [1], [0, 0, 1, 1], [], []>} : vector<16x16xf32>, vector<16x2xf32>, vector<16x2xf32> -> vector<16x2xf32>
    %cst_27 = arith.constant 9.99999974E-6 : f32
    %141 = vector.broadcast %cst_27 : f32 to vector<16x2xf32>
    %142 = arith.addf %140, %141 : vector<16x2xf32>
    %143 = math.rsqrt %142 : vector<16x2xf32>
    %144 = vector.broadcast %7 : vector<16x1xf32> to vector<16x2xf32>
    %145 = arith.mulf %143, %144 : vector<16x2xf32>
    %146 = vector.extract_strided_slice %145 {offsets = [0, 0], sizes = [16, 1], strides = [1, 1]} : vector<16x2xf32> to vector<16x1xf32>
    %147 = vector.shape_cast %146 : vector<16x1xf32> to vector<16x1xf32>
    %148 = vector.broadcast %147 : vector<16x1xf32> to vector<16x256xf32>
    %149 = vector.extract_strided_slice %145 {offsets = [0, 1], sizes = [16, 1], strides = [1, 1]} : vector<16x2xf32> to vector<16x1xf32>
    %150 = vector.shape_cast %149 : vector<16x1xf32> to vector<16x1xf32>
    %151 = vector.broadcast %150 : vector<16x1xf32> to vector<16x256xf32>
    %152 = tpu.concatenate %148, %151 in 1 : vector<16x256xf32>, vector<16x256xf32> -> vector<16x512xf32>
    %153 = arith.mulf %131, %152 : vector<16x512xf32>
    %154 = vector.broadcast %8 : vector<16x1xf32> to vector<16x512xf32>
    %155 = arith.addf %153, %154 : vector<16x512xf32>
    %156 = arith.mulf %155, %155 : vector<16x512xf32>
    %157 = arith.mulf %155, %156 : vector<16x512xf32>
    %cst_28 = arith.constant 4.471500e-02 : f32
    %158 = vector.broadcast %cst_28 : f32 to vector<16x512xf32>
    %159 = arith.mulf %158, %157 : vector<16x512xf32>
    %160 = arith.addf %155, %159 : vector<16x512xf32>
    %cst_29 = arith.constant 0.797884583 : f32
    %161 = vector.broadcast %cst_29 : f32 to vector<16x512xf32>
    %162 = arith.mulf %161, %160 : vector<16x512xf32>
    %163 = math.tanh %162 : vector<16x512xf32>
    %cst_30 = arith.constant 1.000000e+00 : f32
    %164 = vector.broadcast %cst_30 : f32 to vector<16x512xf32>
    %165 = arith.addf %164, %163 : vector<16x512xf32>
    %cst_31 = arith.constant 5.000000e-01 : f32
    %166 = vector.broadcast %cst_31 : f32 to vector<16x512xf32>
    %167 = arith.mulf %166, %165 : vector<16x512xf32>
    %168 = arith.mulf %155, %167 : vector<16x512xf32>
    %c17_i32_32 = arith.constant 17 : i32
    %169 = tpu.dynamic_rotate %168 by %c17_i32_32 dim 1 : vector<16x512xf32>, i32 -> vector<16x512xf32>
    %170 = vector.extract_strided_slice %4 {offsets = [0, 0], sizes = [1, 512], strides = [1, 1]} : vector<9x512xf32> to vector<1x512xf32>
    %171 = vector.broadcast %170 : vector<1x512xf32> to vector<16x512xf32>
    %172 = arith.mulf %169, %171 : vector<16x512xf32>
    %c16_i32_33 = arith.constant 16 : i32
    %173 = tpu.dynamic_rotate %168 by %c16_i32_33 dim 1 : vector<16x512xf32>, i32 -> vector<16x512xf32>
    %174 = vector.extract_strided_slice %4 {offsets = [1, 0], sizes = [1, 512], strides = [1, 1]} : vector<9x512xf32> to vector<1x512xf32>
    %175 = vector.broadcast %174 : vector<1x512xf32> to vector<16x512xf32>
    %176 = arith.mulf %173, %175 : vector<16x512xf32>
    %c15_i32_34 = arith.constant 15 : i32
    %177 = tpu.dynamic_rotate %168 by %c15_i32_34 dim 1 : vector<16x512xf32>, i32 -> vector<16x512xf32>
    %178 = vector.extract_strided_slice %4 {offsets = [2, 0], sizes = [1, 512], strides = [1, 1]} : vector<9x512xf32> to vector<1x512xf32>
    %179 = vector.broadcast %178 : vector<1x512xf32> to vector<16x512xf32>
    %180 = arith.mulf %177, %179 : vector<16x512xf32>
    %c1_i32_35 = arith.constant 1 : i32
    %181 = tpu.dynamic_rotate %168 by %c1_i32_35 dim 1 : vector<16x512xf32>, i32 -> vector<16x512xf32>
    %182 = vector.extract_strided_slice %4 {offsets = [3, 0], sizes = [1, 512], strides = [1, 1]} : vector<9x512xf32> to vector<1x512xf32>
    %183 = vector.broadcast %182 : vector<1x512xf32> to vector<16x512xf32>
    %184 = arith.mulf %181, %183 : vector<16x512xf32>
    %c511_i32_36 = arith.constant 511 : i32
    %185 = tpu.dynamic_rotate %168 by %c511_i32_36 dim 1 : vector<16x512xf32>, i32 -> vector<16x512xf32>
    %186 = vector.extract_strided_slice %4 {offsets = [5, 0], sizes = [1, 512], strides = [1, 1]} : vector<9x512xf32> to vector<1x512xf32>
    %187 = vector.broadcast %186 : vector<1x512xf32> to vector<16x512xf32>
    %188 = arith.mulf %185, %187 : vector<16x512xf32>
    %c497_i32_37 = arith.constant 497 : i32
    %189 = tpu.dynamic_rotate %168 by %c497_i32_37 dim 1 : vector<16x512xf32>, i32 -> vector<16x512xf32>
    %190 = vector.extract_strided_slice %4 {offsets = [6, 0], sizes = [1, 512], strides = [1, 1]} : vector<9x512xf32> to vector<1x512xf32>
    %191 = vector.broadcast %190 : vector<1x512xf32> to vector<16x512xf32>
    %192 = arith.mulf %189, %191 : vector<16x512xf32>
    %c496_i32_38 = arith.constant 496 : i32
    %193 = tpu.dynamic_rotate %168 by %c496_i32_38 dim 1 : vector<16x512xf32>, i32 -> vector<16x512xf32>
    %194 = vector.extract_strided_slice %4 {offsets = [7, 0], sizes = [1, 512], strides = [1, 1]} : vector<9x512xf32> to vector<1x512xf32>
    %195 = vector.broadcast %194 : vector<1x512xf32> to vector<16x512xf32>
    %196 = arith.mulf %193, %195 : vector<16x512xf32>
    %c495_i32_39 = arith.constant 495 : i32
    %197 = tpu.dynamic_rotate %168 by %c495_i32_39 dim 1 : vector<16x512xf32>, i32 -> vector<16x512xf32>
    %198 = vector.extract_strided_slice %4 {offsets = [8, 0], sizes = [1, 512], strides = [1, 1]} : vector<9x512xf32> to vector<1x512xf32>
    %199 = vector.broadcast %198 : vector<1x512xf32> to vector<16x512xf32>
    %200 = arith.mulf %197, %199 : vector<16x512xf32>
    %201 = tpu.concatenate %172, %176, %180, %184, %168, %188, %192, %196, %200 in 0 : vector<16x512xf32>, vector<16x512xf32>, vector<16x512xf32>, vector<16x512xf32>, vector<16x512xf32>, vector<16x512xf32>, vector<16x512xf32>, vector<16x512xf32>, vector<16x512xf32> -> vector<144x512xf32>
    %202 = arith.truncf %201 : vector<144x512xf32> to vector<144x512xbf16>
    %cst_40 = arith.constant dense<0.000000e+00> : vector<16x512xf32>
    %203 = tpu.matmul %18, %202, %cst_40 {dimension_numbers = #tpu.dot_dimension_numbers<[1], [0], [0], [1], [0, 0, 1, 1], [], []>} : vector<16x144xbf16>, vector<144x512xbf16>, vector<16x512xf32> -> vector<16x512xf32>
    %204 = vector.broadcast %10 : vector<16x1xf32> to vector<16x512xf32>
    %205 = arith.addf %203, %204 : vector<16x512xf32>
    %206 = vector.extract_strided_slice %205 {offsets = [0, 0], sizes = [16, 256], strides = [1, 1]} : vector<16x512xf32> to vector<16x256xf32>
    %cst_41 = arith.constant dense<0.000000e+00> : vector<16xf32>
    %207 = vector.multi_reduction <add>, %206, %cst_41 [1] : vector<16x256xf32> to vector<16xf32>
    %208 = vector.shape_cast %207 : vector<16xf32> to vector<16x1xf32>
    %209 = vector.extract_strided_slice %205 {offsets = [0, 256], sizes = [16, 256], strides = [1, 1]} : vector<16x512xf32> to vector<16x256xf32>
    %cst_42 = arith.constant dense<0.000000e+00> : vector<16xf32>
    %210 = vector.multi_reduction <add>, %209, %cst_42 [1] : vector<16x256xf32> to vector<16xf32>
    %211 = vector.shape_cast %210 : vector<16xf32> to vector<16x1xf32>
    %212 = tpu.concatenate %208, %211 in 1 : vector<16x1xf32>, vector<16x1xf32> -> vector<16x2xf32>
    %cst_43 = arith.constant 3.906250e-03 : f32
    %213 = vector.broadcast %cst_43 : f32 to vector<16x2xf32>
    %214 = arith.mulf %212, %213 : vector<16x2xf32>
    %cst_44 = arith.constant dense<0.000000e+00> : vector<4x2xf32>
    %215 = tpu.matmul %15, %214, %cst_44 {dimension_numbers = #tpu.dot_dimension_numbers<[1], [0], [0], [1], [0, 0, 1, 1], [], []>} : vector<4x16xf32>, vector<16x2xf32>, vector<4x2xf32> -> vector<4x2xf32>
    %216 = vector.broadcast %12 : vector<4x1xf32> to vector<4x2xf32>
    %217 = arith.addf %215, %216 : vector<4x2xf32>
    %218 = arith.mulf %217, %217 : vector<4x2xf32>
    %219 = arith.mulf %217, %218 : vector<4x2xf32>
    %cst_45 = arith.constant 4.471500e-02 : f32
    %220 = vector.broadcast %cst_45 : f32 to vector<4x2xf32>
    %221 = arith.mulf %220, %219 : vector<4x2xf32>
    %222 = arith.addf %217, %221 : vector<4x2xf32>
    %cst_46 = arith.constant 0.797884583 : f32
    %223 = vector.broadcast %cst_46 : f32 to vector<4x2xf32>
    %224 = arith.mulf %223, %222 : vector<4x2xf32>
    %225 = math.tanh %224 : vector<4x2xf32>
    %cst_47 = arith.constant 1.000000e+00 : f32
    %226 = vector.broadcast %cst_47 : f32 to vector<4x2xf32>
    %227 = arith.addf %226, %225 : vector<4x2xf32>
    %cst_48 = arith.constant 5.000000e-01 : f32
    %228 = vector.broadcast %cst_48 : f32 to vector<4x2xf32>
    %229 = arith.mulf %228, %227 : vector<4x2xf32>
    %230 = arith.mulf %217, %229 : vector<4x2xf32>
    %cst_49 = arith.constant dense<0.000000e+00> : vector<16x2xf32>
    %231 = tpu.matmul %16, %230, %cst_49 {dimension_numbers = #tpu.dot_dimension_numbers<[1], [0], [0], [1], [0, 0, 1, 1], [], []>} : vector<16x4xf32>, vector<4x2xf32>, vector<16x2xf32> -> vector<16x2xf32>
    %232 = vector.broadcast %13 : vector<16x1xf32> to vector<16x2xf32>
    %233 = arith.addf %231, %232 : vector<16x2xf32>
    %234 = arith.negf %233 : vector<16x2xf32>
    %235 = math.exp %234 : vector<16x2xf32>
    %cst_50 = arith.constant 1.000000e+00 : f32
    %236 = vector.broadcast %cst_50 : f32 to vector<16x2xf32>
    %237 = arith.addf %236, %235 : vector<16x2xf32>
    %238 = arith.divf %236, %237 : vector<16x2xf32>
    %239 = vector.extract_strided_slice %238 {offsets = [0, 0], sizes = [16, 1], strides = [1, 1]} : vector<16x2xf32> to vector<16x1xf32>
    %240 = vector.shape_cast %239 : vector<16x1xf32> to vector<16x1xf32>
    %241 = vector.broadcast %240 : vector<16x1xf32> to vector<16x256xf32>
    %242 = vector.extract_strided_slice %238 {offsets = [0, 1], sizes = [16, 1], strides = [1, 1]} : vector<16x2xf32> to vector<16x1xf32>
    %243 = vector.shape_cast %242 : vector<16x1xf32> to vector<16x1xf32>
    %244 = vector.broadcast %243 : vector<16x1xf32> to vector<16x256xf32>
    %245 = tpu.concatenate %241, %244 in 1 : vector<16x256xf32>, vector<16x256xf32> -> vector<16x512xf32>
    %246 = arith.mulf %205, %245 : vector<16x512xf32>
    %247 = arith.addf %246, %23 : vector<16x512xf32>
    %c0_51 = arith.constant 0 : index
    %c0_52 = arith.constant 0 : index
    %248 = vector.load %arg6[%c0_51, %c0_52] : memref<16x512xf32, #tpu.memory_space<vmem>>, vector<16x512xf32>
    tpu.vector_store %arg6[%c0_51, %c0_52], %247 {strides = array<i32>} : memref<16x512xf32, #tpu.memory_space<vmem>>, vector<16x512xf32>,
    return
  }
  func.func @transform_0(%arg0: i32) -> (i32, i32) {
    %c0_i32 = arith.constant 0 : i32
    %c0_i32_0 = arith.constant 0 : i32
    return %c0_i32, %arg0 : i32, i32
  }
  func.func @transform_1(%arg0: i32) -> (i32, i32) {
    %c0_i32 = arith.constant 0 : i32
    %c0_i32_0 = arith.constant 0 : i32
    %c0_i32_1 = arith.constant 0 : i32
    return %c0_i32, %c0_i32_0 : i32, i32
  }
  func.func @transform_2(%arg0: i32) -> (i32, i32) {
    %c0_i32 = arith.constant 0 : i32
    %c0_i32_0 = arith.constant 0 : i32
    %c0_i32_1 = arith.constant 0 : i32
    return %c0_i32, %c0_i32_0 : i32, i32
  }
  func.func @transform_3(%arg0: i32) -> (i32, i32) {
    %c0_i32 = arith.constant 0 : i32
    %c0_i32_0 = arith.constant 0 : i32
    %c0_i32_1 = arith.constant 0 : i32
    return %c0_i32, %c0_i32_0 : i32, i32
  }
  func.func @transform_4(%arg0: i32) -> (i32, i32) {
    %c0_i32 = arith.constant 0 : i32
    %c0_i32_0 = arith.constant 0 : i32
    %c0_i32_1 = arith.constant 0 : i32
    return %c0_i32, %c0_i32_0 : i32, i32
  }
  func.func @transform_5(%arg0: i32) -> (i32, i32) {
    %c0_i32 = arith.constant 0 : i32
    %c0_i32_0 = arith.constant 0 : i32
    return %c0_i32, %arg0 : i32, i32
  }
}

module attributes {stable_mosaic.version = 11 : i64} {
  func.func @enhanced_resblock_kernel(%arg0: i32, %arg1: memref<8x512xf32, #tpu.memory_space<vmem>>, %arg2: memref<16x9xf32, #tpu.memory_space<vmem>>, %arg3: memref<16x44xf32, #tpu.memory_space<vmem>>, %arg4: memref<16x512xbf16, #tpu.memory_space<vmem>>, %arg5: memref<9x512xf32, #tpu.memory_space<vmem>>, %arg6: memref<16x512xf32, #tpu.memory_space<vmem>>) attributes {dimension_semantics = [#tpu.dimension_semantics<parallel>], iteration_bounds = array<i64: 2>, scalar_prefetch = 0 : i64, scratch_operands = 0 : i64, tpu.core_type = #tpu.core_type<tc>, window_params = [{transform_indices = @transform_0, window_bounds = array<i64: 8, 512>}, {pipeline_mode = #tpu.pipeline_mode<synchronous>, transform_indices = @transform_1, window_bounds = array<i64: 16, 9>}, {pipeline_mode = #tpu.pipeline_mode<synchronous>, transform_indices = @transform_2, window_bounds = array<i64: 16, 44>}, {pipeline_mode = #tpu.pipeline_mode<synchronous>, transform_indices = @transform_3, window_bounds = array<i64: 16, 512>}, {pipeline_mode = #tpu.pipeline_mode<synchronous>, transform_indices = @transform_4, window_bounds = array<i64: 9, 512>}, {transform_indices = @transform_5, window_bounds = array<i64: 16, 512>}]} {
    %c0 = arith.constant 0 : index
    %c0_0 = arith.constant 0 : index
    %0 = vector.load %arg1[%c0, %c0_0] : memref<8x512xf32, #tpu.memory_space<vmem>>, vector<8x512xf32>
    %c0_1 = arith.constant 0 : index
    %c0_2 = arith.constant 0 : index
    %1 = vector.load %arg2[%c0_1, %c0_2] : memref<16x9xf32, #tpu.memory_space<vmem>>, vector<16x9xf32>
    %c0_3 = arith.constant 0 : index
    %c0_4 = arith.constant 0 : index
    %2 = vector.load %arg3[%c0_3, %c0_4] : memref<16x44xf32, #tpu.memory_space<vmem>>, vector<16x44xf32>
    %c0_5 = arith.constant 0 : index
    %c0_6 = arith.constant 0 : index
    %3 = vector.load %arg4[%c0_5, %c0_6] : memref<16x512xbf16, #tpu.memory_space<vmem>>, vector<16x512xbf16>
    %c0_7 = arith.constant 0 : index
    %c0_8 = arith.constant 0 : index
    %4 = vector.load %arg5[%c0_7, %c0_8] : memref<9x512xf32, #tpu.memory_space<vmem>>, vector<9x512xf32>
    %5 = vector.extract_strided_slice %1 {offsets = [0, 0], sizes = [8, 1], strides = [1, 1]} : vector<16x9xf32> to vector<8x1xf32>
    %6 = vector.extract_strided_slice %1 {offsets = [0, 1], sizes = [8, 1], strides = [1, 1]} : vector<16x9xf32> to vector<8x1xf32>
    %7 = vector.extract_strided_slice %1 {offsets = [0, 2], sizes = [16, 1], strides = [1, 1]} : vector<16x9xf32> to vector<16x1xf32>
    %8 = vector.extract_strided_slice %1 {offsets = [0, 3], sizes = [16, 1], strides = [1, 1]} : vector<16x9xf32> to vector<16x1xf32>
    %9 = vector.extract_strided_slice %1 {offsets = [0, 4], sizes = [16, 1], strides = [1, 1]} : vector<16x9xf32> to vector<16x1xf32>
    %10 = vector.extract_strided_slice %1 {offsets = [0, 5], sizes = [16, 1], strides = [1, 1]} : vector<16x9xf32> to vector<16x1xf32>
    %11 = vector.extract_strided_slice %1 {offsets = [0, 6], sizes = [16, 1], strides = [1, 1]} : vector<16x9xf32> to vector<16x1xf32>
    %12 = vector.extract_strided_slice %1 {offsets = [0, 7], sizes = [4, 1], strides = [1, 1]} : vector<16x9xf32> to vector<4x1xf32>
    %13 = vector.extract_strided_slice %1 {offsets = [0, 8], sizes = [16, 1], strides = [1, 1]} : vector<16x9xf32> to vector<16x1xf32>
    %14 = vector.extract_strided_slice %2 {offsets = [0, 8], sizes = [16, 16], strides = [1, 1]} : vector<16x44xf32> to vector<16x16xf32>
    %15 = vector.extract_strided_slice %2 {offsets = [0, 24], sizes = [4, 16], strides = [1, 1]} : vector<16x44xf32> to vector<4x16xf32>
    %16 = vector.extract_strided_slice %2 {offsets = [0, 40], sizes = [16, 4], strides = [1, 1]} : vector<16x44xf32> to vector<16x4xf32>
    %17 = vector.extract_strided_slice %3 {offsets = [0, 0], sizes = [16, 72], strides = [1, 1]} : vector<16x512xbf16> to vector<16x72xbf16>
    %18 = vector.extract_strided_slice %3 {offsets = [0, 128], sizes = [16, 144], strides = [1, 1]} : vector<16x512xbf16> to vector<16x144xbf16>
    %19 = vector.extract_strided_slice %3 {offsets = [0, 384], sizes = [16, 8], strides = [1, 1]} : vector<16x512xbf16> to vector<16x8xbf16>
    %20 = arith.truncf %0 : vector<8x512xf32> to vector<8x512xbf16>
    %cst = arith.constant dense<0.000000e+00> : vector<16x512xf32>
    %21 = tpu.matmul %19, %20, %cst {dimension_numbers = #tpu.dot_dimension_numbers<[1], [0], [0], [1], [0, 0, 1, 1], [], []>} : vector<16x8xbf16>, vector<8x512xbf16>, vector<16x512xf32> -> vector<16x512xf32>
    %22 = vector.broadcast %11 : vector<16x1xf32> to vector<16x512xf32>
    %23 = arith.addf %21, %22 : vector<16x512xf32>
    %24 = vector.extract_strided_slice %0 {offsets = [0, 0], sizes = [8, 256], strides = [1, 1]} : vector<8x512xf32> to vector<8x256xf32>
    %cst_9 = arith.constant dense<0.000000e+00> : vector<8xf32>
    %25 = vector.multi_reduction <add>, %24, %cst_9 [1] : vector<8x256xf32> to vector<8xf32>
    %26 = vector.shape_cast %25 : vector<8xf32> to vector<8x1xf32>
    %27 = vector.extract_strided_slice %0 {offsets = [0, 256], sizes = [8, 256], strides = [1, 1]} : vector<8x512xf32> to vector<8x256xf32>
    %cst_10 = arith.constant dense<0.000000e+00> : vector<8xf32>
    %28 = vector.multi_reduction <add>, %27, %cst_10 [1] : vector<8x256xf32> to vector<8xf32>
    %29 = vector.shape_cast %28 : vector<8xf32> to vector<8x1xf32>
    %30 = tpu.concatenate %26, %29 in 1 : vector<8x1xf32>, vector<8x1xf32> -> vector<8x2xf32>
    %cst_11 = arith.constant 3.906250e-03 : f32
    %31 = vector.broadcast %cst_11 : f32 to vector<8x2xf32>
    %32 = arith.mulf %30, %31 : vector<8x2xf32>
    %33 = vector.extract_strided_slice %32 {offsets = [0, 0], sizes = [8, 1], strides = [1, 1]} : vector<8x2xf32> to vector<8x1xf32>
    %34 = vector.shape_cast %33 : vector<8x1xf32> to vector<8x1xf32>
    %35 = vector.broadcast %34 : vector<8x1xf32> to vector<8x256xf32>
    %36 = vector.extract_strided_slice %32 {offsets = [0, 1], sizes = [8, 1], strides = [1, 1]} : vector<8x2xf32> to vector<8x1xf32>
    %37 = vector.shape_cast %36 : vector<8x1xf32> to vector<8x1xf32>
    %38 = vector.broadcast %37 : vector<8x1xf32> to vector<8x256xf32>
    %39 = tpu.concatenate %35, %38 in 1 : vector<8x256xf32>, vector<8x256xf32> -> vector<8x512xf32>
    %40 = arith.subf %0, %39 : vector<8x512xf32>
    %41 = arith.mulf %40, %40 : vector<8x512xf32>
    %42 = vector.extract_strided_slice %41 {offsets = [0, 0], sizes = [8, 256], strides = [1, 1]} : vector<8x512xf32> to vector<8x256xf32>
    %cst_12 = arith.constant dense<0.000000e+00> : vector<8xf32>
    %43 = vector.multi_reduction <add>, %42, %cst_12 [1] : vector<8x256xf32> to vector<8xf32>
    %44 = vector.shape_cast %43 : vector<8xf32> to vector<8x1xf32>
    %45 = vector.extract_strided_slice %41 {offsets = [0, 256], sizes = [8, 256], strides = [1, 1]} : vector<8x512xf32> to vector<8x256xf32>
    %cst_13 = arith.constant dense<0.000000e+00> : vector<8xf32>
    %46 = vector.multi_reduction <add>, %45, %cst_13 [1] : vector<8x256xf32> to vector<8xf32>
    %47 = vector.shape_cast %46 : vector<8xf32> to vector<8x1xf32>
    %48 = tpu.concatenate %44, %47 in 1 : vector<8x1xf32>, vector<8x1xf32> -> vector<8x2xf32>
    %cst_14 = arith.constant 3.906250e-03 : f32
    %49 = vector.broadcast %cst_14 : f32 to vector<8x2xf32>
    %50 = arith.mulf %48, %49 : vector<8x2xf32>
    %cst_15 = arith.constant 9.99999974E-6 : f32
    %51 = vector.broadcast %cst_15 : f32 to vector<8x2xf32>
    %52 = arith.addf %50, %51 : vector<8x2xf32>
    %53 = math.rsqrt %52 : vector<8x2xf32>
    %54 = vector.broadcast %5 : vector<8x1xf32> to vector<8x2xf32>
    %55 = arith.mulf %53, %54 : vector<8x2xf32>
    %56 = vector.extract_strided_slice %55 {offsets = [0, 0], sizes = [8, 1], strides = [1, 1]} : vector<8x2xf32> to vector<8x1xf32>
    %57 = vector.shape_cast %56 : vector<8x1xf32> to vector<8x1xf32>
    %58 = vector.broadcast %57 : vector<8x1xf32> to vector<8x256xf32>
    %59 = vector.extract_strided_slice %55 {offsets = [0, 1], sizes = [8, 1], strides = [1, 1]} : vector<8x2xf32> to vector<8x1xf32>
    %60 = vector.shape_cast %59 : vector<8x1xf32> to vector<8x1xf32>
    %61 = vector.broadcast %60 : vector<8x1xf32> to vector<8x256xf32>
    %62 = tpu.concatenate %58, %61 in 1 : vector<8x256xf32>, vector<8x256xf32> -> vector<8x512xf32>
    %63 = arith.mulf %40, %62 : vector<8x512xf32>
    %64 = vector.broadcast %6 : vector<8x1xf32> to vector<8x512xf32>
    %65 = arith.addf %63, %64 : vector<8x512xf32>
    %66 = arith.mulf %65, %65 : vector<8x512xf32>
    %67 = arith.mulf %65, %66 : vector<8x512xf32>
    %cst_16 = arith.constant 4.471500e-02 : f32
    %68 = vector.broadcast %cst_16 : f32 to vector<8x512xf32>
    %69 = arith.mulf %68, %67 : vector<8x512xf32>
    %70 = arith.addf %65, %69 : vector<8x512xf32>
    %cst_17 = arith.constant 0.797884583 : f32
    %71 = vector.broadcast %cst_17 : f32 to vector<8x512xf32>
    %72 = arith.mulf %71, %70 : vector<8x512xf32>
    %73 = math.tanh %72 : vector<8x512xf32>
    %cst_18 = arith.constant 1.000000e+00 : f32
    %74 = vector.broadcast %cst_18 : f32 to vector<8x512xf32>
    %75 = arith.addf %74, %73 : vector<8x512xf32>
    %cst_19 = arith.constant 5.000000e-01 : f32
    %76 = vector.broadcast %cst_19 : f32 to vector<8x512xf32>
    %77 = arith.mulf %76, %75 : vector<8x512xf32>
    %78 = arith.mulf %65, %77 : vector<8x512xf32>
    %c17_i32 = arith.constant 17 : i32
    %79 = tpu.dynamic_rotate %78 by %c17_i32 dim 1 : vector<8x512xf32>, i32 -> vector<8x512xf32>
    %80 = vector.extract_strided_slice %4 {offsets = [0, 0], sizes = [1, 512], strides = [1, 1]} : vector<9x512xf32> to vector<1x512xf32>
    %81 = vector.broadcast %80 : vector<1x512xf32> to vector<8x512xf32>
    %82 = arith.mulf %79, %81 : vector<8x512xf32>
    %c16_i32 = arith.constant 16 : i32
    %83 = tpu.dynamic_rotate %78 by %c16_i32 dim 1 : vector<8x512xf32>, i32 -> vector<8x512xf32>
    %84 = vector.extract_strided_slice %4 {offsets = [1, 0], sizes = [1, 512], strides = [1, 1]} : vector<9x512xf32> to vector<1x512xf32>
    %85 = vector.broadcast %84 : vector<1x512xf32> to vector<8x512xf32>
    %86 = arith.mulf %83, %85 : vector<8x512xf32>
    %c15_i32 = arith.constant 15 : i32
    %87 = tpu.dynamic_rotate %78 by %c15_i32 dim 1 : vector<8x512xf32>, i32 -> vector<8x512xf32>
    %88 = vector.extract_strided_slice %4 {offsets = [2, 0], sizes = [1, 512], strides = [1, 1]} : vector<9x512xf32> to vector<1x512xf32>
    %89 = vector.broadcast %88 : vector<1x512xf32> to vector<8x512xf32>
    %90 = arith.mulf %87, %89 : vector<8x512xf32>
    %c1_i32 = arith.constant 1 : i32
    %91 = tpu.dynamic_rotate %78 by %c1_i32 dim 1 : vector<8x512xf32>, i32 -> vector<8x512xf32>
    %92 = vector.extract_strided_slice %4 {offsets = [3, 0], sizes = [1, 512], strides = [1, 1]} : vector<9x512xf32> to vector<1x512xf32>
    %93 = vector.broadcast %92 : vector<1x512xf32> to vector<8x512xf32>
    %94 = arith.mulf %91, %93 : vector<8x512xf32>
    %c511_i32 = arith.constant 511 : i32
    %95 = tpu.dynamic_rotate %78 by %c511_i32 dim 1 : vector<8x512xf32>, i32 -> vector<8x512xf32>
    %96 = vector.extract_strided_slice %4 {offsets = [5, 0], sizes = [1, 512], strides = [1, 1]} : vector<9x512xf32> to vector<1x512xf32>
    %97 = vector.broadcast %96 : vector<1x512xf32> to vector<8x512xf32>
    %98 = arith.mulf %95, %97 : vector<8x512xf32>
    %c497_i32 = arith.constant 497 : i32
    %99 = tpu.dynamic_rotate %78 by %c497_i32 dim 1 : vector<8x512xf32>, i32 -> vector<8x512xf32>
    %100 = vector.extract_strided_slice %4 {offsets = [6, 0], sizes = [1, 512], strides = [1, 1]} : vector<9x512xf32> to vector<1x512xf32>
    %101 = vector.broadcast %100 : vector<1x512xf32> to vector<8x512xf32>
    %102 = arith.mulf %99, %101 : vector<8x512xf32>
    %c496_i32 = arith.constant 496 : i32
    %103 = tpu.dynamic_rotate %78 by %c496_i32 dim 1 : vector<8x512xf32>, i32 -> vector<8x512xf32>
    %104 = vector.extract_strided_slice %4 {offsets = [7, 0], sizes = [1, 512], strides = [1, 1]} : vector<9x512xf32> to vector<1x512xf32>
    %105 = vector.broadcast %104 : vector<1x512xf32> to vector<8x512xf32>
    %106 = arith.mulf %103, %105 : vector<8x512xf32>
    %c495_i32 = arith.constant 495 : i32
    %107 = tpu.dynamic_rotate %78 by %c495_i32 dim 1 : vector<8x512xf32>, i32 -> vector<8x512xf32>
    %108 = vector.extract_strided_slice %4 {offsets = [8, 0], sizes = [1, 512], strides = [1, 1]} : vector<9x512xf32> to vector<1x512xf32>
    %109 = vector.broadcast %108 : vector<1x512xf32> to vector<8x512xf32>
    %110 = arith.mulf %107, %109 : vector<8x512xf32>
    %111 = tpu.concatenate %82, %86, %90, %94, %78, %98, %102, %106, %110 in 0 : vector<8x512xf32>, vector<8x512xf32>, vector<8x512xf32>, vector<8x512xf32>, vector<8x512xf32>, vector<8x512xf32>, vector<8x512xf32>, vector<8x512xf32>, vector<8x512xf32> -> vector<72x512xf32>
    %112 = arith.truncf %111 : vector<72x512xf32> to vector<72x512xbf16>
    %cst_20 = arith.constant dense<0.000000e+00> : vector<16x512xf32>
    %113 = tpu.matmul %17, %112, %cst_20 {dimension_numbers = #tpu.dot_dimension_numbers<[1], [0], [0], [1], [0, 0, 1, 1], [], []>} : vector<16x72xbf16>, vector<72x512xbf16>, vector<16x512xf32> -> vector<16x512xf32>
    %114 = vector.broadcast %9 : vector<16x1xf32> to vector<16x512xf32>
    %115 = arith.addf %113, %114 : vector<16x512xf32>
    %116 = vector.extract_strided_slice %115 {offsets = [0, 0], sizes = [16, 256], strides = [1, 1]} : vector<16x512xf32> to vector<16x256xf32>
    %cst_21 = arith.constant dense<0.000000e+00> : vector<16xf32>
    %117 = vector.multi_reduction <add>, %116, %cst_21 [1] : vector<16x256xf32> to vector<16xf32>
    %118 = vector.shape_cast %117 : vector<16xf32> to vector<16x1xf32>
    %119 = vector.extract_strided_slice %115 {offsets = [0, 256], sizes = [16, 256], strides = [1, 1]} : vector<16x512xf32> to vector<16x256xf32>
    %cst_22 = arith.constant dense<0.000000e+00> : vector<16xf32>
    %120 = vector.multi_reduction <add>, %119, %cst_22 [1] : vector<16x256xf32> to vector<16xf32>
    %121 = vector.shape_cast %120 : vector<16xf32> to vector<16x1xf32>
    %122 = tpu.concatenate %118, %121 in 1 : vector<16x1xf32>, vector<16x1xf32> -> vector<16x2xf32>
    %cst_23 = arith.constant dense<0.000000e+00> : vector<16x2xf32>
    %123 = tpu.matmul %14, %122, %cst_23 {dimension_numbers = #tpu.dot_dimension_numbers<[1], [0], [0], [1], [0, 0, 1, 1], [], []>} : vector<16x16xf32>, vector<16x2xf32>, vector<16x2xf32> -> vector<16x2xf32>
    %124 = vector.extract_strided_slice %123 {offsets = [0, 0], sizes = [16, 1], strides = [1, 1]} : vector<16x2xf32> to vector<16x1xf32>
    %125 = vector.shape_cast %124 : vector<16x1xf32> to vector<16x1xf32>
    %126 = vector.broadcast %125 : vector<16x1xf32> to vector<16x256xf32>
    %127 = vector.extract_strided_slice %123 {offsets = [0, 1], sizes = [16, 1], strides = [1, 1]} : vector<16x2xf32> to vector<16x1xf32>
    %128 = vector.shape_cast %127 : vector<16x1xf32> to vector<16x1xf32>
    %129 = vector.broadcast %128 : vector<16x1xf32> to vector<16x256xf32>
    %130 = tpu.concatenate %126, %129 in 1 : vector<16x256xf32>, vector<16x256xf32> -> vector<16x512xf32>
    %131 = arith.subf %115, %130 : vector<16x512xf32>
    %132 = arith.mulf %131, %131 : vector<16x512xf32>
    %133 = vector.extract_strided_slice %132 {offsets = [0, 0], sizes = [16, 256], strides = [1, 1]} : vector<16x512xf32> to vector<16x256xf32>
    %cst_24 = arith.constant dense<0.000000e+00> : vector<16xf32>
    %134 = vector.multi_reduction <add>, %133, %cst_24 [1] : vector<16x256xf32> to vector<16xf32>
    %135 = vector.shape_cast %134 : vector<16xf32> to vector<16x1xf32>
    %136 = vector.extract_strided_slice %132 {offsets = [0, 256], sizes = [16, 256], strides = [1, 1]} : vector<16x512xf32> to vector<16x256xf32>
    %cst_25 = arith.constant dense<0.000000e+00> : vector<16xf32>
    %137 = vector.multi_reduction <add>, %136, %cst_25 [1] : vector<16x256xf32> to vector<16xf32>
    %138 = vector.shape_cast %137 : vector<16xf32> to vector<16x1xf32>
    %139 = tpu.concatenate %135, %138 in 1 : vector<16x1xf32>, vector<16x1xf32> -> vector<16x2xf32>
    %cst_26 = arith.constant dense<0.000000e+00> : vector<16x2xf32>
    %140 = tpu.matmul %14, %139, %cst_26 {dimension_numbers = #tpu.dot_dimension_numbers<[1], [0], [0], [1], [0, 0, 1, 1], [], []>} : vector<16x16xf32>, vector<16x2xf32>, vector<16x2xf32> -> vector<16x2xf32>
    %cst_27 = arith.constant 9.99999974E-6 : f32
    %141 = vector.broadcast %cst_27 : f32 to vector<16x2xf32>
    %142 = arith.addf %140, %141 : vector<16x2xf32>
    %143 = math.rsqrt %142 : vector<16x2xf32>
    %144 = vector.broadcast %7 : vector<16x1xf32> to vector<16x2xf32>
    %145 = arith.mulf %143, %144 : vector<16x2xf32>
    %146 = vector.extract_strided_slice %145 {offsets = [0, 0], sizes = [16, 1], strides = [1, 1]} : vector<16x2xf32> to vector<16x1xf32>
    %147 = vector.shape_cast %146 : vector<16x1xf32> to vector<16x1xf32>
    %148 = vector.broadcast %147 : vector<16x1xf32> to vector<16x256xf32>
    %149 = vector.extract_strided_slice %145 {offsets = [0, 1], sizes = [16, 1], strides = [1, 1]} : vector<16x2xf32> to vector<16x1xf32>
    %150 = vector.shape_cast %149 : vector<16x1xf32> to vector<16x1xf32>
    %151 = vector.broadcast %150 : vector<16x1xf32> to vector<16x256xf32>
    %152 = tpu.concatenate %148, %151 in 1 : vector<16x256xf32>, vector<16x256xf32> -> vector<16x512xf32>
    %153 = arith.mulf %131, %152 : vector<16x512xf32>
    %154 = vector.broadcast %8 : vector<16x1xf32> to vector<16x512xf32>
    %155 = arith.addf %153, %154 : vector<16x512xf32>
    %156 = arith.mulf %155, %155 : vector<16x512xf32>
    %157 = arith.mulf %155, %156 : vector<16x512xf32>
    %cst_28 = arith.constant 4.471500e-02 : f32
    %158 = vector.broadcast %cst_28 : f32 to vector<16x512xf32>
    %159 = arith.mulf %158, %157 : vector<16x512xf32>
    %160 = arith.addf %155, %159 : vector<16x512xf32>
    %cst_29 = arith.constant 0.797884583 : f32
    %161 = vector.broadcast %cst_29 : f32 to vector<16x512xf32>
    %162 = arith.mulf %161, %160 : vector<16x512xf32>
    %163 = math.tanh %162 : vector<16x512xf32>
    %cst_30 = arith.constant 1.000000e+00 : f32
    %164 = vector.broadcast %cst_30 : f32 to vector<16x512xf32>
    %165 = arith.addf %164, %163 : vector<16x512xf32>
    %cst_31 = arith.constant 5.000000e-01 : f32
    %166 = vector.broadcast %cst_31 : f32 to vector<16x512xf32>
    %167 = arith.mulf %166, %165 : vector<16x512xf32>
    %168 = arith.mulf %155, %167 : vector<16x512xf32>
    %c17_i32_32 = arith.constant 17 : i32
    %169 = tpu.dynamic_rotate %168 by %c17_i32_32 dim 1 : vector<16x512xf32>, i32 -> vector<16x512xf32>
    %170 = vector.extract_strided_slice %4 {offsets = [0, 0], sizes = [1, 512], strides = [1, 1]} : vector<9x512xf32> to vector<1x512xf32>
    %171 = vector.broadcast %170 : vector<1x512xf32> to vector<16x512xf32>
    %172 = arith.mulf %169, %171 : vector<16x512xf32>
    %c16_i32_33 = arith.constant 16 : i32
    %173 = tpu.dynamic_rotate %168 by %c16_i32_33 dim 1 : vector<16x512xf32>, i32 -> vector<16x512xf32>
    %174 = vector.extract_strided_slice %4 {offsets = [1, 0], sizes = [1, 512], strides = [1, 1]} : vector<9x512xf32> to vector<1x512xf32>
    %175 = vector.broadcast %174 : vector<1x512xf32> to vector<16x512xf32>
    %176 = arith.mulf %173, %175 : vector<16x512xf32>
    %c15_i32_34 = arith.constant 15 : i32
    %177 = tpu.dynamic_rotate %168 by %c15_i32_34 dim 1 : vector<16x512xf32>, i32 -> vector<16x512xf32>
    %178 = vector.extract_strided_slice %4 {offsets = [2, 0], sizes = [1, 512], strides = [1, 1]} : vector<9x512xf32> to vector<1x512xf32>
    %179 = vector.broadcast %178 : vector<1x512xf32> to vector<16x512xf32>
    %180 = arith.mulf %177, %179 : vector<16x512xf32>
    %c1_i32_35 = arith.constant 1 : i32
    %181 = tpu.dynamic_rotate %168 by %c1_i32_35 dim 1 : vector<16x512xf32>, i32 -> vector<16x512xf32>
    %182 = vector.extract_strided_slice %4 {offsets = [3, 0], sizes = [1, 512], strides = [1, 1]} : vector<9x512xf32> to vector<1x512xf32>
    %183 = vector.broadcast %182 : vector<1x512xf32> to vector<16x512xf32>
    %184 = arith.mulf %181, %183 : vector<16x512xf32>
    %c511_i32_36 = arith.constant 511 : i32
    %185 = tpu.dynamic_rotate %168 by %c511_i32_36 dim 1 : vector<16x512xf32>, i32 -> vector<16x512xf32>
    %186 = vector.extract_strided_slice %4 {offsets = [5, 0], sizes = [1, 512], strides = [1, 1]} : vector<9x512xf32> to vector<1x512xf32>
    %187 = vector.broadcast %186 : vector<1x512xf32> to vector<16x512xf32>
    %188 = arith.mulf %185, %187 : vector<16x512xf32>
    %c497_i32_37 = arith.constant 497 : i32
    %189 = tpu.dynamic_rotate %168 by %c497_i32_37 dim 1 : vector<16x512xf32>, i32 -> vector<16x512xf32>
    %190 = vector.extract_strided_slice %4 {offsets = [6, 0], sizes = [1, 512], strides = [1, 1]} : vector<9x512xf32> to vector<1x512xf32>
    %191 = vector.broadcast %190 : vector<1x512xf32> to vector<16x512xf32>
    %192 = arith.mulf %189, %191 : vector<16x512xf32>
    %c496_i32_38 = arith.constant 496 : i32
    %193 = tpu.dynamic_rotate %168 by %c496_i32_38 dim 1 : vector<16x512xf32>, i32 -> vector<16x512xf32>
    %194 = vector.extract_strided_slice %4 {offsets = [7, 0], sizes = [1, 512], strides = [1, 1]} : vector<9x512xf32> to vector<1x512xf32>
    %195 = vector.broadcast %194 : vector<1x512xf32> to vector<16x512xf32>
    %196 = arith.mulf %193, %195 : vector<16x512xf32>
    %c495_i32_39 = arith.constant 495 : i32
    %197 = tpu.dynamic_rotate %168 by %c495_i32_39 dim 1 : vector<16x512xf32>, i32 -> vector<16x512xf32>
    %198 = vector.extract_strided_slice %4 {offsets = [8, 0], sizes = [1, 512], strides = [1, 1]} : vector<9x512xf32> to vector<1x512xf32>
    %199 = vector.broadcast %198 : vector<1x512xf32> to vector<16x512xf32>
    %200 = arith.mulf %197, %199 : vector<16x512xf32>
    %201 = tpu.concatenate %172, %176, %180, %184, %168, %188, %192, %196, %200 in 0 : vector<16x512xf32>, vector<16x512xf32>, vector<16x512xf32>, vector<16x512xf32>, vector<16x512xf32>, vector<16x512xf32>, vector<16x512xf32>, vector<16x512xf32>, vector<16x512xf32> -> vector<144x512xf32>
    %202 = arith.truncf %201 : vector<144x512xf32> to vector<144x512xbf16>
    %cst_40 = arith.constant dense<0.000000e+00> : vector<16x512xf32>
    %203 = tpu.matmul %18, %202, %cst_40 {dimension_numbers = #tpu.dot_dimension_numbers<[1], [0], [0], [1], [0, 0, 1, 1], [], []>} : vector<16x144xbf16>, vector<144x512xbf16>, vector<16x512xf32> -> vector<16x512xf32>
    %204 = vector.broadcast %10 : vector<16x1xf32> to vector<16x512xf32>
    %205 = arith.addf %203, %204 : vector<16x512xf32>
    %206 = vector.extract_strided_slice %205 {offsets = [0, 0], sizes = [16, 256], strides = [1, 1]} : vector<16x512xf32> to vector<16x256xf32>
    %cst_41 = arith.constant dense<0.000000e+00> : vector<16xf32>
    %207 = vector.multi_reduction <add>, %206, %cst_41 [1] : vector<16x256xf32> to vector<16xf32>
    %208 = vector.shape_cast %207 : vector<16xf32> to vector<16x1xf32>
    %209 = vector.extract_strided_slice %205 {offsets = [0, 256], sizes = [16, 256], strides = [1, 1]} : vector<16x512xf32> to vector<16x256xf32>
    %cst_42 = arith.constant dense<0.000000e+00> : vector<16xf32>
    %210 = vector.multi_reduction <add>, %209, %cst_42 [1] : vector<16x256xf32> to vector<16xf32>
    %211 = vector.shape_cast %210 : vector<16xf32> to vector<16x1xf32>
    %212 = tpu.concatenate %208, %211 in 1 : vector<16x1xf32>, vector<16x1xf32> -> vector<16x2xf32>
    %cst_43 = arith.constant 3.906250e-03 : f32
    %213 = vector.broadcast %cst_43 : f32 to vector<16x2xf32>
    %214 = arith.mulf %212, %213 : vector<16x2xf32>
    %cst_44 = arith.constant dense<0.000000e+00> : vector<4x2xf32>
    %215 = tpu.matmul %15, %214, %cst_44 {dimension_numbers = #tpu.dot_dimension_numbers<[1], [0], [0], [1], [0, 0, 1, 1], [], []>} : vector<4x16xf32>, vector<16x2xf32>, vector<4x2xf32> -> vector<4x2xf32>
    %216 = vector.broadcast %12 : vector<4x1xf32> to vector<4x2xf32>
    %217 = arith.addf %215, %216 : vector<4x2xf32>
    %218 = arith.mulf %217, %217 : vector<4x2xf32>
    %219 = arith.mulf %217, %218 : vector<4x2xf32>
    %cst_45 = arith.constant 4.471500e-02 : f32
    %220 = vector.broadcast %cst_45 : f32 to vector<4x2xf32>
    %221 = arith.mulf %220, %219 : vector<4x2xf32>
    %222 = arith.addf %217, %221 : vector<4x2xf32>
    %cst_46 = arith.constant 0.797884583 : f32
    %223 = vector.broadcast %cst_46 : f32 to vector<4x2xf32>
    %224 = arith.mulf %223, %222 : vector<4x2xf32>
    %225 = math.tanh %224 : vector<4x2xf32>
    %cst_47 = arith.constant 1.000000e+00 : f32
    %226 = vector.broadcast %cst_47 : f32 to vector<4x2xf32>
    %227 = arith.addf %226, %225 : vector<4x2xf32>
    %cst_48 = arith.constant 5.000000e-01 : f32
    %228 = vector.broadcast %cst_48 : f32 to vector<4x2xf32>
    %229 = arith.mulf %228, %227 : vector<4x2xf32>
    %230 = arith.mulf %217, %229 : vector<4x2xf32>
    %cst_49 = arith.constant dense<0.000000e+00> : vector<16x2xf32>
    %231 = tpu.matmul %16, %230, %cst_49 {dimension_numbers = #tpu.dot_dimension_numbers<[1], [0], [0], [1], [0, 0, 1, 1], [], []>} : vector<16x4xf32>, vector<4x2xf32>, vector<16x2xf32> -> vector<16x2xf32>
    %232 = vector.broadcast %13 : vector<16x1xf32> to vector<16x2xf32>
    %233 = arith.addf %231, %232 : vector<16x2xf32>
    %234 = arith.negf %233 : vector<16x2xf32>
    %235 = math.exp %234 : vector<16x2xf32>
    %cst_50 = arith.constant 1.000000e+00 : f32
    %236 = vector.broadcast %cst_50 : f32 to vector<16x2xf32>
    %237 = arith.addf %236, %235 : vector<16x2xf32>
    %238 = arith.divf %236, %237 : vector<16x2xf32>
    %239 = vector.extract_strided_slice %238 {offsets = [0, 0], sizes = [16, 1], strides = [1, 1]} : vector<16x2xf32> to vector<16x1xf32>
    %240 = vector.shape_cast %239 : vector<16x1xf32> to vector<16x1xf32>
    %241 = vector.broadcast %240 : vector<16x1xf32> to vector<16x256xf32>
    %242 = vector.extract_strided_slice %238 {offsets = [0, 1], sizes = [16, 1], strides = [1, 1]} : vector<16x2xf32> to vector<16x1xf32>
    %243 = vector.shape_cast %242 : vector<16x1xf32> to vector<16x1xf32>
    %244 = vector.broadcast %243 : vector<16x1xf32> to vector<16x256xf32>
    %245 = tpu.concatenate %241, %244 in 1 : vector<16x256xf32>, vector<16x256xf32> -> vector<16x512xf32>
    %246 = arith.mulf %205, %245 : vector<16x512xf32>
    %247 = arith.addf %246, %23 : vector<16x512xf32>
    %c0_51 = arith.constant 0 : index
    %c0_52 = arith.constant 0 : index
    %248 = vector.load %arg6[%c0_51, %c0_52] : memref<16x512xf32, #tpu.memory_space<vmem>>, vector<16x512xf32>
    tpu.vector_store %arg6[%c0_51, %c0_52], %247 {strides = array<i32>} : memref<16x512xf32, #tpu.memory_space<vmem>>, vector<16x512xf32>,
    return
  }
  func.func @transform_0(%arg0: i32) -> (i32, i32) {
    %c0_i32 = arith.constant 0 : i32
    %c0_i32_0 = arith.constant 0 : i32
    return %c0_i32, %arg0 : i32, i32
  }
  func.func @transform_1(%arg0: i32) -> (i32, i32) {
    %c0_i32 = arith.constant 0 : i32
    %c0_i32_0 = arith.constant 0 : i32
    %c0_i32_1 = arith.constant 0 : i32
    return %c0_i32, %c0_i32_0 : i32, i32
  }
  func.func @transform_2(%arg0: i32) -> (i32, i32) {
    %c0_i32 = arith.constant 0 : i32
    %c0_i32_0 = arith.constant 0 : i32
    %c0_i32_1 = arith.constant 0 : i32
    return %c0_i32, %c0_i32_0 : i32, i32
  }
  func.func @transform_3(%arg0: i32) -> (i32, i32) {
    %c0_i32 = arith.constant 0 : i32
    %c0_i32_0 = arith.constant 0 : i32
    %c0_i32_1 = arith.constant 0 : i32
    return %c0_i32, %c0_i32_0 : i32, i32
  }
  func.func @transform_4(%arg0: i32) -> (i32, i32) {
    %c0_i32 = arith.constant 0 : i32
    %c0_i32_0 = arith.constant 0 : i32
    %c0_i32_1 = arith.constant 0 : i32
    return %c0_i32, %c0_i32_0 : i32, i32
  }
  func.func @transform_5(%arg0: i32) -> (i32, i32) {
    %c0_i32 = arith.constant 0 : i32
    %c0_i32_0 = arith.constant 0 : i32
    return %c0_i32, %arg0 : i32, i32
  }
}

</mosaic_0001>

<bundles_post_ra>
// kernel: tpu_custom_call.1
= control target key start
LH: loop header
LB: loop body
LE: loop exit
PB: predicated region body
PF: predicated region fallthrough
CT: control target
= control target key end

     0   :  { %10 = vsyncpa [#allocation3], 0  ;;  %s3907_s0 = inlined_call_operand.hbm [shape: f32[8,1024], index: 0, kind: input, shape index: {}]   ;;  %s3908_s1 = inlined_call_operand.hbm [shape: f32[16,9], index: 1, kind: input, shape index: {}]   ;;  %s3909_s2 = inlined_call_operand.hbm [shape: f32[16,44], index: 2, kind: input, shape index: {}]   ;;  %s3910_s3 = inlined_call_operand.hbm [shape: bf16[16,512], index: 3, kind: input, shape index: {}]   ;;  %s3911_s4 = inlined_call_operand.hbm [shape: f32[9,512], index: 4, kind: input, shape index: {}]   ;;  %s3912_s5 = inlined_call_operand.hbm [shape: f32[16,1024], index: 5, kind: output, shape index: {}]  }
   0x1   :  { %12 = vsyncpa [#allocation3 + $0x1], 0 }
   0x2   :  { %13 = vsyncpa [#allocation6], 0 }
   0x3   :  { %14 = vsyncpa [#allocation9], 0 }
   0x4   :  { %15 = vsyncpa [#allocation4], 0 }
   0x5   :  { %17 = vsyncpa [#allocation4 + $0x1], 0  ;;  %s2653_s18 = smov 0   ;;  %s2655_s19 = smov 0  }
   0x6   :  { %s2657_s20 = smov 0   ;;  %s2659_s21 = smov 0  }
   0x7 LB: > { %s2585_s22 = smov [#allocation5]   ;;  %s2674_s24 = sadd.s32 4294967295, %s2583_s21   ;;  %s2583_s21 = sphi %s2659_s21, %s3974_s21   ;;  %s2579_s20 = sphi %s2657_s20, %s3973_s20   ;;  %s2575_s19 = sphi %s2655_s19, %s3972_s19   ;;  %s2571_s18 = sphi %s2653_s18, %s3971_s18  }
   0x8   : > { %s176_s23 = sshll.u32 %s2585_s22, 4  ;;  %p2066_p0 = scmp.ge.s32.totalorder %s2583_s21, 1  ;;  %s2679_s23 = int_to_ptr.vmem [resolvable:$true] %s176_s23 }
   0x9   : > { %p3913_p1 = scmp.eq.s32.totalorder %s2674_s24, 0  ;;  %p164_p2 = scmp.lt.s32.totalorder %s2583_s21, 3 }
   0xa   : > { %s2586_s26 = smov [#allocation8]   ;;  %s2587_s29 = smov [#allocation7]  }
   0xb   : > { %p2681_p3 = pnand %p2066_p0, %p164_p2  ;;  %s202_s27 = sshll.u32 %s2586_s26, 4  ;;  %s2694_s27 = int_to_ptr.vmem [resolvable:$true] %s202_s27 }
   0xc   : > { %s2696_s30 = sshll.u32 %s2587_s29, 4  ;;  %s2367_s8 = scalar_lea.hbm %s3908_s1, 256  ;;  %s190_s30 = int_to_ptr.vmem [resolvable:$true] %s2696_s30 }
   0xd   : > { %s3926_s25 = scalar_select %p2681_p3, 1, 0 }
   0xe   : > { %p2188_p5 = pneg %p2681_p3  ;;  %p2368_p7 = scmp.ne.s32.totalorder %s3908_s1, %s2367_s8 }
   0xf   : > { %p2374_p11 = scmp.lt.u32.totalorder %s2367_s8, %s3908_s1 }
  0x10   : > { %p2690_p6 = pnand %p2188_p5, %p3913_p1 }
  0x12   : > { %p2706_p8 = pneg %p2690_p6 }
  0x14   : > { %p2370_p9 = pnand %p2706_p8, %p2368_p7 }
  0x16   : > { %p2371_p10 = pneg %p2370_p9 }
  0x18   : > { %p2376_p12 = pnand %p2374_p11, %p2371_p10 }
  0x1a   : > { %2379 = shalt.err (!%p2376_p12)
}
  0x1b   : > { %s2380_s14 = scalar_lea.vmem %s2679_s23, 256  ;;  %p2388_p5 = scmp.lt.s32.totalorder %s2679_s23, %s2679_s23 }
  0x1c   : > { %p2381_p13 = scmp.ne.s32.totalorder %s2679_s23, %s2380_s14  ;;  %p2389_p4 = scmp.lt.s32.totalorder %s2380_s14, %s2380_s14 }
  0x1e   : > { %p2383_p0 = pnand %p2381_p13, %p2706_p8  ;;  %p2390_p7 = por %p2389_p4, %p2388_p5 }
  0x20   : > { %p2384_p2 = pneg %p2383_p0 }
  0x22   : > { %p2391_p9 = pnand %p2390_p7, %p2384_p2 }
  0x24   : > { %2394 = shalt.err (!%p2391_p9)
}
  0x25   : > { %s2588_s15 = smov 128   ;;  %s2589_s16 = smov 8  }
  0x26   : > { %2191 = dma.hbm_to_vmem [thread:$0]  (!%p2690_p6), %s3908_s1, 256, %s2679_s23, [#allocation6], %s2588_s15, %s2588_s15, %s2589_s16  }
  0x27   : > { %s2395_s6 = scalar_lea.hbm %s3910_s3, 512 }
  0x28   : > { %p2396_p4 = scmp.ne.s32.totalorder %s3910_s3, %s2395_s6  ;;  %p2402_p12 = scmp.lt.u32.totalorder %s2395_s6, %s3910_s3 }
  0x2a   : > { %p2398_p10 = pnand %p2396_p4, %p2706_p8 }
  0x2c   : > { %p2399_p11 = pneg %p2398_p10 }
  0x2e   : > { %p2404_p13 = pnand %p2402_p12, %p2399_p11 }
  0x30   : > { %2407 = shalt.err (!%p2404_p13)
}
  0x31   : > { %s2408_s23 = scalar_lea.vmem %s2694_s27, 512  ;;  %p2416_p7 = scmp.lt.s32.totalorder %s2694_s27, %s2694_s27 }
  0x32   : > { %p2409_p0 = scmp.ne.s32.totalorder %s2694_s27, %s2408_s23  ;;  %p2417_p9 = scmp.lt.s32.totalorder %s2408_s23, %s2408_s23 }
  0x34   : > { %p2411_p2 = pnand %p2409_p0, %p2706_p8  ;;  %p2418_p4 = por %p2417_p9, %p2416_p7 }
  0x36   : > { %p2412_p5 = pneg %p2411_p2 }
  0x38   : > { %p2419_p10 = pnand %p2418_p4, %p2412_p5 }
  0x3a   : > { %2422 = shalt.err (!%p2419_p10)
}
  0x3b   : > { %s2590_s12 = smov 256   ;;  %s2591_s13 = smov 16  }
  0x3c   : > { %2197 = dma.hbm_to_vmem [thread:$0]  (!%p2690_p6), %s3910_s3, 512, %s2694_s27, [#allocation9], %s2590_s12, %s2590_s12, %s2591_s13  }
  0x3d   : > { %s2423_s29 = scalar_lea.hbm %s3909_s2, 256 }
  0x3e   : > { %p2424_p11 = scmp.ne.s32.totalorder %s3909_s2, %s2423_s29  ;;  %p2430_p0 = scmp.lt.u32.totalorder %s2423_s29, %s3909_s2 }
  0x40   : > { %p2426_p12 = pnand %p2424_p11, %p2706_p8 }
  0x42   : > { %p2427_p13 = pneg %p2426_p12 }
  0x44   : > { %p2432_p2 = pnand %p2430_p0, %p2427_p13 }
  0x46   : > { %2435 = shalt.err (!%p2432_p2)
}
  0x47   : > { %s2436_s10 = scalar_lea.vmem %s190_s30, 256  ;;  %p2444_p4 = scmp.lt.s32.totalorder %s190_s30, %s190_s30 }
  0x48   : > { %p2437_p5 = scmp.ne.s32.totalorder %s190_s30, %s2436_s10  ;;  %p2445_p10 = scmp.lt.s32.totalorder %s2436_s10, %s2436_s10 }
  0x4a   : > { %p2439_p7 = pnand %p2437_p5, %p2706_p8  ;;  %p2446_p1 = por %p2445_p10, %p2444_p4 }
  0x4c   : > { %p2440_p9 = pneg %p2439_p7 }
  0x4e   : > { %p2447_p3 = pnand %p2446_p1, %p2440_p9 }
  0x50   : > { %2450 = shalt.err (!%p2447_p3)
}
  0x51   : > { %2194 = dma.hbm_to_vmem [thread:$0]  (!%p2690_p6), %s3909_s2, 256, %s190_s30, [#allocation6], %s2588_s15, %s2588_s15, %s2589_s16  }
  0x52   : > { %s2592_s12 = smov [#allocation10]   ;;  %s2451_s22 = scalar_lea.hbm %s3911_s4, 1024 }
  0x53   : > { %s215_s13 = sshll.u32 %s2592_s12, 4  ;;  %p2452_p1 = scmp.ne.s32.totalorder %s3911_s4, %s2451_s22  ;;  %s216_s13 = int_to_ptr.vmem [resolvable:$true] %s215_s13 }
  0x54   : > { %p2458_p12 = scmp.lt.u32.totalorder %s2451_s22, %s3911_s4 }
  0x55   : > { %p2454_p3 = pnand %p2452_p1, %p2706_p8 }
  0x57   : > { %p2455_p11 = pneg %p2454_p3 }
  0x59   : > { %p2460_p13 = pnand %p2458_p12, %p2455_p11 }
  0x5b   : > { %2463 = shalt.err (!%p2460_p13)
}
  0x5c   : > { %s2464_s30 = scalar_lea.vmem %s216_s13, 1024  ;;  %p2472_p7 = scmp.lt.s32.totalorder %s216_s13, %s216_s13 }
  0x5d   : > { %p2465_p0 = scmp.ne.s32.totalorder %s216_s13, %s2464_s30  ;;  %p2473_p9 = scmp.lt.s32.totalorder %s2464_s30, %s2464_s30 }
  0x5f   : > { %p2467_p2 = pnand %p2465_p0, %p2706_p8  ;;  %p2474_p4 = por %p2473_p9, %p2472_p7 }
  0x61   : > { %p2468_p5 = pneg %p2467_p2 }
  0x63   : > { %p2475_p10 = pnand %p2474_p4, %p2468_p5 }
  0x65   : > { %2478 = shalt.err (!%p2475_p10)
}
  0x66   : > { %s2593_s15 = smov 512   ;;  %s2594_s11 = smov 32  }
  0x67   : > { %2200 = dma.hbm_to_vmem [thread:$0]  (!%p2690_p6), %s3911_s4, 1024, %s216_s13, [#allocation9], %s2593_s15, %s2593_s15, %s2594_s11  }
  0x68   : > { %s2065_s9 = sadd.s32 4294967294, %s2583_s21   ;;  %s2795_s10 = sadd.s32 1, %s2583_s21  }
  0x69   : > { %s27_s27 = ssub.s32 %s2583_s21, %s2795_s10  ;;  %s30_s23 = sadd.s32 1, %s2579_s20 }
  0x6a   : > { %p28_p8 = scmp.eq.s32.totalorder %s27_s27, 0  ;;  %p37_p1 = scmp.ne.s32.totalorder %s2579_s20, %s2575_s19 }
  0x6b   : > { %p38_p3 = scmp.eq.s32.totalorder %s2583_s21, 0  ;;  %p43_p11 = scmp.ne.s32.totalorder %s2575_s19, %s2571_s18 }
  0x6c   : > { %s2806_s12 = scalar_select %p28_p8, %s2579_s20, %s30_s23  }
  0x6d   : > { %p2808_p12 = por %p38_p3, %p37_p1  ;;  %p3930_p13 = scmp.eq.s32.totalorder %s2674_s24, 0 }
  0x6e   : > { %p151_p0 = scmp.eq.s32.totalorder %s2674_s24, 1  ;;  %p157_p2 = scmp.eq.s32.totalorder %s2065_s9, 1 }
  0x6f   : > { %p2814_p6 = por %p3930_p13, %p43_p11  ;;  %p2213_p5 = scmp.lt.s32.totalorder %s2583_s21, 2 }
  0x70   : > { %s229_s14 = sand.u32 1, %s2579_s20   ;;  %p2821_p7 = por %p151_p0, %p37_p1 }
  0x71   : > { %p2825_p9 = por %p157_p2, %p43_p11  ;;  %s2072_s26 = sshll.u32 %s229_s14, 5 }
  0x72   : > { %s3932_s17 = scalar_select %p2821_p7, 1, 0 }
  0x73   : > { %s3933_s22 = scalar_select %p2825_p9, 1, 0 }
  0x74   : > { %s2115_s29 = sshll.u32 %s2583_s21, 9  ;;  %s233_s15 = scalar_lea.vmem [#allocation2], %s2072_s26 }
  0x75   : > { %s2833_s30 = scalar_lea.hbm %s3907_s0, %s2115_s29  ;;  %s241_s11 = sshll.u32 %s233_s15, 4  ;;  %s2835_s11 = int_to_ptr.vmem [resolvable:$true] %s241_s11 }
  0x76   : > { %p2839_p4 = pnand %p2213_p5, %p2808_p12  ;;  %s230_s8 = scalar_lea.sflag [#allocation3], %s229_s14 }
  0x77   : > { %s2479_s9 = scalar_lea.hbm %s2833_s30, 512  ;;  %s2484_s26 = scalar_lea.hbm %s3907_s0, 1024 }
  0x78   : > { %p2480_p10 = scmp.ne.s32.totalorder %s2833_s30, %s2479_s9  ;;  %p2481_p8 = pneg %p2839_p4 }
  0x79   : > { %p2485_p11 = scmp.lt.u32.totalorder %s2833_s30, %s3907_s0  ;;  %p2486_p12 = scmp.lt.u32.totalorder %s2484_s26, %s2479_s9 }
  0x7a   : > { %p2482_p1 = pnand %p2481_p8, %p2480_p10  ;;  %p2488_p0 = scmp.lt.u32.totalorder %s2479_s9, %s2833_s30 }
  0x7b   : > { %p2487_p13 = por %p2486_p12, %p2485_p11 }
  0x7c   : > { %p2483_p3 = pneg %p2482_p1 }
  0x7d   : > { %p2489_p2 = por %p2488_p0, %p2487_p13 }
  0x7f   : > { %p2490_p5 = pnand %p2489_p2, %p2483_p3 }
  0x81   : > { %2493 = shalt.err (!%p2490_p5)
}
  0x82   : > { %s2494_s14 = scalar_lea.vmem %s2835_s11, 512  ;;  %s2595_s6 = smov [#allocation2]  }
  0x83   : > { %p2495_p10 = scmp.ne.s32.totalorder %s2835_s11, %s2494_s14  ;;  %s2499_s7 = sshll.u32 %s2595_s6, 4  ;;  %s2500_s7 = int_to_ptr.vmem [resolvable:$false] %s2499_s7 }
  0x84   : > { %s2501_s15 = scalar_lea.vmem %s2500_s7, 1024  ;;  %p2502_p7 = scmp.lt.s32.totalorder %s2835_s11, %s2500_s7 }
  0x85   : > { %p2497_p1 = pnand %p2495_p10, %p2481_p8  ;;  %p2503_p11 = scmp.lt.s32.totalorder %s2501_s15, %s2494_s14 }
  0x87   : > { %p2498_p9 = pneg %p2497_p1  ;;  %p2504_p12 = por %p2503_p11, %p2502_p7 }
  0x89   : > { %p2505_p13 = pnand %p2504_p12, %p2498_p9 }
  0x8b   : > { %2508 = shalt.err (!%p2505_p13)
}
  0x8c   : > { %2204 = dma.hbm_to_vmem [thread:$0]  (!%p2839_p4), %s2833_s30, 512, %s2835_s11, %s230_s8  }
  0x8d   : > { %p3935_p3 = scmp.ne.s32.totalorder %s3926_s25, 0 }
  0x8f   : > { %250 = sbr.rel (%p3935_p3) target bundleno = 3489 (0xda1), region = 40 }
  0x96   : > { %s2871_s9 = sand.u32 1, %s2575_s19  }
  0x97   : > { %s2076_s27 = sshll.u32 %s2871_s9, 5  ;;  %s253_s23 = scalar_lea.sflag [#allocation3], %s2871_s9 }
  0x98   : > { %s256_s26 = scalar_lea.vmem [#allocation2], %s2076_s27 }
  0x99   : > { %2554 = dma.done.wait (%p2814_p6), %s253_s23, 512  }
  0x9a   : > { %2556 = vsyncadd (%p2814_p6), %s253_s23, 4294966784  ;;  %p3936_p7 = scmp.eq.s32.totalorder %s2674_s24, 0 }
  0x9c   : > { %2558 = dma.done.wait (%p3936_p7), [#allocation6], 512   ;;  %p3937_p9 = pmov %p3936_p7 }
  0x9d   : > { %p3938_p4 = pmov %p3936_p7 }
  0x9e   : > { %2560 = vsyncadd (%p3937_p9), [#allocation6], 4294966784 }
  0x9f   : > { %2562 = dma.done.wait (%p3938_p4), [#allocation9], 1536   ;;  %p3939_p8 = pmov %p3938_p4 }
  0xa0   : > { %v2887_v0 = vld [vmem:[%s256_s26] sm:$0xff]  ;;  %v2889_v1 = vld [vmem:[%s256_s26 + $0x8] sm:$0xff]  ;;  %v2891_v2 = vld [vmem:[%s256_s26 + $0x10] sm:$0xff]  ;;  %v3918_v6 = vmov 0   ;;  %vm450_vm0 = vcmask 7168   ;;  %v3916_v11 = vmov 1  }
  0xa1   : > { %2564 = vsyncadd (%p3939_p8), [#allocation9], 4294965760  ;;  %v444_v3 = vadd.f32 %v2889_v1, %v2887_v0  ;;  %v2895_v4 = vld [vmem:[%s256_s26 + $0x18] sm:$0xff]  ;;  %2287 = vset.pattern.permute.xlu1 %v3918_v6  ;;  %2289 = vset.pattern.permute.xlu0 %v3918_v6  ;;  %v2910_v24 = vld [vmem:[#allocation5] sm:$0xff]  ;;  %vm345_vm1 = vcmask 1043456   ;;  %s2598_s25 = smov 17  }
  0xa2   : > { %v447_v5 = vadd.f32 %v2895_v4, %v2891_v2  ;;  %390 = vmatprep.mubr.bf16.mxu0 %v3918_v6  ;;  %433 = vmatprep.mubr.bf16.mxu1 %v3918_v6  ;;  %vm341_vm2 = vcmask 64512   ;;  %s2599_s13 = smov 16   ;;  %s2600_s30 = smov 15   ;;  %vm841_vm11 = vcmask 588800   ;;  %vm963_vm12 = vcmask 130048  }
  0xa3   : > { %445 = vadd.xlane.f32.xlu0 %v444_v3  ;;  %s2601_s11 = smov 1   ;;  %s2602_s16 = smov 127   ;;  %vm2615_vm13 = vmmov 0   ;;  %vm1803_vm14 = vcmask 31744  }
  0xa4   : > { %s2603_s8 = smov 113   ;;  %s2604_s28 = smov 112  }
  0xa5   : > { %s2605_s29 = smov 111   ;;  %s2607_s14 = smov 120  }
  0xa6   : > { %s2612_s6 = smov 104   ;;  %s2613_s7 = smov 88  }
  0xa7   : > { %448 = vadd.xlane.f32.xlu0 %v447_v5  ;;  %s2081_s15 = sshll.u32 %s2871_s9, 6  ;;  %s2116_s26 = sshll.u32 %s2674_s24, 9 }
  0xa8   : > { %s298_s27 = scalar_lea.vmem [#allocation11], %s2081_s15  ;;  %s3863_s24 = scalar_lea.hbm %s3912_s5, %s2116_s26 }
  0xa9   : > { %s1954_s23 = sshll.u32 %s298_s27, 4  ;;  %p3968_p0 = scmp.ne.s32.totalorder %s3932_s17, 0  ;;  %s3854_s23 = int_to_ptr.vmem [resolvable:$true] %s1954_s23 }
 0x130   : > { %v446_v7 = vpop.xlane.xlu0 %445 }
 0x134   : > { %v449_v8 = vpop.xlane.xlu0 %448 }
 0x135   : > { %v451_v9 = vsel %vm450_vm0, %v446_v7, %v449_v8 }
 0x136   : > { %v452_v10 = vmul.f32 0.00390625, %v451_v9 }
 0x138   : > { %455 = vperm.xlu1 %2287, %v452_v10  }
 0x13c   : > { %2288 = vset.pattern.permute.xlu1 %v3916_v11 }
 0x13d   : > { %459 = vperm.xlu1 %2288, %v452_v10  }
 0x141   : > { %2290 = vset.pattern.permute.xlu1 %v3918_v6 }
 0x1b7   : > { %v456_v12 = vpop.permute.xlu1 %455 }
 0x1b8   : > { %v462_v13 = vsub.f32 %v2887_v0, %v456_v12  ;;  %v463_v14 = vsub.f32 %v2889_v1, %v456_v12 }
 0x1ba   : > { %v466_v15 = vmul.f32 %v462_v13, %v462_v13  ;;  %v467_v16 = vmul.f32 %v463_v14, %v463_v14 }
 0x1bc   : > { %v460_v17 = vpop.permute.xlu1 %459  ;;  %v470_v18 = vadd.f32 %v467_v16, %v466_v15  ;;  %v323_v16 = vpack.c.bf16 %v2889_v1, %v2889_v1 }
 0x1bd   : > { %v464_v19 = vsub.f32 %v2891_v2, %v460_v17  ;;  %v465_v20 = vsub.f32 %v2895_v4, %v460_v17 }
 0x1be   : > { %471 = vadd.xlane.f32.xlu0 %v470_v18  ;;  %2083 = vmatprep.subr.msk.bf16.mxu0 %vm345_vm1, %v323_v16 }
 0x1bf   : > { %v468_v21 = vmul.f32 %v464_v19, %v464_v19  ;;  %v469_v22 = vmul.f32 %v465_v20, %v465_v20 }
 0x1c1   : > { %v473_v23 = vadd.f32 %v469_v22, %v468_v21  ;;  %v322_v21 = vpack.c.bf16 %v2887_v0, %v2887_v0 }
 0x1c3   : > { %474 = vadd.xlane.f32.xlu1 %v473_v23  ;;  %v347_v1 = vsel %vm345_vm1, %v322_v21, 0  ;;  %v325_v23 = vpack.c.bf16 %v2895_v4, %v2895_v4  ;;  %v3003_v4 = vld [vmem:[#allocation5 + $0x8] sm:$0xff] }
 0x1c4   : > { %359 = vmatpush1.bf16.msra.mxu0 %v347_v1 }
 0x1c5   : > { %2085 = vmatprep.subr.msk.bf16.mxu1 %vm345_vm1, %v325_v23 }
 0x1d4   : > { %481 = vperm.xlu0 %2289, %v2910_v24  }
 0x1d8   : > { %2291 = vset.pattern.permute.xlu0 %v3916_v11 }
 0x24b   : > { %v472_v25 = vpop.xlane.xlu0 %471 }
 0x250   : > { %v475_v26 = vpop.xlane.xlu1 %474 }
 0x251   : > { %v476_v27 = vsel %vm450_vm0, %v472_v25, %v475_v26  ;;  %v324_v25 = vpack.c.bf16 %v2891_v2, %v2891_v2  ;;  %v2606_v2 = vmov 4  }
 0x252   : > { %v477_v28 = vmul.f32 0.00390625, %v476_v27  ;;  %v2313_v27 = vld [vmem:[#allocation8 + $0xc] ss:$16 sps:$4 sm:$0xff]  }
 0x253   : > { %v482_v30 = vpop.permute.xlu0 %481  ;;  %v353_v0 = vsel %vm345_vm1, %v324_v25, 0  ;;  %2084 = vmatmul.mubr.msk.bf16.vlgmr.msra.gmra.mrb[0].mxu0 %vm341_vm2, %v2313_v27 }
 0x254   : > { %v478_v29 = vadd.f32 1e-05, %v477_v28  ;;  %402 = vmatpush1.bf16.msra.mxu1 %v353_v0  ;;  %889 = vmatprep.mubr.bf16.mxu0 %v3918_v6  ;;  %v550_v28 = vlaneseq }
 0x256   : > { %2319 = vrsqrt.f32 %v478_v29  ;;  %v3009_v29 = vshrl.u32 %v550_v28, 7 }
 0x257   : > { %2086 = vmatmul.mubr.msk.bf16.vlgmr.msra.gmra.mrb[0].mxu1 %vm341_vm2, %v2313_v27 }
 0x258   : > { %932 = vmatprep.mubr.bf16.mxu1 %v3918_v6 }
 0x260   : > { %v2320_v31 = vpop.eup %2319 }
 0x261   : > { %v484_v32 = vmul.f32 %v2320_v31, %v482_v30 }
 0x263   : > { %491 = vperm.xlu0 %2291, %v484_v32   ;;  %487 = vperm.xlu1 %2290, %v484_v32   ;;  %v3011_v32 = vand.u32 127, %v550_v28 }
 0x265   : > { %vm552_vm3 = vcmp.lt.s32.totalorder %v3011_v32, 17  ;;  %vm585_vm4 = vcmp.lt.s32.totalorder %v3011_v32, 16  ;;  %vm618_vm5 = vcmp.lt.s32.totalorder %v3011_v32, 15  ;;  %vm651_vm6 = vcmp.lt.s32.totalorder %v3011_v32, 1 }
 0x266   : > { %vm684_vm7 = vcmp.lt.s32.totalorder %v3011_v32, 127  ;;  %vm717_vm8 = vcmp.lt.s32.totalorder %v3011_v32, 113  ;;  %vm750_vm9 = vcmp.lt.s32.totalorder %v3011_v32, 112  ;;  %vm783_vm10 = vcmp.lt.s32.totalorder %v3011_v32, 111 }
 0x267   : > { %2292 = vset.pattern.permute.xlu1 %v3916_v11  ;;  %2293 = vset.pattern.permute.xlu0 %v2606_v2 }
 0x268   : > { %499 = vperm.xlu1 %2292, %v2910_v24  }
 0x26c   : > { %2294 = vset.pattern.permute.xlu1 %v2606_v2 }
 0x2e2   : > { %v488_v33 = vpop.permute.xlu1 %487  ;;  %v492_v34 = vpop.permute.xlu0 %491 }
 0x2e3   : > { %v496_v35 = vmul.f32 %v492_v34, %v464_v19  ;;  %v497_v36 = vmul.f32 %v492_v34, %v465_v20  ;;  %v494_v37 = vmul.f32 %v488_v33, %v462_v13  ;;  %v495_v38 = vmul.f32 %v488_v33, %v463_v14 }
 0x2e4   : > { %v559_v33 = vsub.s32 0, %v3009_v29  ;;  %v592_v34 = vsub.s32 1, %v3009_v29 }
 0x2e7   : > { %v500_v39 = vpop.permute.xlu1 %499 }
 0x2e8   : > { %v502_v40 = vadd.f32 %v500_v39, %v494_v37  ;;  %v503_v41 = vadd.f32 %v500_v39, %v495_v38  ;;  %v504_v42 = vadd.f32 %v500_v39, %v496_v35  ;;  %v505_v43 = vadd.f32 %v500_v39, %v497_v36  ;;  %v3015_v35 = vld [vmem:[#allocation10 + $0x8] sm:$0xff]  ;;  %v3018_v38 = vld [vmem:[#allocation10] sm:$0xff]  ;;  %v3020_v39 = vld [vmem:[#allocation10 + $0x10] sm:$0xff] }
 0x2ea   : > { %v506_v44 = vmul.f32 %v502_v40, %v502_v40  ;;  %v507_v45 = vmul.f32 %v503_v41, %v503_v41  ;;  %v508_v46 = vmul.f32 %v504_v42, %v504_v42  ;;  %v509_v47 = vmul.f32 %v505_v43, %v505_v43 }
 0x2ec   : > { %v510_v48 = vmul.f32 %v506_v44, %v502_v40  ;;  %v511_v49 = vmul.f32 %v507_v45, %v503_v41  ;;  %v512_v50 = vmul.f32 %v508_v46, %v504_v42  ;;  %v513_v51 = vmul.f32 %v509_v47, %v505_v43 }
 0x2ed   : > { %v3034_v45 = vrot.slane %v3018_v38, %v559_v33  ;;  %v3037_v46 = vrot.slane %v3020_v39, %v559_v33 }
 0x2ee   : > { %v514_v52 = vmul.f32 0.044715, %v510_v48  ;;  %v515_v53 = vmul.f32 0.044715, %v511_v49  ;;  %v516_v54 = vmul.f32 0.044715, %v512_v50  ;;  %v3045_v50 = vrot.slane %v3018_v38, %v592_v34 }
 0x2ef   : > { %v517_v55 = vmul.f32 0.044715, %v513_v51  ;;  %v3048_v51 = vrot.slane %v3020_v39, %v592_v34 }
 0x2f0   : > { %v518_v56 = vadd.f32 %v514_v52, %v502_v40  ;;  %v519_v57 = vadd.f32 %v515_v53, %v503_v41  ;;  %v520_v58 = vadd.f32 %v516_v54, %v504_v42 }
 0x2f1   : > { %v521_v59 = vadd.f32 %v517_v55, %v505_v43 }
 0x2f2   : > { %v522_v60 = vmul.f32 0.7978846, %v518_v56  ;;  %v523_v61 = vmul.f32 0.7978846, %v519_v57  ;;  %v524_v62 = vmul.f32 0.7978846, %v520_v58 }
 0x2f3   : > { %v525_v63 = vmul.f32 0.7978846, %v521_v59 }
 0x2f4   : > { %2321 = vtanh.f32 %v522_v60 }
 0x2f5   : > { %2323 = vtanh.f32 %v523_v61 }
 0x2f6   : > { %2325 = vtanh.f32 %v524_v62 }
 0x2f7   : > { %2327 = vtanh.f32 %v525_v63 }
 0x2fe   : > { %v2322_v3 = vpop.eup %2321 }
 0x2ff   : > { %v2324_v5 = vpop.eup %2323  ;;  %v530_v7 = vadd.f32 1.0, %v2322_v3 }
 0x300   : > { %v2326_v8 = vpop.eup %2325  ;;  %v531_v9 = vadd.f32 1.0, %v2324_v5 }
 0x301   : > { %v2328_v10 = vpop.eup %2327  ;;  %v532_v12 = vadd.f32 1.0, %v2326_v8  ;;  %v534_v13 = vmul.f32 0.5, %v530_v7 }
 0x302   : > { %v533_v14 = vadd.f32 1.0, %v2328_v10  ;;  %v535_v15 = vmul.f32 0.5, %v531_v9 }
 0x303   : > { %v536_v17 = vmul.f32 0.5, %v532_v12  ;;  %v2919_v18 = vmul.f32 %v534_v13, %v502_v40  ;;  %v3023_v40 = vrot.slane %v3015_v35, %v559_v33 }
 0x304   : > { %v537_v19 = vmul.f32 0.5, %v533_v14  ;;  %v2921_v20 = vmul.f32 %v535_v15, %v503_v41  ;;  %v3025_v41 = vld [vmem:[#allocation10 + $0x18] sm:$0xff] }
 0x305   : > { %542 = vrot.lane.b32.xlu0 %v2919_v18, %s2598_s25  ;;  %v2931_v22 = vmul.f32 %v536_v17, %v504_v42  ;;  %v3029_v42 = vrot.slane %v3015_v35, %v592_v34  ;;  %v3040_v48 = vrot.slane %v3025_v41, %v559_v33  ;;  %v3055_v55 = vrot.slane %v3025_v41, %v592_v34 }
 0x306   : > { %544 = vrot.lane.b32.xlu1 %v2921_v20, %s2598_s25  ;;  %v2937_v26 = vmul.f32 %v537_v19, %v505_v43  ;;  %v625_v17 = vsub.s32 2, %v3009_v29  ;;  %v658_v19 = vsub.s32 3, %v3009_v29 }
 0x308   : > { %v3077_v23 = vrot.slane %v3015_v35, %v625_v17  ;;  %v3081_v25 = vrot.slane %v3015_v35, %v658_v19  ;;  %v3086_v2 = vrot.slane %v3018_v38, %v625_v17  ;;  %v3089_v28 = vrot.slane %v3020_v39, %v625_v17 }
 0x309   : > { %546 = vrot.lane.b32.xlu0 %v2931_v22, %s2598_s25  ;;  %v3097_v34 = vrot.slane %v3018_v38, %v658_v19 }
 0x30a   : > { %548 = vrot.lane.b32.xlu1 %v2937_v26, %s2598_s25 }
 0x30d   : > { %577 = vrot.lane.b32.xlu0 %v2919_v18, %s2599_s13 }
 0x30e   : > { %579 = vrot.lane.b32.xlu1 %v2921_v20, %s2599_s13 }
 0x311   : > { %581 = vrot.lane.b32.xlu0 %v2931_v22, %s2599_s13 }
 0x312   : > { %583 = vrot.lane.b32.xlu1 %v2937_v26, %s2599_s13 }
 0x315   : > { %610 = vrot.lane.b32.xlu0 %v2919_v18, %s2600_s30 }
 0x316   : > { %612 = vrot.lane.b32.xlu1 %v2921_v20, %s2600_s30 }
 0x319   : > { %614 = vrot.lane.b32.xlu0 %v2931_v22, %s2600_s30 }
 0x31a   : > { %616 = vrot.lane.b32.xlu1 %v2937_v26, %s2600_s30 }
 0x31d   : > { %643 = vrot.lane.b32.xlu0 %v2919_v18, %s2601_s11 }
 0x31e   : > { %645 = vrot.lane.b32.xlu1 %v2921_v20, %s2601_s11 }
 0x321   : > { %647 = vrot.lane.b32.xlu0 %v2931_v22, %s2601_s11 }
 0x322   : > { %649 = vrot.lane.b32.xlu1 %v2937_v26, %s2601_s11 }
 0x325   : > { %676 = vrot.lane.b32.xlu0 %v2919_v18, %s2602_s16 }
 0x326   : > { %678 = vrot.lane.b32.xlu1 %v2921_v20, %s2602_s16 }
 0x329   : > { %680 = vrot.lane.b32.xlu0 %v2931_v22, %s2602_s16 }
 0x32a   : > { %682 = vrot.lane.b32.xlu1 %v2937_v26, %s2602_s16 }
 0x32d   : > { %709 = vrot.lane.b32.xlu0 %v2919_v18, %s2603_s8 }
 0x32e   : > { %711 = vrot.lane.b32.xlu1 %v2921_v20, %s2603_s8 }
 0x331   : > { %713 = vrot.lane.b32.xlu0 %v2931_v22, %s2603_s8 }
 0x332   : > { %715 = vrot.lane.b32.xlu1 %v2937_v26, %s2603_s8 }
 0x335   : > { %742 = vrot.lane.b32.xlu0 %v2919_v18, %s2604_s28 }
 0x336   : > { %744 = vrot.lane.b32.xlu1 %v2921_v20, %s2604_s28 }
 0x339   : > { %746 = vrot.lane.b32.xlu0 %v2931_v22, %s2604_s28 }
 0x33a   : > { %748 = vrot.lane.b32.xlu1 %v2937_v26, %s2604_s28 }
 0x33d   : > { %775 = vrot.lane.b32.xlu0 %v2919_v18, %s2605_s29 }
 0x33e   : > { %777 = vrot.lane.b32.xlu1 %v2921_v20, %s2605_s29 }
 0x341   : > { %779 = vrot.lane.b32.xlu0 %v2931_v22, %s2605_s29 }
 0x342   : > { %781 = vrot.lane.b32.xlu1 %v2937_v26, %s2605_s29 }
 0x345   : > { %829 = vperm.xlu0 %2293, %v2910_v24  }
 0x346   : > { %833 = vperm.xlu1 %2294, %v3003_v4  }
 0x349   : > { %2295 = vset.pattern.permute.xlu0 %v3918_v6 }
 0x34a   : > { %2296 = vset.pattern.permute.xlu1 %v3918_v6 }
 0x377   : > { %v543_v30 = vpop.permute.xlu0 %542 }
 0x378   : > { %v545_v31 = vpop.permute.xlu1 %544 }
 0x379   : > { %v555_v43 = vsel %vm552_vm3, %v543_v30, %v545_v31 }
 0x37a   : > { %v574_v52 = vmul.f32 %v3023_v40, %v555_v43 }
 0x37b   : > { %v547_v36 = vpop.permute.xlu0 %546 }
 0x37c   : > { %v549_v37 = vpop.permute.xlu1 %548  ;;  %v554_v53 = vsel %vm552_vm3, %v545_v31, %v547_v36  ;;  %v3092_v31 = vrot.slane %v3025_v41, %v625_v17 }
 0x37d   : > { %v556_v56 = vsel %vm552_vm3, %v549_v37, %v543_v30  ;;  %v553_v57 = vsel %vm552_vm3, %v547_v36, %v549_v37  ;;  %v575_v62 = vmul.f32 %v3037_v46, %v554_v53  ;;  %v3100_v36 = vrot.slane %v3020_v39, %v658_v19 }
 0x37e   : > { %v573_v7 = vmul.f32 %v3034_v45, %v556_v56  ;;  %v576_v8 = vmul.f32 %v3040_v48, %v553_v57 }
 0x37f   : > { %v578_v44 = vpop.permute.xlu0 %577 }
 0x380   : > { %v580_v47 = vpop.permute.xlu1 %579 }
 0x381   : > { %v588_v49 = vsel %vm585_vm4, %v578_v44, %v580_v47 }
 0x382   : > { %v607_v54 = vmul.f32 %v3029_v42, %v588_v49 }
 0x383   : > { %v582_v58 = vpop.permute.xlu0 %581 }
 0x384   : > { %v584_v59 = vpop.permute.xlu1 %583  ;;  %v587_v60 = vsel %vm585_vm4, %v580_v47, %v582_v58  ;;  %v809_v61 = vpack.c.bf16 %v607_v54, %v574_v52  ;;  %v3107_v47 = vrot.slane %v3025_v41, %v658_v19 }
 0x385   : > { %v589_v63 = vsel %vm585_vm4, %v584_v59, %v578_v44  ;;  %v586_v3 = vsel %vm585_vm4, %v582_v58, %v584_v59  ;;  %v608_v5 = vmul.f32 %v3048_v51, %v587_v60  ;;  %v691_v58 = vsub.s32 5, %v3009_v29 }
 0x386   : > { %v606_v9 = vmul.f32 %v3045_v50, %v589_v63  ;;  %v609_v10 = vmul.f32 %v3055_v55, %v586_v3  ;;  %857 = vmatprep.subr.bf16.mxu0 %v809_v61 }
 0x387   : > { %v810_v12 = vpack.c.bf16 %v608_v5, %v575_v62  ;;  %v611_v13 = vpop.permute.xlu0 %610  ;;  %v3136_v17 = vrot.slane %v3025_v41, %v691_v58  ;;  %v3139_v19 = vrot.slane %v3020_v39, %v691_v58 }
 0x388   : > { %v808_v14 = vpack.c.bf16 %v606_v9, %v573_v7  ;;  %v613_v15 = vpop.permute.xlu1 %612  ;;  %v811_v16 = vpack.c.bf16 %v609_v10, %v576_v8 }
 0x389   : > { %v621_v0 = vsel %vm618_vm5, %v611_v13, %v613_v15 }
 0x38a   : > { %858 = vmatpush1.bf16.msra.mxu0 %v808_v14  ;;  %900 = vmatprep.subr.bf16.mxu1 %v811_v16  ;;  %v640_v37 = vmul.f32 %v3077_v23, %v621_v0  ;;  %v3133_v16 = vrot.slane %v3015_v35, %v691_v58 }
 0x38b   : > { %901 = vmatpush1.bf16.msra.mxu1 %v810_v12  ;;  %v615_v21 = vpop.permute.xlu0 %614 }
 0x38c   : > { %v617_v1 = vpop.permute.xlu1 %616  ;;  %v620_v43 = vsel %vm618_vm5, %v613_v15, %v615_v21 }
 0x38d   : > { %v622_v49 = vsel %vm618_vm5, %v617_v1, %v611_v13  ;;  %v619_v52 = vsel %vm618_vm5, %v615_v21, %v617_v1  ;;  %v641_v59 = vmul.f32 %v3089_v28, %v620_v43  ;;  %v3128_v13 = vrot.slane %v3018_v38, %v691_v58 }
 0x38e   : > { %v639_v63 = vmul.f32 %v3086_v2, %v622_v49  ;;  %v642_v3 = vmul.f32 %v3092_v31, %v619_v52 }
 0x38f   : > { %v644_v27 = vpop.permute.xlu0 %643 }
 0x390   : > { %v646_v30 = vpop.permute.xlu1 %645 }
 0x391   : > { %v654_v33 = vsel %vm651_vm6, %v644_v27, %v646_v30 }
 0x392   : > { %v673_v44 = vmul.f32 %v3081_v25, %v654_v33 }
 0x393   : > { %v648_v53 = vpop.permute.xlu0 %647 }
 0x394   : > { %v650_v54 = vpop.permute.xlu1 %649  ;;  %v653_v56 = vsel %vm651_vm6, %v646_v30, %v648_v53  ;;  %v813_v57 = vpack.c.bf16 %v673_v44, %v640_v37 }
 0x395   : > { %v655_v60 = vsel %vm651_vm6, %v650_v54, %v644_v27  ;;  %v652_v61 = vsel %vm651_vm6, %v648_v53, %v650_v54  ;;  %v674_v62 = vmul.f32 %v3100_v36, %v653_v56 }
 0x396   : > { %v672_v5 = vmul.f32 %v3097_v34, %v655_v60  ;;  %v675_v7 = vmul.f32 %v3107_v47, %v652_v61  ;;  %859 = vmatprep.subr.bf16.mxu0 %v813_v57  ;;  %v757_v61 = vsub.s32 7, %v3009_v29 }
 0x397   : > { %v814_v8 = vpack.c.bf16 %v674_v62, %v641_v59  ;;  %v677_v9 = vpop.permute.xlu0 %676  ;;  %v724_v59 = vsub.s32 6, %v3009_v29 }
 0x398   : > { %v812_v10 = vpack.c.bf16 %v672_v5, %v639_v63  ;;  %v679_v12 = vpop.permute.xlu1 %678  ;;  %v815_v14 = vpack.c.bf16 %v675_v7, %v642_v3  ;;  %v3166_v62 = vrot.slane %v3018_v38, %v757_v61  ;;  %v3176_v5 = vrot.slane %v3015_v35, %v757_v61 }
 0x399   : > { %v687_v15 = vsel %vm684_vm7, %v677_v9, %v679_v12  ;;  %v3171_v29 = vrot.slane %v3015_v35, %v724_v59  ;;  %v3179_v7 = vrot.slane %v3020_v39, %v724_v59 }
 0x39a   : > { %860 = vmatpush1.bf16.msra.mxu0 %v812_v10  ;;  %902 = vmatprep.subr.bf16.mxu1 %v815_v14  ;;  %v705_v1 = vmul.f32 %v3128_v13, %v687_v15  ;;  %3940 = vst [vmem:[#allocation16_spill] sm:$0xff] %v3166_v62 }
 0x39b   : > { %903 = vmatpush1.bf16.msra.mxu1 %v814_v8  ;;  %v681_v21 = vpop.permute.xlu0 %680 }
 0x39c   : > { %v683_v0 = vpop.permute.xlu1 %682  ;;  %v686_v27 = vsel %vm684_vm7, %v679_v12, %v681_v21  ;;  %v816_v53 = vpack.c.bf16 %v705_v1, %v2919_v18 }
 0x39d   : > { %v688_v30 = vsel %vm684_vm7, %v683_v0, %v677_v9  ;;  %v685_v33 = vsel %vm684_vm7, %v681_v21, %v683_v0  ;;  %v706_v37 = vmul.f32 %v3133_v16, %v686_v27  ;;  %v3187_v9 = vrot.slane %v3020_v39, %v757_v61 }
 0x39e   : > { %v708_v43 = vmul.f32 %v3136_v17, %v688_v30  ;;  %v707_v44 = vmul.f32 %v3139_v19, %v685_v33 }
 0x39f   : > { %v710_v49 = vpop.permute.xlu0 %709  ;;  %v817_v52 = vpack.c.bf16 %v706_v37, %v2921_v20  ;;  %v3160_v20 = vrot.slane %v3018_v38, %v724_v59  ;;  %v3184_v38 = vrot.slane %v3025_v41, %v757_v61  ;;  %v2090_v61 = vld [vmem:[#allocation10 + $0x38] ss:$0 sm:$0xff] }
 0x3a0   : > { %v818_v54 = vpack.c.bf16 %v707_v44, %v2931_v22  ;;  %v712_v56 = vpop.permute.xlu1 %711  ;;  %v819_v57 = vpack.c.bf16 %v708_v43, %v2937_v26  ;;  %v3163_v22 = vrot.slane %v3025_v41, %v724_v59  ;;  %v2087_v44 = vld [vmem:[#allocation10 + $0x20] ss:$0 sm:$0xff] }
 0x3a1   : > { %861 = vmatprep.subr.bf16.mxu0 %v817_v52  ;;  %v720_v63 = vsel %vm717_vm8, %v710_v49, %v712_v56 }
 0x3a2   : > { %904 = vmatprep.subr.bf16.mxu1 %v819_v57  ;;  %862 = vmatpush1.bf16.msra.mxu0 %v816_v53  ;;  %v738_v14 = vmul.f32 %v3160_v20, %v720_v63 }
 0x3a3   : > { %905 = vmatpush1.bf16.msra.mxu1 %v818_v54  ;;  %v714_v58 = vpop.permute.xlu0 %713 }
 0x3a4   : > { %v716_v60 = vpop.permute.xlu1 %715  ;;  %v719_v8 = vsel %vm717_vm8, %v712_v56, %v714_v58 }
 0x3a5   : > { %v721_v10 = vsel %vm717_vm8, %v716_v60, %v710_v49  ;;  %v718_v12 = vsel %vm717_vm8, %v714_v58, %v716_v60  ;;  %v739_v39 = vmul.f32 %v3171_v29, %v719_v8  ;;  %v2088_v60 = vld [vmem:[#allocation10 + $0x28] ss:$0 sm:$0xff] }
 0x3a6   : > { %v741_v30 = vmul.f32 %v3163_v22, %v721_v10  ;;  %v740_v33 = vmul.f32 %v3179_v7, %v718_v12 }
 0x3a7   : > { %v743_v18 = vpop.permute.xlu0 %742 }
 0x3a8   : > { %v745_v26 = vpop.permute.xlu1 %744 }
 0x3a9   : > { %v753_v3 = vsel %vm750_vm9, %v743_v18, %v745_v26 }
 0x3aa   : > { %v771_v15 = vmul.f32 %v3166_v62, %v753_v3 }
 0x3ab   : > { %v747_v35 = vpop.permute.xlu0 %746 }
 0x3ac   : > { %v749_v21 = vpop.permute.xlu1 %748  ;;  %v752_v1 = vsel %vm750_vm9, %v745_v26, %v747_v35  ;;  %v820_v53 = vpack.c.bf16 %v771_v15, %v738_v14 }
 0x3ad   : > { %v754_v41 = vsel %vm750_vm9, %v749_v21, %v743_v18  ;;  %v751_v0 = vsel %vm750_vm9, %v747_v35, %v749_v21  ;;  %v772_v27 = vmul.f32 %v3176_v5, %v752_v1  ;;  %v2089_v18 = vld [vmem:[#allocation10 + $0x30] ss:$0 sm:$0xff] }
 0x3ae   : > { %v774_v37 = vmul.f32 %v3184_v38, %v754_v41  ;;  %v773_v43 = vmul.f32 %v3187_v9, %v751_v0  ;;  %v2315_v0 = vld [vmem:[#allocation8] ss:$16 sps:$4 sm:$0xff]  }
 0x3af   : > { %v776_v49 = vpop.permute.xlu0 %775  ;;  %v821_v52 = vpack.c.bf16 %v772_v27, %v739_v39 }
 0x3b0   : > { %v822_v54 = vpack.c.bf16 %v773_v43, %v740_v33  ;;  %v778_v56 = vpop.permute.xlu1 %777  ;;  %v823_v57 = vpack.c.bf16 %v774_v37, %v741_v30  ;;  %v3220_v30 = vpop.f32.mrb[0].mxu0 }
 0x3b1   : > { %v786_v58 = vsel %vm783_vm10, %v776_v49, %v778_v56  ;;  %863 = vmatprep.subr.bf16.mxu0 %v821_v52  ;;  %3941 = vst [vmem:[#allocation17_spill] sm:$0xff] %v3220_v30  ;;  %v3222_v33 = vpop.f32.mrb[0].mxu1  ;;  %v3224_v37 = vpop.f32.mrb[1].mxu0 }
 0x3b2   : > { %v804_v59 = vmul.f32 %v2087_v44, %v786_v58  ;;  %906 = vmatprep.subr.bf16.mxu1 %v823_v57  ;;  %864 = vmatpush1.bf16.msra.mxu0 %v820_v53  ;;  %3942 = vst [vmem:[#allocation18_spill] sm:$0xff] %v3222_v33  ;;  %3943 = vst [vmem:[#allocation19_spill] sm:$0xff] %v3224_v37  ;;  %v3226_v43 = vpop.f32.mrb[1].mxu1  ;;  %v3228_v44 = vpop.f32.mrb[2].mxu0 }
 0x3b3   : > { %907 = vmatpush1.bf16.msra.mxu1 %v822_v54  ;;  %v780_v26 = vpop.permute.xlu0 %779  ;;  %3944 = vst [vmem:[#allocation20_spill] sm:$0xff] %v3226_v43  ;;  %3945 = vst [vmem:[#allocation21_spill] sm:$0xff] %v3228_v44  ;;  %v3232_v52 = vpop.f32.mrb[3].mxu0 }
 0x3b4   : > { %v782_v63 = vpop.permute.xlu1 %781  ;;  %v785_v3 = vsel %vm783_vm10, %v778_v56, %v780_v26  ;;  %v824_v8 = vpack.c.bf16 %v804_v59, %v804_v59  ;;  %3947 = vst [vmem:[#allocation23_spill] sm:$0xff] %v3232_v52 }
 0x3b5   : > { %v787_v10 = vsel %vm783_vm10, %v782_v63, %v776_v49  ;;  %v784_v12 = vsel %vm783_vm10, %v780_v26, %v782_v63  ;;  %v805_v35 = vmul.f32 %v2088_v60, %v785_v3  ;;  %v3230_v49 = vpop.f32.mrb[2].mxu1 }
 0x3b6   : > { %v807_v14 = vmul.f32 %v2090_v61, %v787_v10  ;;  %v806_v15 = vmul.f32 %v2089_v18, %v784_v12  ;;  %v846_v41 = vsel %vm345_vm1, %v824_v8, 0  ;;  %3946 = vst [vmem:[#allocation22_spill] sm:$0xff] %v3230_v49  ;;  %v3234_v53 = vpop.f32.mrb[3].mxu1 }
 0x3b7   : > { %v825_v21 = vpack.c.bf16 %v805_v35, %v805_v35  ;;  %3948 = vst [vmem:[#allocation24_spill] sm:$0xff] %v3234_v53 }
 0x3b8   : > { %v827_v1 = vpack.c.bf16 %v807_v14, %v807_v14  ;;  %v826_v39 = vpack.c.bf16 %v806_v15, %v806_v15 }
 0x3b9   : > { %2092 = vmatprep.subr.msk.bf16.mxu0 %vm345_vm1, %v825_v21 }
 0x3ba   : > { %2094 = vmatprep.subr.msk.bf16.mxu1 %vm345_vm1, %v827_v1  ;;  %866 = vmatpush1.bf16.msra.mxu0 %v846_v41  ;;  %v852_v27 = vsel %vm345_vm1, %v826_v39, 0 }
 0x3bb   : > { %909 = vmatpush1.bf16.msra.mxu1 %v852_v27  ;;  %v309_v27 = vld [vmem:[#allocation7 + $0x8] sm:$0xff] }
 0x3bd   : > { %2093 = vmatmul.mubr.msk.bf16.vlgmr.msra.gmra.mrb[4].mxu0 %vm841_vm11, %v2315_v0 }
 0x3be   : > { %2095 = vmatmul.mubr.msk.bf16.vlgmr.msra.gmra.mrb[4].mxu1 %vm841_vm11, %v2315_v0 }
 0x3c4   : > { %v830_v54 = vpop.permute.xlu0 %829 }
 0x3c5   : > { %v834_v57 = vpop.permute.xlu1 %833 }
 0x490   : > { %v891_v56 = vpop.f32.mrb[4].mxu0 }
 0x491   : > { %v934_v58 = vpop.f32.mrb[4].mxu1  ;;  %v892_v59 = vadd.f32 %v891_v56, %v830_v54  ;;  %v893_v60 = vpop.f32.mrb[5].mxu0  ;;  %v308_v56 = vld [vmem:[#allocation7] sm:$0xff] }
 0x492   : > { %v894_v61 = vadd.f32 %v893_v60, %v830_v54  ;;  %v936_v18 = vpop.f32.mrb[5].mxu1  ;;  %v895_v26 = vpop.f32.mrb[6].mxu0  ;;  %v935_v63 = vadd.f32 %v934_v58, %v830_v54 }
 0x493   : > { %v937_v3 = vadd.f32 %v936_v18, %v830_v54  ;;  %v938_v8 = vpop.f32.mrb[6].mxu1  ;;  %v897_v10 = vpop.f32.mrb[7].mxu0  ;;  %v896_v15 = vadd.f32 %v895_v26, %v834_v57 }
 0x494   : > { %v939_v12 = vadd.f32 %v938_v8, %v834_v57  ;;  %v940_v35 = vpop.f32.mrb[7].mxu1  ;;  %v943_v14 = vadd.f32 %v894_v61, %v892_v59  ;;  %v898_v21 = vadd.f32 %v897_v10, %v834_v57 }
 0x495   : > { %v941_v1 = vadd.f32 %v940_v35, %v834_v57  ;;  %v949_v39 = vadd.f32 %v937_v3, %v935_v63 }
 0x496   : > { %944 = vadd.xlane.f32.xlu1 %v943_v14  ;;  %v946_v0 = vadd.f32 %v898_v21, %v896_v15 }
 0x497   : > { %950 = vadd.xlane.f32.xlu0 %v949_v39  ;;  %v952_v41 = vadd.f32 %v941_v1, %v939_v12 }
 0x49a   : > { %953 = vadd.xlane.f32.xlu1 %v952_v41 }
 0x49b   : > { %947 = vadd.xlane.f32.xlu0 %v946_v0 }
 0x4ab   : > { %961 = vrot.lane.b32.xlu1 %v309_v27, %s2607_s14 }
 0x4b1   : > { %959 = vrot.lane.b32.xlu0 %v308_v56, %s2607_s14 }
 0x523   : > { %v945_v54 = vpop.xlane.xlu1 %944 }
 0x524   : > { %v951_v58 = vpop.xlane.xlu0 %950 }
 0x525   : > { %v955_v26 = vsel %vm450_vm0, %v945_v54, %v951_v58 }
 0x527   : > { %v954_v60 = vpop.xlane.xlu1 %953 }
 0x528   : > { %v948_v18 = vpop.xlane.xlu0 %947 }
 0x529   : > { %v956_v57 = vsel %vm450_vm0, %v948_v18, %v954_v60 }
 0x52a   : > { %v2157_v8 = vpack.c.bf16 %v956_v57, %v955_v26 }
 0x52b   : > { %v962_v35 = vpop.permute.xlu1 %961 }
 0x52c   : > { %2158 = vmatprep.subr.bf16.mxu0 %v2157_v8  ;;  %v960_v10 = vpop.permute.xlu0 %959 }
 0x52d   : > { %2160 = vmatpush3.bf16.msra.mxu0 %v2157_v8  ;;  %2135 = vmatprep.mubr.msk.f32.mxu0 %vm963_vm12, %v960_v10 }
 0x52e   : > { %2142 = vmatprep.mubr.msk.f32.mxu1 %vm963_vm12, %v960_v10 }
 0x530   : > { %2136 = vmatmul.mubr.msk.f32.vlgmr.msra.gmra.mrb[8].mxu0 %vm963_vm12, %v962_v35 }
 0x603   : > { %v2137_v14 = vpop.f32.mrb[8].mxu0 }
 0x604   : > { %1050 = vperm.xlu0 %2295, %v2137_v14   ;;  %v1034_v39 = vpop.f32.mrb[9].mxu0 }
 0x605   : > { %1045 = vperm.xlu1 %2296, %v1034_v39  }
 0x609   : > { %2297 = vset.pattern.permute.xlu1 %v3916_v11 }
 0x60a   : > { %1054 = vperm.xlu1 %2297, %v1034_v39  }
 0x60e   : > { %1058 = vperm.xlu1 %2297, %v2137_v14  }
 0x683   : > { %v1051_v41 = vpop.permute.xlu0 %1050 }
 0x684   : > { %v3242_v0 = vsub.f32 %v896_v15, %v1051_v41  ;;  %v3244_v27 = vsub.f32 %v898_v21, %v1051_v41  ;;  %v1046_v56 = vpop.permute.xlu1 %1045 }
 0x685   : > { %v3246_v54 = vsub.f32 %v892_v59, %v1046_v56  ;;  %v3248_v58 = vsub.f32 %v894_v61, %v1046_v56 }
 0x686   : > { %v1073_v60 = vmul.f32 %v3242_v0, %v3242_v0  ;;  %v1074_v18 = vmul.f32 %v3244_v27, %v3244_v27 }
 0x687   : > { %v1069_v26 = vmul.f32 %v3246_v54, %v3246_v54  ;;  %v1070_v15 = vmul.f32 %v3248_v58, %v3248_v58 }
 0x688   : > { %v1080_v57 = vadd.f32 %v1074_v18, %v1073_v60 }
 0x689   : > { %v1055_v21 = vpop.permute.xlu1 %1054  ;;  %v1077_v8 = vadd.f32 %v1070_v15, %v1069_v26 }
 0x68a   : > { %v3258_v10 = vsub.f32 %v935_v63, %v1055_v21  ;;  %v3260_v59 = vsub.f32 %v937_v3, %v1055_v21  ;;  %1081 = vadd.xlane.f32.xlu1 %v1080_v57  ;;  %v2608_v63 = vmov 2  }
 0x68b   : > { %1078 = vadd.xlane.f32.xlu0 %v1077_v8  ;;  %2298 = vset.pattern.permute.xlu1 %v2608_v63  ;;  %v2609_v8 = vmov 3  }
 0x68c   : > { %v1071_v61 = vmul.f32 %v3258_v10, %v3258_v10  ;;  %v1072_v14 = vmul.f32 %v3260_v59, %v3260_v59  ;;  %2299 = vset.pattern.permute.xlu0 %v2608_v63 }
 0x68d   : > { %v1059_v39 = vpop.permute.xlu1 %1058 }
 0x68e   : > { %v1067_v41 = vsub.f32 %v939_v12, %v1059_v39  ;;  %v1068_v56 = vsub.f32 %v941_v1, %v1059_v39  ;;  %v1083_v11 = vadd.f32 %v1072_v14, %v1071_v61 }
 0x690   : > { %1084 = vadd.xlane.f32.xlu0 %v1083_v11  ;;  %v1075_v60 = vmul.f32 %v1067_v41, %v1067_v41  ;;  %v1076_v18 = vmul.f32 %v1068_v56, %v1068_v56 }
 0x692   : > { %v1086_v26 = vadd.f32 %v1076_v18, %v1075_v60 }
 0x694   : > { %1087 = vadd.xlane.f32.xlu0 %v1086_v26 }
 0x69b   : > { %1169 = vperm.xlu1 %2298, %v2910_v24  }
 0x69f   : > { %2300 = vset.pattern.permute.xlu1 %v2609_v8 }
 0x6a0   : > { %1205 = vperm.xlu1 %2300, %v2910_v24  }
 0x6a4   : > { %1209 = vperm.xlu1 %2300, %v3003_v4  }
 0x6a8   : > { %2301 = vset.pattern.permute.xlu1 %v3918_v6 }
 0x6aa   : > { %1173 = vperm.xlu0 %2299, %v3003_v4  }
 0x717   : > { %v1082_v57 = vpop.xlane.xlu1 %1081 }
 0x718   : > { %v1079_v3 = vpop.xlane.xlu0 %1078 }
 0x71d   : > { %v1085_v15 = vpop.xlane.xlu0 %1084 }
 0x71e   : > { %v1089_v12 = vsel %vm450_vm0, %v1079_v3, %v1085_v15  ;;  %v3949_v3 = vmov 1   ;;  %v1170_v15 = vpop.permute.xlu1 %1169 }
 0x721   : > { %v1088_v21 = vpop.xlane.xlu0 %1087 }
 0x722   : > { %v1090_v1 = vsel %vm450_vm0, %v1082_v57, %v1088_v21  ;;  %v1206_v4 = vpop.permute.xlu1 %1205 }
 0x723   : > { %v2161_v11 = vpack.c.bf16 %v1090_v1, %v1089_v12 }
 0x725   : > { %2162 = vmatprep.subr.bf16.mxu1 %v2161_v11 }
 0x726   : > { %2164 = vmatpush3.bf16.msra.mxu1 %v2161_v11  ;;  %v1210_v57 = vpop.permute.xlu1 %1209 }
 0x729   : > { %2143 = vmatmul.mubr.msk.f32.vlgmr.msra.gmra.mrb[8].mxu1 %vm963_vm12, %v962_v35  ;;  %v1174_v18 = vpop.permute.xlu0 %1173 }
 0x7fc   : > { %v2144_v61 = vpop.f32.mrb[8].mxu1 }
 0x7fd   : > { %v1163_v14 = vadd.f32 1e-05, %v2144_v61  ;;  %v1157_v39 = vpop.f32.mrb[9].mxu1 }
 0x7fe   : > { %v1158_v60 = vadd.f32 1e-05, %v1157_v39 }
 0x7ff   : > { %2329 = vrsqrt.f32 %v1163_v14 }
 0x800   : > { %2331 = vrsqrt.f32 %v1158_v60 }
 0x809   : > { %v2330_v26 = vpop.eup %2329 }
 0x80a   : > { %v1177_v63 = vmul.f32 %v2330_v26, %v1174_v18  ;;  %v2332_v35 = vpop.eup %2331 }
 0x80b   : > { %v1176_v24 = vmul.f32 %v2332_v35, %v1170_v15 }
 0x80c   : > { %1185 = vperm.xlu1 %2301, %v1177_v63  }
 0x810   : > { %2302 = vset.pattern.permute.xlu1 %v3949_v3 }
 0x811   : > { %1193 = vperm.xlu1 %2302, %v1177_v63  }
 0x815   : > { %2303 = vset.pattern.permute.xlu1 %v3918_v6 }
 0x816   : > { %1180 = vperm.xlu1 %2303, %v1176_v24  }
 0x81a   : > { %2304 = vset.pattern.permute.xlu1 %v3949_v3 }
 0x81b   : > { %1189 = vperm.xlu1 %2304, %v1176_v24  }
 0x88b   : > { %v1186_v21 = vpop.permute.xlu1 %1185 }
 0x88c   : > { %v1200_v12 = vmul.f32 %v1186_v21, %v3242_v0  ;;  %v1201_v1 = vmul.f32 %v1186_v21, %v3244_v27 }
 0x88e   : > { %v3279_v11 = vadd.f32 %v1210_v57, %v1200_v12  ;;  %v3281_v8 = vadd.f32 %v1210_v57, %v1201_v1 }
 0x890   : > { %v1224_v61 = vmul.f32 %v3279_v11, %v3279_v11  ;;  %v1225_v14 = vmul.f32 %v3281_v8, %v3281_v8  ;;  %v1194_v39 = vpop.permute.xlu1 %1193 }
 0x891   : > { %v1202_v60 = vmul.f32 %v1194_v39, %v1067_v41  ;;  %v1203_v18 = vmul.f32 %v1194_v39, %v1068_v56 }
 0x892   : > { %v1232_v26 = vmul.f32 %v1224_v61, %v3279_v11  ;;  %v1233_v63 = vmul.f32 %v1225_v14, %v3281_v8 }
 0x893   : > { %v3289_v0 = vadd.f32 %v1210_v57, %v1202_v60  ;;  %v3291_v27 = vadd.f32 %v1210_v57, %v1203_v18 }
 0x894   : > { %v1240_v35 = vmul.f32 0.044715, %v1232_v26  ;;  %v1241_v15 = vmul.f32 0.044715, %v1233_v63 }
 0x895   : > { %v1226_v24 = vmul.f32 %v3289_v0, %v3289_v0  ;;  %v1227_v21 = vmul.f32 %v3291_v27, %v3291_v27  ;;  %v1181_v12 = vpop.permute.xlu1 %1180 }
 0x896   : > { %v1248_v41 = vadd.f32 %v1240_v35, %v3279_v11  ;;  %v1249_v56 = vadd.f32 %v1241_v15, %v3281_v8  ;;  %v1196_v1 = vmul.f32 %v1181_v12, %v3246_v54  ;;  %v1197_v61 = vmul.f32 %v1181_v12, %v3248_v58 }
 0x897   : > { %v1234_v57 = vmul.f32 %v1226_v24, %v3289_v0  ;;  %v1235_v14 = vmul.f32 %v1227_v21, %v3291_v27 }
 0x898   : > { %v1256_v39 = vmul.f32 0.7978846, %v1248_v41  ;;  %v1257_v60 = vmul.f32 0.7978846, %v1249_v56  ;;  %v3303_v18 = vadd.f32 %v1206_v4, %v1196_v1  ;;  %v3305_v26 = vadd.f32 %v1206_v4, %v1197_v61 }
 0x899   : > { %v1242_v63 = vmul.f32 0.044715, %v1234_v57  ;;  %v1243_v6 = vmul.f32 0.044715, %v1235_v14 }
 0x89a   : > { %2333 = vtanh.f32 %v1256_v39  ;;  %v1220_v35 = vmul.f32 %v3303_v18, %v3303_v18  ;;  %v1221_v54 = vmul.f32 %v3305_v26, %v3305_v26  ;;  %v1190_v58 = vpop.permute.xlu1 %1189 }
 0x89b   : > { %2335 = vtanh.f32 %v1257_v60  ;;  %v1250_v15 = vadd.f32 %v1242_v63, %v3289_v0  ;;  %v1251_v24 = vadd.f32 %v1243_v6, %v3291_v27  ;;  %v1198_v21 = vmul.f32 %v1190_v58, %v3258_v10 }
 0x89c   : > { %v1228_v12 = vmul.f32 %v1220_v35, %v3303_v18  ;;  %v1229_v41 = vmul.f32 %v1221_v54, %v3305_v26  ;;  %v1199_v56 = vmul.f32 %v1190_v58, %v3260_v59 }
 0x89d   : > { %v1258_v1 = vmul.f32 0.7978846, %v1250_v15  ;;  %v1259_v61 = vmul.f32 0.7978846, %v1251_v24  ;;  %v1214_v57 = vadd.f32 %v1206_v4, %v1198_v21 }
 0x89e   : > { %v1237_v14 = vmul.f32 0.044715, %v1229_v41  ;;  %v1215_v39 = vadd.f32 %v1206_v4, %v1199_v56  ;;  %v1236_v53 = vmul.f32 0.044715, %v1228_v12 }
 0x89f   : > { %2337 = vtanh.f32 %v1258_v1  ;;  %v1222_v60 = vmul.f32 %v1214_v57, %v1214_v57 }
 0x8a0   : > { %2339 = vtanh.f32 %v1259_v61  ;;  %v1245_v63 = vadd.f32 %v1237_v14, %v3305_v26  ;;  %v1223_v6 = vmul.f32 %v1215_v39, %v1215_v39  ;;  %v1244_v35 = vadd.f32 %v1236_v53, %v3303_v18 }
 0x8a1   : > { %v1230_v49 = vmul.f32 %v1222_v60, %v1214_v57 }
 0x8a2   : > { %v1253_v10 = vmul.f32 0.7978846, %v1245_v63  ;;  %v1231_v37 = vmul.f32 %v1223_v6, %v1215_v39  ;;  %v1252_v41 = vmul.f32 0.7978846, %v1244_v35 }
 0x8a3   : > { %v1238_v54 = vmul.f32 0.044715, %v1230_v49 }
 0x8a4   : > { %v2334_v30 = vpop.eup %2333  ;;  %v1239_v59 = vmul.f32 0.044715, %v1231_v37  ;;  %2341 = vtanh.f32 %v1253_v10 }
 0x8a5   : > { %v2336_v58 = vpop.eup %2335  ;;  %v1272_v15 = vadd.f32 1.0, %v2334_v30  ;;  %v1246_v24 = vadd.f32 %v1238_v54, %v1214_v57 }
 0x8a6   : > { %v1273_v4 = vadd.f32 1.0, %v2336_v58  ;;  %v1247_v21 = vadd.f32 %v1239_v59, %v1215_v39 }
 0x8a7   : > { %v1280_v12 = vmul.f32 0.5, %v1272_v15  ;;  %v1254_v56 = vmul.f32 0.7978846, %v1246_v24 }
 0x8a8   : > { %v1255_v1 = vmul.f32 0.7978846, %v1247_v21  ;;  %v1281_v14 = vmul.f32 0.5, %v1273_v4 }
 0x8a9   : > { %v2338_v61 = vpop.eup %2337  ;;  %v3320_v60 = vmul.f32 %v1280_v12, %v3279_v11  ;;  %2343 = vtanh.f32 %v1254_v56 }
 0x8aa   : > { %v2340_v53 = vpop.eup %2339  ;;  %v1274_v49 = vadd.f32 1.0, %v2338_v61  ;;  %2345 = vtanh.f32 %v1255_v1  ;;  %v3325_v30 = vmul.f32 %v1281_v14, %v3281_v8  ;;  %v2317_v61 = vld [vmem:[#allocation8 + $0x8] ss:$16 sps:$4 sm:$0xff]  }
 0x8ab   : > { %2347 = vtanh.f32 %v1252_v41  ;;  %1294 = vrot.lane.b32.xlu1 %v3320_v60, %s2598_s25  ;;  %v1275_v37 = vadd.f32 1.0, %v2340_v53  ;;  %2102 = vmatprep.mubr.msk.bf16.mxu0 %vm963_vm12, %v2317_v61 }
 0x8ac   : > { %v1282_v63 = vmul.f32 0.5, %v1274_v49  ;;  %2103 = vmatprep.mubr.msk.bf16.mxu1 %vm963_vm12, %v2317_v61 }
 0x8ad   : > { %v1283_v11 = vmul.f32 0.5, %v1275_v37 }
 0x8ae   : > { %v2342_v6 = vpop.eup %2341  ;;  %v3330_v35 = vmul.f32 %v1282_v63, %v3289_v0  ;;  %v2610_v63 = vmov 5  }
 0x8af   : > { %1298 = vrot.lane.b32.xlu1 %v3325_v30, %s2598_s25  ;;  %v1269_v10 = vadd.f32 1.0, %v2342_v6  ;;  %v3338_v4 = vmul.f32 %v1283_v11, %v3291_v27  ;;  %2305 = vset.pattern.permute.xlu0 %v2610_v63 }
 0x8b0   : > { %2306 = vset.pattern.permute.xlu1 %v2610_v63 }
 0x8b1   : > { %v1277_v54 = vmul.f32 0.5, %v1269_v10 }
 0x8b3   : > { %v2344_v59 = vpop.eup %2343  ;;  %1302 = vrot.lane.b32.xlu1 %v3330_v35, %s2598_s25  ;;  %v3335_v8 = vmul.f32 %v1277_v54, %v3305_v26 }
 0x8b4   : > { %v2346_v58 = vpop.eup %2345  ;;  %v1270_v15 = vadd.f32 1.0, %v2344_v59  ;;  %v3486_v59 = vld [vmem:[#allocation5 + $0x8] sm:$0xff] }
 0x8b5   : > { %v2348_v24 = vpop.eup %2347  ;;  %v1271_v21 = vadd.f32 1.0, %v2346_v58  ;;  %1296 = vrot.lane.b32.xlu0 %v3335_v8, %s2598_s25  ;;  %3950 = vst [vmem:[#allocation25_spill] sm:$0xff] %v3486_v59 }
 0x8b6   : > { %v1278_v12 = vmul.f32 0.5, %v1270_v15  ;;  %v1268_v0 = vadd.f32 1.0, %v2348_v24 }
 0x8b7   : > { %1306 = vrot.lane.b32.xlu1 %v3338_v4, %s2598_s25  ;;  %v1279_v41 = vmul.f32 0.5, %v1271_v21 }
 0x8b8   : > { %v3344_v56 = vmul.f32 %v1278_v12, %v1214_v57  ;;  %v1276_v27 = vmul.f32 0.5, %v1268_v0 }
 0x8b9   : > { %v3350_v26 = vmul.f32 %v1279_v41, %v1215_v39 }
 0x8ba   : > { %1300 = vrot.lane.b32.xlu0 %v3344_v56, %s2598_s25  ;;  %v3357_v1 = vmul.f32 %v1276_v27, %v3303_v18 }
 0x8bb   : > { %1326 = vrot.lane.b32.xlu1 %v3320_v60, %s2599_s13 }
 0x8be   : > { %1304 = vrot.lane.b32.xlu0 %v3350_v26, %s2598_s25 }
 0x8bf   : > { %1330 = vrot.lane.b32.xlu1 %v3325_v30, %s2599_s13 }
 0x8c2   : > { %1324 = vrot.lane.b32.xlu0 %v3357_v1, %s2599_s13 }
 0x8c3   : > { %1334 = vrot.lane.b32.xlu1 %v3330_v35, %s2599_s13 }
 0x8c6   : > { %1328 = vrot.lane.b32.xlu0 %v3335_v8, %s2599_s13 }
 0x8c7   : > { %1338 = vrot.lane.b32.xlu1 %v3338_v4, %s2599_s13 }
 0x8ca   : > { %1332 = vrot.lane.b32.xlu0 %v3344_v56, %s2599_s13 }
 0x8cb   : > { %1358 = vrot.lane.b32.xlu1 %v3320_v60, %s2600_s30 }
 0x8ce   : > { %1336 = vrot.lane.b32.xlu0 %v3350_v26, %s2599_s13 }
 0x8cf   : > { %1362 = vrot.lane.b32.xlu1 %v3325_v30, %s2600_s30 }
 0x8d2   : > { %1356 = vrot.lane.b32.xlu0 %v3357_v1, %s2600_s30 }
 0x8d3   : > { %1366 = vrot.lane.b32.xlu1 %v3330_v35, %s2600_s30 }
 0x8d6   : > { %1360 = vrot.lane.b32.xlu0 %v3335_v8, %s2600_s30 }
 0x8d7   : > { %1370 = vrot.lane.b32.xlu1 %v3338_v4, %s2600_s30 }
 0x8da   : > { %1364 = vrot.lane.b32.xlu0 %v3344_v56, %s2600_s30 }
 0x8db   : > { %1390 = vrot.lane.b32.xlu1 %v3320_v60, %s2601_s11 }
 0x8de   : > { %1368 = vrot.lane.b32.xlu0 %v3350_v26, %s2600_s30  ;;  %s1941_s30 = scalar_lea.sflag [#allocation4], %s2871_s9 }
 0x8df   : > { %1394 = vrot.lane.b32.xlu1 %v3325_v30, %s2601_s11 }
 0x8e2   : > { %1388 = vrot.lane.b32.xlu0 %v3357_v1, %s2601_s11 }
 0x8e3   : > { %1398 = vrot.lane.b32.xlu1 %v3330_v35, %s2601_s11 }
 0x8e6   : > { %1392 = vrot.lane.b32.xlu0 %v3335_v8, %s2601_s11 }
 0x8e7   : > { %1402 = vrot.lane.b32.xlu1 %v3338_v4, %s2601_s11 }
 0x8ea   : > { %1396 = vrot.lane.b32.xlu0 %v3344_v56, %s2601_s11 }
 0x8eb   : > { %1422 = vrot.lane.b32.xlu1 %v3320_v60, %s2602_s16 }
 0x8ee   : > { %1400 = vrot.lane.b32.xlu0 %v3350_v26, %s2601_s11  ;;  %s2509_s11 = scalar_lea.vmem %s3854_s23, 1024 }
 0x8ef   : > { %1426 = vrot.lane.b32.xlu1 %v3325_v30, %s2602_s16  ;;  %p2510_p6 = scmp.ne.s32.totalorder %s3854_s23, %s2509_s11 }
 0x8f1   : > { %p2511_p2 = pnand %p2510_p6, %p3968_p0 }
 0x8f2   : > { %1420 = vrot.lane.b32.xlu0 %v3357_v1, %s2602_s16 }
 0x8f3   : > { %1430 = vrot.lane.b32.xlu1 %v3330_v35, %s2602_s16  ;;  %p2512_p5 = pneg %p2511_p2 }
 0x8f6   : > { %1424 = vrot.lane.b32.xlu0 %v3335_v8, %s2602_s16 }
 0x8f7   : > { %1434 = vrot.lane.b32.xlu1 %v3338_v4, %s2602_s16 }
 0x8fa   : > { %1428 = vrot.lane.b32.xlu0 %v3344_v56, %s2602_s16 }
 0x8fb   : > { %1454 = vrot.lane.b32.xlu1 %v3320_v60, %s2603_s8 }
 0x8fe   : > { %1432 = vrot.lane.b32.xlu0 %v3350_v26, %s2602_s16  ;;  %s2619_s16 = smov [#allocation11]  }
 0x8ff   : > { %1458 = vrot.lane.b32.xlu1 %v3325_v30, %s2603_s8 }
 0x902   : > { %1452 = vrot.lane.b32.xlu0 %v3357_v1, %s2603_s8 }
 0x903   : > { %1462 = vrot.lane.b32.xlu1 %v3330_v35, %s2603_s8 }
 0x906   : > { %1456 = vrot.lane.b32.xlu0 %v3335_v8, %s2603_s8 }
 0x907   : > { %1466 = vrot.lane.b32.xlu1 %v3338_v4, %s2603_s8 }
 0x90a   : > { %1460 = vrot.lane.b32.xlu0 %v3344_v56, %s2603_s8 }
 0x90b   : > { %1292 = vrot.lane.b32.xlu1 %v3357_v1, %s2598_s25 }
 0x90e   : > { %1464 = vrot.lane.b32.xlu0 %v3350_v26, %s2603_s8  ;;  %s2513_s8 = sshll.u32 %s2619_s16, 4  ;;  %s2514_s8 = int_to_ptr.vmem [resolvable:$false] %s2513_s8 }
 0x90f   : > { %1486 = vrot.lane.b32.xlu1 %v3320_v60, %s2604_s28  ;;  %p2516_p10 = scmp.lt.s32.totalorder %s3854_s23, %s2514_s8 }
 0x912   : > { %1484 = vrot.lane.b32.xlu0 %v3357_v1, %s2604_s28 }
 0x913   : > { %1490 = vrot.lane.b32.xlu1 %v3325_v30, %s2604_s28 }
 0x916   : > { %1488 = vrot.lane.b32.xlu0 %v3335_v8, %s2604_s28 }
 0x917   : > { %1494 = vrot.lane.b32.xlu1 %v3330_v35, %s2604_s28 }
 0x91a   : > { %1492 = vrot.lane.b32.xlu0 %v3344_v56, %s2604_s28 }
 0x91b   : > { %1498 = vrot.lane.b32.xlu1 %v3338_v4, %s2604_s28 }
 0x91d   : > { %v1295_v18 = vpop.permute.xlu1 %1294 }
 0x91e   : > { %1496 = vrot.lane.b32.xlu0 %v3350_v26, %s2604_s28  ;;  %s2515_s28 = scalar_lea.vmem %s2514_s8, 2048 }
 0x91f   : > { %1518 = vrot.lane.b32.xlu1 %v3320_v60, %s2605_s29  ;;  %p2517_p1 = scmp.lt.s32.totalorder %s2515_s28, %s2509_s11 }
 0x921   : > { %v1299_v57 = vpop.permute.xlu1 %1298  ;;  %p2518_p11 = por %p2517_p1, %p2516_p10 }
 0x922   : > { %v3457_v39 = vsel %vm552_vm3, %v1295_v18, %v1299_v57  ;;  %1516 = vrot.lane.b32.xlu0 %v3357_v1, %s2605_s29 }
 0x923   : > { %1522 = vrot.lane.b32.xlu1 %v3325_v30, %s2605_s29  ;;  %p2519_p12 = pnand %p2518_p11, %p2512_p5 }
 0x925   : > { %v1303_v14 = vpop.permute.xlu1 %1302 }
 0x926   : > { %1520 = vrot.lane.b32.xlu0 %v3335_v8, %s2605_s29  ;;  %v1311_v58 = vsel %vm552_vm3, %v1299_v57, %v1303_v14 }
 0x927   : > { %1526 = vrot.lane.b32.xlu1 %v3330_v35, %s2605_s29  ;;  %v3469_v53 = vpop.permute.xlu0 %1296  ;;  %v1322_v57 = vmul.f32 %v1311_v58, %v3037_v46 }
 0x929   : > { %v1307_v49 = vpop.permute.xlu1 %1306 }
 0x92a   : > { %v3473_v37 = vsel %vm552_vm3, %v1307_v49, %v1295_v18  ;;  %1524 = vrot.lane.b32.xlu0 %v3344_v56, %s2605_s29  ;;  %v1309_v54 = vsel %vm552_vm3, %v1303_v14, %v1307_v49  ;;  %v3501_v18 = vld [vmem:[#allocation5] sm:$0xff] }
 0x92b   : > { %1530 = vrot.lane.b32.xlu1 %v3338_v4, %s2605_s29  ;;  %v1323_v0 = vmul.f32 %v1309_v54, %v3040_v48  ;;  %3951 = vst [vmem:[#allocation26_spill] sm:$0xff] %v3501_v18 }
 0x92c   : > { %v1301_v6 = vpop.permute.xlu0 %1300 }
 0x92d   : > { %v1327_v10 = vpop.permute.xlu1 %1326  ;;  %v1310_v11 = vsel %vm552_vm3, %v3469_v53, %v1301_v6 }
 0x92e   : > { %1528 = vrot.lane.b32.xlu0 %v3350_v26, %s2605_s29  ;;  %v1318_v24 = vmul.f32 %v1310_v11, %v3037_v46 }
 0x92f   : > { %1589 = vperm.xlu1 %2306, %v3486_v59  }
 0x930   : > { %v3491_v15 = vpop.permute.xlu0 %1304  ;;  %v1550_v49 = vpack.c.bf16 %v1322_v57, %v1318_v24 }
 0x931   : > { %v1308_v21 = vsel %vm552_vm3, %v1301_v6, %v3491_v15  ;;  %v1331_v12 = vpop.permute.xlu1 %1330 }
 0x932   : > { %v1319_v41 = vmul.f32 %v1308_v21, %v3040_v48  ;;  %v1345_v27 = vsel %vm585_vm4, %v1327_v10, %v1331_v12  ;;  %1585 = vperm.xlu0 %2305, %v3501_v18  }
 0x933   : > { %v3508_v54 = vmul.f32 %v1345_v27, %v3029_v42 }
 0x934   : > { %v1325_v61 = vpop.permute.xlu0 %1324  ;;  %v1551_v14 = vpack.c.bf16 %v1323_v0, %v1319_v41 }
 0x935   : > { %v1335_v63 = vpop.permute.xlu1 %1334 }
 0x936   : > { %1645 = vmatprep.subr.bf16.mxu1 %v1551_v14  ;;  %v1343_v27 = vsel %vm585_vm4, %v1331_v12, %v1335_v63 }
 0x937   : > { %1646 = vmatpush1.bf16.msra.mxu1 %v1550_v49 }
 0x938   : > { %v1329_v6 = vpop.permute.xlu0 %1328 }
 0x939   : > { %v1344_v11 = vsel %vm585_vm4, %v1325_v61, %v1329_v6  ;;  %v1339_v48 = vpop.permute.xlu1 %1338 }
 0x93a   : > { %v3511_v21 = vmul.f32 %v1344_v11, %v3029_v42  ;;  %v1347_v46 = vsel %vm585_vm4, %v1339_v48, %v1327_v10  ;;  %v1341_v57 = vsel %vm585_vm4, %v1335_v63, %v1339_v48 }
 0x93b   : > { %v3524_v42 = vmul.f32 %v1347_v46, %v3045_v50  ;;  %v1354_v46 = vmul.f32 %v1343_v27, %v3048_v51 }
 0x93c   : > { %v1333_v58 = vpop.permute.xlu0 %1332 }
 0x93d   : > { %v1359_v0 = vpop.permute.xlu1 %1358  ;;  %v1342_v41 = vsel %vm585_vm4, %v1329_v6, %v1333_v58  ;;  %v1355_v6 = vmul.f32 %v1341_v57, %v3055_v55 }
 0x93e   : > { %v1350_v10 = vmul.f32 %v1342_v41, %v3048_v51 }
 0x940   : > { %v1337_v14 = vpop.permute.xlu0 %1336 }
 0x941   : > { %v1340_v49 = vsel %vm585_vm4, %v1333_v58, %v1337_v14  ;;  %v1346_v11 = vsel %vm585_vm4, %v1337_v14, %v1325_v61  ;;  %v1363_v24 = vpop.permute.xlu1 %1362  ;;  %v1554_v14 = vpack.c.bf16 %v1354_v46, %v1350_v10 }
 0x942   : > { %v3533_v48 = vmul.f32 %v1346_v11, %v3045_v50  ;;  %v1351_v12 = vmul.f32 %v1340_v49, %v3055_v55  ;;  %v3538_v63 = vsel %vm618_vm5, %v1359_v0, %v1363_v24 }
 0x944   : > { %v3543_v41 = vpop.permute.xlu0 %1356  ;;  %v1555_v61 = vpack.c.bf16 %v1355_v6, %v1351_v12 }
 0x945   : > { %v1367_v43 = vpop.permute.xlu1 %1366 }
 0x946   : > { %1647 = vmatprep.subr.bf16.mxu1 %v1555_v61  ;;  %v1375_v10 = vsel %vm618_vm5, %v1363_v24, %v1367_v43 }
 0x947   : > { %1648 = vmatpush1.bf16.msra.mxu1 %v1554_v14  ;;  %v1386_v24 = vmul.f32 %v1375_v10, %v3089_v28 }
 0x948   : > { %v3545_v50 = vpop.permute.xlu0 %1360 }
 0x949   : > { %v1371_v57 = vpop.permute.xlu1 %1370 }
 0x94a   : > { %v1373_v27 = vsel %vm618_vm5, %v1367_v43, %v1371_v57  ;;  %v1379_v11 = vsel %vm618_vm5, %v1371_v57, %v1359_v0 }
 0x94b   : > { %v3567_v58 = vmul.f32 %v1379_v11, %v3086_v2  ;;  %v1387_v0 = vmul.f32 %v1373_v27, %v3092_v31 }
 0x94c   : > { %v1365_v55 = vpop.permute.xlu0 %1364 }
 0x94d   : > { %v3547_v49 = vpop.permute.xlu1 %1390  ;;  %v1374_v51 = vsel %vm618_vm5, %v3545_v50, %v1365_v55 }
 0x94e   : > { %v1382_v12 = vmul.f32 %v1374_v51, %v3089_v28 }
 0x950   : > { %v1369_v6 = vpop.permute.xlu0 %1368  ;;  %v1558_v33 = vpack.c.bf16 %v1386_v24, %v1382_v12 }
 0x951   : > { %v1372_v46 = vsel %vm618_vm5, %v1365_v55, %v1369_v6  ;;  %v1378_v61 = vsel %vm618_vm5, %v1369_v6, %v3543_v41  ;;  %v3564_v14 = vpop.permute.xlu1 %1394 }
 0x952   : > { %v3571_v57 = vmul.f32 %v1378_v61, %v3086_v2  ;;  %v1383_v43 = vmul.f32 %v1372_v46, %v3092_v31 }
 0x954   : > { %v3577_v51 = vpop.permute.xlu0 %1388  ;;  %v1559_v6 = vpack.c.bf16 %v1387_v0, %v1383_v43 }
 0x955   : > { %v1399_v52 = vpop.permute.xlu1 %1398 }
 0x956   : > { %1649 = vmatprep.subr.bf16.mxu1 %v1559_v6  ;;  %v1407_v10 = vsel %vm651_vm6, %v3564_v14, %v1399_v52 }
 0x957   : > { %1650 = vmatpush1.bf16.msra.mxu1 %v1558_v33  ;;  %v1418_v6 = vmul.f32 %v1407_v10, %v3100_v36 }
 0x958   : > { %v3579_v11 = vpop.permute.xlu0 %1392 }
 0x959   : > { %v3581_v27 = vpop.permute.xlu1 %1402 }
 0x95a   : > { %v1405_v31 = vsel %vm651_vm6, %v1399_v52, %v3581_v27 }
 0x95b   : > { %v1419_v43 = vmul.f32 %v1405_v31, %v3107_v47 }
 0x95c   : > { %v1397_v2 = vpop.permute.xlu0 %1396 }
 0x95d   : > { %v3583_v61 = vpop.permute.xlu1 %1422  ;;  %v1406_v28 = vsel %vm651_vm6, %v3579_v11, %v1397_v2 }
 0x95e   : > { %v1414_v12 = vmul.f32 %v1406_v28, %v3100_v36  ;;  %v1567_v28 = vpack.c.bf16 %v3338_v4, %v3350_v26 }
 0x960   : > { %v3594_v33 = vpop.permute.xlu0 %1400  ;;  %v1562_v52 = vpack.c.bf16 %v1418_v6, %v1414_v12 }
 0x961   : > { %v1404_v46 = vsel %vm651_vm6, %v1397_v2, %v3594_v33  ;;  %v3600_v0 = vpop.permute.xlu1 %1426 }
 0x962   : > { %v1415_v24 = vmul.f32 %v1404_v46, %v3107_v47  ;;  %v1566_v47 = vpack.c.bf16 %v3330_v35, %v3344_v56 }
 0x964   : > { %v3605_v55 = vpop.permute.xlu0 %1420  ;;  %v1563_v44 = vpack.c.bf16 %v1419_v43, %v1415_v24 }
 0x965   : > { %v3607_v3 = vpop.permute.xlu1 %1430 }
 0x966   : > { %1651 = vmatprep.subr.bf16.mxu1 %v1563_v44 }
 0x967   : > { %1652 = vmatpush1.bf16.msra.mxu1 %v1562_v52 }
 0x968   : > { %v3611_v2 = vpop.permute.xlu0 %1424  ;;  %1653 = vmatprep.subr.bf16.mxu1 %v1567_v28 }
 0x969   : > { %v1435_v59 = vpop.permute.xlu1 %1434 }
 0x96a   : > { %v1437_v44 = vsel %vm684_vm7, %v3607_v3, %v1435_v59  ;;  %v1443_v4 = vsel %vm684_vm7, %v1435_v59, %v3583_v61 }
 0x96b   : > { %1654 = vmatpush1.bf16.msra.mxu1 %v1566_v47  ;;  %v1450_v12 = vmul.f32 %v1437_v44, %v3139_v19  ;;  %v1451_v46 = vmul.f32 %v1443_v4, %v3136_v17  ;;  %v1321_v44 = vmul.f32 %v3457_v39, %v3023_v40 }
 0x96c   : > { %v3615_v36 = vpop.permute.xlu0 %1428 }
 0x96d   : > { %v3617_v31 = vpop.permute.xlu1 %1454 }
 0x970   : > { %v1433_v26 = vpop.permute.xlu0 %1432 }
 0x971   : > { %v1436_v10 = vsel %vm684_vm7, %v3615_v36, %v1433_v26  ;;  %v1442_v35 = vsel %vm684_vm7, %v1433_v26, %v3605_v55  ;;  %v3631_v56 = vpop.permute.xlu1 %1458 }
 0x972   : > { %v1446_v43 = vmul.f32 %v1436_v10, %v3139_v19  ;;  %v1447_v24 = vmul.f32 %v1442_v35, %v3136_v17  ;;  %v1320_v19 = vmul.f32 %v3473_v37, %v3034_v45 }
 0x974   : > { %v1570_v59 = vpack.c.bf16 %v1450_v12, %v1446_v43  ;;  %v3637_v6 = vpop.permute.xlu0 %1452  ;;  %v1571_v52 = vpack.c.bf16 %v1451_v46, %v1447_v24 }
 0x975   : > { %v3639_v28 = vpop.permute.xlu1 %1462 }
 0x976   : > { %1655 = vmatprep.subr.bf16.mxu1 %v1571_v52  ;;  %v1408_v52 = vsel %vm651_vm6, %v3577_v51, %v3579_v11 }
 0x977   : > { %1656 = vmatpush1.bf16.msra.mxu1 %v1570_v59  ;;  %v1413_v11 = vmul.f32 %v1408_v52, %v3081_v25 }
 0x978   : > { %v3641_v47 = vpop.permute.xlu0 %1456 }
 0x979   : > { %v1467_v26 = vpop.permute.xlu1 %1466 }
 0x97a   : > { %v1469_v10 = vsel %vm717_vm8, %v3639_v28, %v1467_v26  ;;  %v1475_v35 = vsel %vm717_vm8, %v1467_v26, %v3617_v31 }
 0x97c   : > { %v1461_v18 = vpop.permute.xlu0 %1460 }
 0x97d   : > { %v1293_v62 = vpop.permute.xlu1 %1292 }
 0x97e   : > { %v1312_v17 = vsel %vm552_vm3, %v1293_v62, %v3469_v53  ;;  %v1314_v4 = vsel %vm552_vm3, %v3491_v15, %v1293_v62  ;;  %v1376_v53 = vsel %vm618_vm5, %v3543_v41, %v3545_v50 }
 0x97f   : > { %v1316_v39 = vmul.f32 %v1314_v4, %v3034_v45  ;;  %v1317_v37 = vmul.f32 %v1312_v17, %v3023_v40  ;;  %v1482_v45 = vmul.f32 %v1469_v10, %v3179_v7  ;;  %v1483_v40 = vmul.f32 %v1475_v35, %v3163_v22 }
 0x980   : > { %v1465_v12 = vpop.permute.xlu0 %1464  ;;  %v1381_v50 = vmul.f32 %v1376_v53, %v3077_v23  ;;  %v1385_v17 = vmul.f32 %v3538_v63, %v3077_v23  ;;  %v1409_v4 = vsel %vm651_vm6, %v3547_v49, %v3564_v14  ;;  %v1410_v10 = vsel %vm651_vm6, %v3594_v33, %v3577_v51 }
 0x981   : > { %v1548_v46 = vpack.c.bf16 %v1320_v19, %v1316_v39  ;;  %v1468_v62 = vsel %vm717_vm8, %v1461_v18, %v1465_v12  ;;  %v1474_v15 = vsel %vm717_vm8, %v1465_v12, %v3637_v6  ;;  %v3670_v43 = vpop.permute.xlu1 %1486  ;;  %v1549_v24 = vpack.c.bf16 %v1321_v44, %v1317_v37 }
 0x982   : > { %v1478_v59 = vmul.f32 %v1468_v62, %v3179_v7  ;;  %v1479_v41 = vmul.f32 %v1474_v15, %v3163_v22  ;;  %v3952_v7 = vpack.c.bf16 %v3508_v54, %v3511_v21  ;;  %v1557_v23 = vpack.c.bf16 %v1385_v17, %v1381_v50 }
 0x983   : > { %1602 = vmatprep.subr.bf16.mxu0 %v1549_v24  ;;  %v3953_v54 = vpack.c.bf16 %v3524_v42, %v3533_v48  ;;  %v1417_v21 = vmul.f32 %v1409_v4, %v3081_v25  ;;  %v1411_v14 = vsel %vm651_vm6, %v3581_v27, %v3547_v49  ;;  %v1412_v39 = vmul.f32 %v1410_v10, %v3097_v34  ;;  %v3955_v10 = vld [vmem:[#allocation16_spill] sm:$0xff] }
 0x984   : > { %v1574_v26 = vpack.c.bf16 %v1482_v45, %v1478_v59  ;;  %v3681_v19 = vpop.permute.xlu0 %1484  ;;  %1603 = vmatpush1.bf16.msra.mxu0 %v1548_v46  ;;  %v1575_v44 = vpack.c.bf16 %v1483_v40, %v1479_v41  ;;  %v1416_v51 = vmul.f32 %v1411_v14, %v3097_v34  ;;  %v1438_v42 = vsel %vm684_vm7, %v3611_v2, %v3615_v36 }
 0x985   : > { %1604 = vmatprep.subr.bf16.mxu0 %v3952_v7  ;;  %v3688_v22 = vpop.permute.xlu1 %1490  ;;  %v1561_v37 = vpack.c.bf16 %v1417_v21, %v1413_v11  ;;  %v3954_v25 = vpack.c.bf16 %v3567_v58, %v3571_v57  ;;  %v1439_v49 = vsel %vm684_vm7, %v3600_v0, %v3607_v3  ;;  %v1440_v34 = vsel %vm684_vm7, %v3605_v55, %v3611_v2 }
 0x986   : > { %1657 = vmatprep.subr.bf16.mxu1 %v1575_v44  ;;  %v1560_v33 = vpack.c.bf16 %v1416_v51, %v1412_v39  ;;  %v1445_v36 = vmul.f32 %v1438_v42, %v3133_v16  ;;  %v1565_v3 = vpack.c.bf16 %v3325_v30, %v3335_v8  ;;  %v1441_v57 = vsel %vm684_vm7, %v3583_v61, %v3600_v0 }
 0x987   : > { %1658 = vmatpush1.bf16.msra.mxu1 %v1574_v26  ;;  %v1449_v12 = vmul.f32 %v1439_v49, %v3133_v16  ;;  %v1470_v55 = vsel %vm717_vm8, %v3641_v47, %v1461_v18  ;;  %v1564_v46 = vpack.c.bf16 %v3320_v60, %v3357_v1  ;;  %v1444_v62 = vmul.f32 %v1440_v34, %v3128_v13 }
 0x988   : > { %v1489_v63 = vpop.permute.xlu0 %1488  ;;  %1605 = vmatpush1.bf16.msra.mxu0 %v3953_v54  ;;  %v1471_v30 = vsel %vm717_vm8, %v3631_v56, %v3639_v28  ;;  %v1472_v28 = vsel %vm717_vm8, %v3637_v6, %v3641_v47  ;;  %v1477_v15 = vmul.f32 %v1470_v55, %v3171_v29  ;;  %v1448_v45 = vmul.f32 %v1441_v57, %v3128_v13  ;;  %v2364_v57 = vld [vmem:[#allocation10 + $0x38] ss:$0 sm:$0xff] }
 0x989   : > { %1606 = vmatprep.subr.bf16.mxu0 %v1557_v23  ;;  %v1495_v35 = vpop.permute.xlu1 %1494  ;;  %v1569_v24 = vpack.c.bf16 %v1449_v12, %v1445_v36  ;;  %v1476_v52 = vmul.f32 %v1472_v28, %v3160_v20  ;;  %v1504_v26 = vsel %vm750_vm9, %v3681_v19, %v1489_v63  ;;  %v1505_v17 = vsel %vm750_vm9, %v3670_v43, %v3688_v22 }
 0x98a   : > { %v1568_v47 = vpack.c.bf16 %v1448_v45, %v1444_v62  ;;  %v1503_v13 = vsel %vm750_vm9, %v3688_v22, %v1495_v35  ;;  %v1512_v54 = vmul.f32 %v1505_v17, %v3955_v10  ;;  %v2616_v17 = vmov 0.0  }
 0x98b   : > { %v1513_v7 = vmul.f32 %v1503_v13, %v3176_v5 }
 0x98c   : > { %v1493_v48 = vpop.permute.xlu0 %1492  ;;  %1607 = vmatpush1.bf16.msra.mxu0 %v3954_v25 }
 0x98d   : > { %1608 = vmatprep.subr.bf16.mxu0 %v1561_v37  ;;  %v1499_v27 = vpop.permute.xlu1 %1498  ;;  %v1502_v40 = vsel %vm750_vm9, %v1489_v63, %v1493_v48  ;;  %v2362_v37 = vld [vmem:[#allocation10 + $0x28] ss:$0 sm:$0xff] }
 0x98e   : > { %v1501_v53 = vsel %vm750_vm9, %v1495_v35, %v1499_v27  ;;  %v1507_v58 = vsel %vm750_vm9, %v1499_v27, %v3670_v43  ;;  %v1509_v44 = vmul.f32 %v1502_v40, %v3176_v5  ;;  %v2361_v5 = vld [vmem:[#allocation10 + $0x20] ss:$0 sm:$0xff] }
 0x98f   : > { %v1514_v61 = vmul.f32 %v1501_v53, %v3187_v9  ;;  %v1515_v60 = vmul.f32 %v1507_v58, %v3184_v38  ;;  %v2363_v58 = vld [vmem:[#allocation10 + $0x30] ss:$0 sm:$0xff] }
 0x990   : > { %v1497_v2 = vpop.permute.xlu0 %1496  ;;  %1609 = vmatpush1.bf16.msra.mxu0 %v1560_v33  ;;  %v1577_v63 = vpack.c.bf16 %v1513_v7, %v1509_v44  ;;  %v2365_v44 = vld [vmem:[#allocation7] sm:$0xff]  ;;  %v3957_v7 = vld [vmem:[#allocation25_spill] sm:$0xff] }
 0x991   : > { %v1500_v8 = vsel %vm750_vm9, %v1493_v48, %v1497_v2  ;;  %v1506_v16 = vsel %vm750_vm9, %v1497_v2, %v3681_v19  ;;  %1610 = vmatprep.subr.bf16.mxu0 %v1565_v3  ;;  %v1519_v18 = vpop.permute.xlu1 %1518  ;;  %v1508_v19 = vmul.f32 %v1504_v26, %v3955_v10  ;;  %v3958_v10 = vmov 0  }
 0x992   : > { %v1510_v1 = vmul.f32 %v1500_v8, %v3187_v9  ;;  %v1511_v0 = vmul.f32 %v1506_v16, %v3184_v38  ;;  %v1473_v38 = vsel %vm717_vm8, %v3617_v31, %v3631_v56  ;;  %v1481_v9 = vmul.f32 %v1471_v30, %v3171_v29 }
 0x993   : > { %v1480_v29 = vmul.f32 %v1473_v38, %v3160_v20  ;;  %v1576_v39 = vpack.c.bf16 %v1512_v54, %v1508_v19  ;;  %v2611_v8 = vmov 8   ;;  %v3959_v19 = vmov 1  }
 0x994   : > { %v1578_v59 = vpack.c.bf16 %v1514_v61, %v1510_v1  ;;  %v1517_v41 = vpop.permute.xlu0 %1516  ;;  %1611 = vmatpush1.bf16.msra.mxu0 %v1564_v46  ;;  %v1579_v50 = vpack.c.bf16 %v1515_v60, %v1511_v0  ;;  %v1573_v31 = vpack.c.bf16 %v1481_v9, %v1477_v15  ;;  %v2318_v46 = vld [vmem:[#allocation8 + $0x4] ss:$16 sps:$4 sm:$0xff]   ;;  %2308 = vset.pattern.permute.xlu1 %v2611_v8 }
 0x995   : > { %1612 = vmatprep.subr.bf16.mxu0 %v1569_v24  ;;  %v1523_v6 = vpop.permute.xlu1 %1522  ;;  %v1572_v11 = vpack.c.bf16 %v1480_v29, %v1476_v52  ;;  %v3956_v29 = vld [vmem:[#allocation26_spill] sm:$0xff] }
 0x996   : > { %1659 = vmatprep.subr.bf16.mxu1 %v1579_v50  ;;  %v1537_v21 = vsel %vm783_vm10, %v1519_v18, %v1523_v6 }
 0x997   : > { %1660 = vmatpush1.bf16.msra.mxu1 %v1578_v59  ;;  %v1544_v48 = vmul.f32 %v2361_v5, %v1537_v21 }
 0x998   : > { %v1521_v56 = vpop.permute.xlu0 %1520  ;;  %1613 = vmatpush1.bf16.msra.mxu0 %v1568_v47 }
 0x999   : > { %1614 = vmatprep.subr.bf16.mxu0 %v1573_v31  ;;  %v1527_v4 = vpop.permute.xlu1 %1526  ;;  %v1536_v23 = vsel %vm783_vm10, %v1517_v41, %v1521_v56  ;;  %v2366_v31 = vld [vmem:[#allocation7 + $0x8] sm:$0xff] }
 0x99a   : > { %v1535_v20 = vsel %vm783_vm10, %v1523_v6, %v1527_v4  ;;  %v1540_v22 = vmul.f32 %v2361_v5, %v1536_v23 }
 0x99b   : > { %v1545_v51 = vmul.f32 %v2362_v37, %v1535_v20 }
 0x99c   : > { %v1525_v43 = vpop.permute.xlu0 %1524  ;;  %1615 = vmatpush1.bf16.msra.mxu0 %v1572_v11  ;;  %v1580_v34 = vpack.c.bf16 %v1544_v48, %v1540_v22  ;;  %v2618_v11 = vmov 7  }
 0x99d   : > { %v1534_v14 = vsel %vm783_vm10, %v1521_v56, %v1525_v43  ;;  %1616 = vmatprep.subr.bf16.mxu0 %v1577_v63  ;;  %v1531_v35 = vpop.permute.xlu1 %1530  ;;  %v2614_v56 = vmov 0.0|0.0   ;;  %2307 = vset.pattern.permute.xlu0 %v2618_v11 }
 0x99e   : > { %v1541_v42 = vmul.f32 %v2362_v37, %v1534_v14  ;;  %v1533_v25 = vsel %vm783_vm10, %v1527_v4, %v1531_v35  ;;  %v1539_v49 = vsel %vm783_vm10, %v1531_v35, %v1519_v18  ;;  %v2617_v4 = vmov 6  }
 0x99f   : > { %v1546_v3 = vmul.f32 %v2363_v58, %v1533_v25  ;;  %v1547_v12 = vmul.f32 %v2364_v57, %v1539_v49 }
 0x9a0   : > { %v1529_v27 = vpop.permute.xlu0 %1528  ;;  %1617 = vmatpush1.bf16.msra.mxu0 %v1576_v39  ;;  %v1581_v33 = vpack.c.bf16 %v1545_v51, %v1541_v42 }
 0x9a1   : > { %v1532_v36 = vsel %vm783_vm10, %v1525_v43, %v1529_v27  ;;  %v1538_v53 = vsel %vm783_vm10, %v1529_v27, %v1517_v41 }
 0x9a2   : > { %v1542_v55 = vmul.f32 %v2363_v58, %v1532_v36  ;;  %v1543_v2 = vmul.f32 %v2364_v57, %v1538_v53  ;;  %1618 = vmatprep.subr.bf16.mxu0 %v1581_v33 }
 0x9a4   : > { %v1582_v62 = vpack.c.bf16 %v1546_v3, %v1542_v55  ;;  %1619 = vmatpush1.bf16.msra.mxu0 %v1580_v34  ;;  %v1583_v30 = vpack.c.bf16 %v1547_v12, %v1543_v2 }
 0x9a5   : > { %2165 = vmatprep.subr.bf16.mxu0 %v2614_v56  ;;  %v3962_v56 = vld [vmem:[#allocation18_spill] sm:$0xff] }
 0x9a6   : > { %1661 = vmatprep.subr.bf16.mxu1 %v1583_v30 }
 0x9a7   : > { %1635 = vmatmul.mubr.bf16.vlgmr.msra.gmra.mrb[12].mxu0 %v2318_v46  ;;  %1662 = vmatpush1.bf16.msra.mxu1 %v1582_v62 }
 0x9a8   : > { %2149 = vmatprep.mubr.msk.f32.mxu0 %vm2615_vm13, %v2616_v17 }
 0x9aa   : > { %1678 = vmatmul.mubr.bf16.vlgmr.msra.gmra.mrb[12].mxu1 %v2318_v46 }
 0x9ae   : > { %v1590_v40 = vpop.permute.xlu1 %1589 }
 0x9b1   : > { %v1586_v16 = vpop.permute.xlu0 %1585 }
 0xa7a   : > { %v1636_v32 = vpop.f32.mrb[12].mxu0 }
 0xa7b   : > { %v3801_v18 = vadd.f32 %v1636_v32, %v1586_v16  ;;  %v1638_v61 = vpop.f32.mrb[13].mxu0 }
 0xa7c   : > { %v3803_v60 = vadd.f32 %v1638_v61, %v1586_v16  ;;  %v1640_v1 = vpop.f32.mrb[14].mxu0 }
 0xa7d   : > { %v1679_v0 = vpop.f32.mrb[12].mxu1  ;;  %v1642_v28 = vpop.f32.mrb[15].mxu0  ;;  %v3813_v9 = vadd.f32 %v1640_v1, %v1590_v40 }
 0xa7e   : > { %v1688_v15 = vadd.f32 %v3803_v60, %v3801_v18  ;;  %v3807_v24 = vadd.f32 %v1679_v0, %v1586_v16  ;;  %v1681_v45 = vpop.f32.mrb[13].mxu1  ;;  %v3815_v6 = vadd.f32 %v1642_v28, %v1590_v40 }
 0xa7f   : > { %v3809_v59 = vadd.f32 %v1681_v45, %v1586_v16  ;;  %v1683_v41 = vpop.f32.mrb[14].mxu1 }
 0xa80   : > { %1689 = vadd.xlane.f32.xlu1 %v1688_v15  ;;  %v1685_v50 = vpop.f32.mrb[15].mxu1  ;;  %v3817_v47 = vadd.f32 %v1683_v41, %v1590_v40  ;;  %v1691_v13 = vadd.f32 %v3815_v6, %v3813_v9 }
 0xa81   : > { %v1694_v38 = vadd.f32 %v3809_v59, %v3807_v24  ;;  %v3819_v52 = vadd.f32 %v1685_v50, %v1590_v40  ;;  %v3960_v50 = vld [vmem:[#allocation21_spill] sm:$0xff] }
 0xa83   : > { %1695 = vadd.xlane.f32.xlu0 %v1694_v38  ;;  %v1697_v26 = vadd.f32 %v3819_v52, %v3817_v47 }
 0xa87   : > { %1692 = vadd.xlane.f32.xlu0 %v1691_v13  ;;  %v3961_v13 = vld [vmem:[#allocation23_spill] sm:$0xff] }
 0xa8b   : > { %1698 = vadd.xlane.f32.xlu0 %v1697_v26 }
 0xa91   : > { %1708 = vrot.lane.b32.xlu1 %v2365_v44, %s2612_s6 }
 0xa95   : > { %1799 = vrot.lane.b32.xlu1 %v2365_v44, %s2613_s7 }
 0xa99   : > { %1801 = vrot.lane.b32.xlu1 %v2366_v31, %s2613_s7 }
 0xa9d   : > { %1792 = vperm.xlu1 %2308, %v3956_v29  }
 0xaa1   : > { %1796 = vperm.xlu1 %2308, %v3957_v7   ;;  %1705 = vperm.xlu0 %2307, %v3956_v29  }
 0xaa5   : > { %2309 = vset.pattern.permute.xlu1 %v2617_v4  ;;  %2311 = vset.pattern.permute.xlu0 %v3959_v19 }
 0xaa6   : > { %328 = vperm.xlu1 %2309, %v3956_v29  }
 0xaaa   : > { %333 = vperm.xlu1 %2309, %v3957_v7   ;;  %v3963_v7 = vld [vmem:[#allocation20_spill] sm:$0xff] }
 0xaae   : > { %2310 = vset.pattern.permute.xlu1 %v3958_v10 }
 0xb0d   : > { %v1690_v63 = vpop.xlane.xlu1 %1689 }
 0xb10   : > { %v1696_v23 = vpop.xlane.xlu0 %1695 }
 0xb11   : > { %v1700_v54 = vsel %vm450_vm0, %v1690_v63, %v1696_v23  ;;  %v1709_v35 = vpop.permute.xlu1 %1708 }
 0xb12   : > { %v1702_v5 = vmul.f32 0.00390625, %v1700_v54 }
 0xb14   : > { %v1693_v20 = vpop.xlane.xlu0 %1692 }
 0xb15   : > { %v1800_v39 = vpop.permute.xlu1 %1799 }
 0xb16   : > { %2154 = vmatprep.mubr.msk.f32.mxu1 %vm1803_vm14, %v1800_v39 }
 0xb18   : > { %v1699_v21 = vpop.xlane.xlu0 %1698 }
 0xb19   : > { %v1701_v43 = vsel %vm450_vm0, %v1693_v20, %v1699_v21  ;;  %v1802_v57 = vpop.permute.xlu1 %1801  ;;  %v3965_v21 = vld [vmem:[#allocation19_spill] sm:$0xff] }
 0xb1a   : > { %v1703_v22 = vmul.f32 0.00390625, %v1701_v43 }
 0xb1c   : > { %v2166_v14 = vpack.c.bf16 %v1703_v22, %v1702_v5 }
 0xb1d   : > { %v1793_v12 = vpop.permute.xlu1 %1792 }
 0xb1e   : > { %2167 = vmatpush3.bf16.msra.mxu0 %v2166_v14 }
 0xb20   : > { %v1706_v37 = vpop.permute.xlu0 %1705 }
 0xb21   : > { %2150 = vmatmul.mubr.msk.f32.vlgmr.msra.gmra.mrb[10].mxu0 %vm963_vm12, %v1709_v35  ;;  %v1797_v55 = vpop.permute.xlu1 %1796  ;;  %v3966_v35 = vld [vmem:[#allocation22_spill] sm:$0xff] }
 0xb25   : > { %v329_v45 = vpop.permute.xlu1 %328 }
 0xb26   : > { %v436_v17 = vadd.f32 %v3962_v56, %v329_v45  ;;  %v438_v4 = vadd.f32 %v3963_v7, %v329_v45  ;;  %v395_v43 = vadd.f32 %v3965_v21, %v329_v45 }
 0xb29   : > { %v334_v40 = vpop.permute.xlu1 %333 }
 0xb2a   : > { %v397_v38 = vadd.f32 %v3960_v50, %v334_v40  ;;  %v399_v26 = vadd.f32 %v3961_v13, %v334_v40  ;;  %v440_v39 = vadd.f32 %v3966_v35, %v334_v40 }
 0xbf4   : > { %v1778_v51 = vpop.f32.mrb[10].mxu0 }
 0xbf5   : > { %v1779_v42 = vadd.f32 %v1778_v51, %v1706_v37  ;;  %v2151_v48 = vpop.f32.mrb[11].mxu0 }
 0xbf7   : > { %v1782_v25 = vmul.f32 %v1779_v42, %v1779_v42 }
 0xbf9   : > { %v1783_v49 = vmul.f32 %v1782_v25, %v1779_v42 }
 0xbfb   : > { %v1784_v27 = vmul.f32 0.044715, %v1783_v49 }
 0xbfd   : > { %v1785_v33 = vadd.f32 %v1784_v27, %v1779_v42 }
 0xbff   : > { %v1786_v34 = vmul.f32 0.7978846, %v1785_v33 }
 0xc01   : > { %2349 = vtanh.f32 %v1786_v34 }
 0xc0b   : > { %v2350_v36 = vpop.eup %2349 }
 0xc0c   : > { %v1788_v53 = vadd.f32 1.0, %v2350_v36 }
 0xc0e   : > { %v1789_v58 = vmul.f32 0.5, %v1788_v53 }
 0xc10   : > { %v1790_v3 = vmul.f32 %v1789_v58, %v1779_v42 }
 0xc12   : > { %2152 = vmatprep.subr.msk.mxu1 %vm345_vm1, %v1790_v3 }
 0xc13   : > { %2153 = vmatpush3.msk.msra.mxu1 %vm345_vm1, %v1790_v3 }
 0xc14   : > { %2155 = vmatmul.mubr.msk.f32.vlgmr.msra.gmra.mrb[10].mxu1 %vm1803_vm14, %v1802_v57 }
 0xce7   : > { %v2156_v2 = vpop.f32.mrb[10].mxu1 }
 0xce8   : > { %v1883_v46 = vadd.f32 %v2156_v2, %v1797_v55  ;;  %v1877_v62 = vpop.f32.mrb[11].mxu1 }
 0xce9   : > { %v1878_v30 = vadd.f32 %v1877_v62, %v1793_v12 }
 0xcea   : > { %v2109_v8 = vmul.f32 -1.442695, %v1883_v46 }
 0xceb   : > { %v2108_v16 = vmul.f32 -1.442695, %v1878_v30 }
 0xcec   : > { %2351 = vpow2.f32 %v2109_v8 }
 0xced   : > { %2353 = vpow2.f32 %v2108_v16 }
 0xcf6   : > { %v2352_v32 = vpop.eup %2351 }
 0xcf7   : > { %v2354_v61 = vpop.eup %2353  ;;  %v1893_v1 = vadd.f32 1.0, %v2352_v32 }
 0xcf8   : > { %v1892_v0 = vadd.f32 1.0, %v2354_v61 }
 0xcf9   : > { %2355 = vrcp.f32 %v1893_v1 }
 0xcfa   : > { %2357 = vrcp.f32 %v1892_v0 }
 0xd03   : > { %v2356_v28 = vpop.eup %2355 }
 0xd04   : > { %v2358_v15 = vpop.eup %2357  ;;  %1905 = vperm.xlu1 %2310, %v2356_v28  }
 0xd05   : > { %1909 = vperm.xlu0 %2311, %v2358_v15  }
 0xd08   : > { %1900 = vperm.xlu1 %2310, %v2358_v15  }
 0xd0c   : > { %2312 = vset.pattern.permute.xlu1 %v3959_v19 }
 0xd0d   : > { %1913 = vperm.xlu1 %2312, %v2356_v28  }
 0xd83   : > { %v1906_v41 = vpop.permute.xlu1 %1905 }
 0xd84   : > { %v1920_v44 = vmul.f32 %v1906_v41, %v3813_v9  ;;  %v1921_v31 = vmul.f32 %v1906_v41, %v3815_v6  ;;  %v1910_v29 = vpop.permute.xlu0 %1909  ;;  %v3964_v9 = vld [vmem:[#allocation17_spill] sm:$0xff] }
 0xd85   : > { %v1918_v11 = vmul.f32 %v1910_v29, %v3807_v24  ;;  %v1919_v10 = vmul.f32 %v1910_v29, %v3809_v59  ;;  %v393_v6 = vadd.f32 %v3964_v9, %v329_v45 }
 0xd86   : > { %v1928_v19 = vadd.f32 %v1920_v44, %v397_v38  ;;  %v1929_v23 = vadd.f32 %v1921_v31, %v399_v26 }
 0xd87   : > { %v1926_v20 = vadd.f32 %v1918_v11, %v436_v17  ;;  %v1927_v63 = vadd.f32 %v1919_v10, %v438_v4  ;;  %v1901_v54 = vpop.permute.xlu1 %1900 }
 0xd88   : > { %1936 = vst [vmem:[%s298_s27 + $0x20] sm:$0xff] %v1928_v19  ;;  %1937 = vst [vmem:[%s298_s27 + $0x28] sm:$0xff] %v1929_v23  ;;  %v1916_v5 = vmul.f32 %v1901_v54, %v3801_v18  ;;  %v1917_v22 = vmul.f32 %v1901_v54, %v3803_v60  ;;  %v3967_v18 = vld [vmem:[#allocation24_spill] sm:$0xff] }
 0xd89   : > { %1934 = vst [vmem:[%s298_s27 + $0x10] sm:$0xff] %v1926_v20  ;;  %1935 = vst [vmem:[%s298_s27 + $0x18] sm:$0xff] %v1927_v63  ;;  %v442_v37 = vadd.f32 %v3967_v18, %v334_v40 }
 0xd8a   : > { %v1924_v24 = vadd.f32 %v1916_v5, %v393_v6  ;;  %v1925_v59 = vadd.f32 %v1917_v22, %v395_v43 }
 0xd8c   : > { %1932 = vst [vmem:[%s298_s27] sm:$0xff] %v1924_v24  ;;  %1933 = vst [vmem:[%s298_s27 + $0x8] sm:$0xff] %v1925_v59  ;;  %v1914_v14 = vpop.permute.xlu1 %1913 }
 0xd8d   : > { %v1922_v60 = vmul.f32 %v1914_v14, %v3817_v47  ;;  %v1923_v51 = vmul.f32 %v1914_v14, %v3819_v52 }
 0xd8f   : > { %v1930_v42 = vadd.f32 %v1922_v60, %v440_v39  ;;  %v1931_v48 = vadd.f32 %v1923_v51, %v442_v37 }
 0xd91   : > { %1938 = vst [vmem:[%s298_s27 + $0x30] sm:$0xff] %v1930_v42  ;;  %1939 = vst [vmem:[%s298_s27 + $0x38] sm:$0xff] %v1931_v48 }
 0xd92   : > { %2522 = shalt.err (!%p2519_p12)
}
 0xd93   : > { %s2523_s29 = scalar_lea.hbm %s3863_s24, 1024  ;;  %s2527_s7 = scalar_lea.hbm %s3912_s5, 2048 }
 0xd94   : > { %p2524_p13 = scmp.ne.s32.totalorder %s3863_s24, %s2523_s29  ;;  %p2528_p9 = scmp.lt.u32.totalorder %s3863_s24, %s3912_s5 }
 0xd95   : > { %p2529_p4 = scmp.lt.u32.totalorder %s2527_s7, %s2523_s29  ;;  %p2531_p6 = scmp.lt.u32.totalorder %s2523_s29, %s3863_s24 }
 0xd96   : > { %p2525_p3 = pnand %p2524_p13, %p3968_p0 }
 0xd97   : > { %p2530_p8 = por %p2529_p4, %p2528_p9 }
 0xd98   : > { %p2526_p7 = pneg %p2525_p3 }
 0xd99   : > { %p2532_p2 = por %p2531_p6, %p2530_p8 }
 0xd9b   : > { %p2533_p5 = pnand %p2532_p2, %p2526_p7 }
 0xd9d   : > { %2536 = shalt.err (!%p2533_p5)
}
 0xd9e   : > { %s2620_s26 = smov 512   ;;  %s2621_s25 = smov 1024  }
 0xd9f   : > { %s2622_s13 = smov 32  }
 0xda0   : > { %2186 = dma.vmem_to_hbm [thread:$0]  (%p3968_p0), %s3854_s23, 1024, %s3863_s24, %s1941_s30, %s2620_s26, %s2621_s25, %s2622_s13  }
 0xda1 PF: > { %s1969_s11 = sand.u32 1, %s2571_s18   ;;  %p3969_p10 = scmp.ne.s32.totalorder %s3933_s22, 0 }
 0xda2   : > { %p3970_p1 = scmp.ge.s32.totalorder %s2583_s21, 2  ;;  %s1970_s16 = scalar_lea.sflag [#allocation4], %s1969_s11 }
 0xda4   : > { %p2206_p11 = pnand %p3970_p1, %p3969_p10 }
 0xda6   : > { %2566 = dma.done.wait (!%p2206_p11), %s1970_s16, 1024  }
 0xda7   : > { %2568 = vsyncadd (!%p2206_p11), %s1970_s16, 4294966272  ;;  %p20_p12 = scmp.ge.s32.totalorder %s2795_s10, 4   ;;  %s3971_s18 = smov %s2575_s19 }
 0xda8   : > { %s3972_s19 = smov %s2579_s20  ;;  %s3973_s20 = smov %s2806_s12 }
 0xda9   : > { %s3974_s21 = smov %s2795_s10  ;;  %22 = sbr.rel (!%p20_p12) target bundleno = 7 (0x7), region = 101 }
 0xdb0   :  { %1975 = vsyncpa [#allocation3], 1 }
 0xdb1   :  { %1977 = vsyncpa [#allocation3 + $0x1], 1 }
 0xdb2   :  { %1978 = vsyncpa [#allocation6], 1 }
 0xdb3   :  { %1979 = vsyncpa [#allocation9], 1 }
 0xdb4   :  { %1980 = vsyncpa [#allocation4], 1 }
 0xdb5   :  { %1982 = vsyncpa [#allocation4 + $0x1], 1 }

// kernel: tpu_custom_call.1
= control target key start
LH: loop header
LB: loop body
LE: loop exit
PB: predicated region body
PF: predicated region fallthrough
CT: control target
= control target key end

     0   :  { %10 = vsyncpa [#allocation3], 0  ;;  %s3907_s0 = inlined_call_operand.hbm [shape: f32[8,1024], index: 0, kind: input, shape index: {}]   ;;  %s3908_s1 = inlined_call_operand.hbm [shape: f32[16,9], index: 1, kind: input, shape index: {}]   ;;  %s3909_s2 = inlined_call_operand.hbm [shape: f32[16,44], index: 2, kind: input, shape index: {}]   ;;  %s3910_s3 = inlined_call_operand.hbm [shape: bf16[16,512], index: 3, kind: input, shape index: {}]   ;;  %s3911_s4 = inlined_call_operand.hbm [shape: f32[9,512], index: 4, kind: input, shape index: {}]   ;;  %s3912_s5 = inlined_call_operand.hbm [shape: f32[16,1024], index: 5, kind: output, shape index: {}]  }
   0x1   :  { %12 = vsyncpa [#allocation3 + $0x1], 0 }
   0x2   :  { %13 = vsyncpa [#allocation6], 0 }
   0x3   :  { %14 = vsyncpa [#allocation9], 0 }
   0x4   :  { %15 = vsyncpa [#allocation4], 0 }
   0x5   :  { %17 = vsyncpa [#allocation4 + $0x1], 0  ;;  %s2653_s18 = smov 0   ;;  %s2655_s19 = smov 0  }
   0x6   :  { %s2657_s20 = smov 0   ;;  %s2659_s21 = smov 0  }
   0x7 LB: > { %s2585_s22 = smov [#allocation5]   ;;  %s2674_s24 = sadd.s32 4294967295, %s2583_s21   ;;  %s2583_s21 = sphi %s2659_s21, %s3974_s21   ;;  %s2579_s20 = sphi %s2657_s20, %s3973_s20   ;;  %s2575_s19 = sphi %s2655_s19, %s3972_s19   ;;  %s2571_s18 = sphi %s2653_s18, %s3971_s18  }
   0x8   : > { %s176_s23 = sshll.u32 %s2585_s22, 4  ;;  %p2066_p0 = scmp.ge.s32.totalorder %s2583_s21, 1  ;;  %s2679_s23 = int_to_ptr.vmem [resolvable:$true] %s176_s23 }
   0x9   : > { %p3913_p1 = scmp.eq.s32.totalorder %s2674_s24, 0  ;;  %p164_p2 = scmp.lt.s32.totalorder %s2583_s21, 3 }
   0xa   : > { %s2586_s26 = smov [#allocation8]   ;;  %s2587_s29 = smov [#allocation7]  }
   0xb   : > { %p2681_p3 = pnand %p2066_p0, %p164_p2  ;;  %s202_s27 = sshll.u32 %s2586_s26, 4  ;;  %s2694_s27 = int_to_ptr.vmem [resolvable:$true] %s202_s27 }
   0xc   : > { %s2696_s30 = sshll.u32 %s2587_s29, 4  ;;  %s2367_s8 = scalar_lea.hbm %s3908_s1, 256  ;;  %s190_s30 = int_to_ptr.vmem [resolvable:$true] %s2696_s30 }
   0xd   : > { %s3926_s25 = scalar_select %p2681_p3, 1, 0 }
   0xe   : > { %p2188_p5 = pneg %p2681_p3  ;;  %p2368_p7 = scmp.ne.s32.totalorder %s3908_s1, %s2367_s8 }
   0xf   : > { %p2374_p11 = scmp.lt.u32.totalorder %s2367_s8, %s3908_s1 }
  0x10   : > { %p2690_p6 = pnand %p2188_p5, %p3913_p1 }
  0x12   : > { %p2706_p8 = pneg %p2690_p6 }
  0x14   : > { %p2370_p9 = pnand %p2706_p8, %p2368_p7 }
  0x16   : > { %p2371_p10 = pneg %p2370_p9 }
  0x18   : > { %p2376_p12 = pnand %p2374_p11, %p2371_p10 }
  0x1a   : > { %2379 = shalt.err (!%p2376_p12)
}
  0x1b   : > { %s2380_s14 = scalar_lea.vmem %s2679_s23, 256  ;;  %p2388_p5 = scmp.lt.s32.totalorder %s2679_s23, %s2679_s23 }
  0x1c   : > { %p2381_p13 = scmp.ne.s32.totalorder %s2679_s23, %s2380_s14  ;;  %p2389_p4 = scmp.lt.s32.totalorder %s2380_s14, %s2380_s14 }
  0x1e   : > { %p2383_p0 = pnand %p2381_p13, %p2706_p8  ;;  %p2390_p7 = por %p2389_p4, %p2388_p5 }
  0x20   : > { %p2384_p2 = pneg %p2383_p0 }
  0x22   : > { %p2391_p9 = pnand %p2390_p7, %p2384_p2 }
  0x24   : > { %2394 = shalt.err (!%p2391_p9)
}
  0x25   : > { %s2588_s15 = smov 128   ;;  %s2589_s16 = smov 8  }
  0x26   : > { %2191 = dma.hbm_to_vmem [thread:$0]  (!%p2690_p6), %s3908_s1, 256, %s2679_s23, [#allocation6], %s2588_s15, %s2588_s15, %s2589_s16  }
  0x27   : > { %s2395_s6 = scalar_lea.hbm %s3910_s3, 512 }
  0x28   : > { %p2396_p4 = scmp.ne.s32.totalorder %s3910_s3, %s2395_s6  ;;  %p2402_p12 = scmp.lt.u32.totalorder %s2395_s6, %s3910_s3 }
  0x2a   : > { %p2398_p10 = pnand %p2396_p4, %p2706_p8 }
  0x2c   : > { %p2399_p11 = pneg %p2398_p10 }
  0x2e   : > { %p2404_p13 = pnand %p2402_p12, %p2399_p11 }
  0x30   : > { %2407 = shalt.err (!%p2404_p13)
}
  0x31   : > { %s2408_s23 = scalar_lea.vmem %s2694_s27, 512  ;;  %p2416_p7 = scmp.lt.s32.totalorder %s2694_s27, %s2694_s27 }
  0x32   : > { %p2409_p0 = scmp.ne.s32.totalorder %s2694_s27, %s2408_s23  ;;  %p2417_p9 = scmp.lt.s32.totalorder %s2408_s23, %s2408_s23 }
  0x34   : > { %p2411_p2 = pnand %p2409_p0, %p2706_p8  ;;  %p2418_p4 = por %p2417_p9, %p2416_p7 }
  0x36   : > { %p2412_p5 = pneg %p2411_p2 }
  0x38   : > { %p2419_p10 = pnand %p2418_p4, %p2412_p5 }
  0x3a   : > { %2422 = shalt.err (!%p2419_p10)
}
  0x3b   : > { %s2590_s12 = smov 256   ;;  %s2591_s13 = smov 16  }
  0x3c   : > { %2197 = dma.hbm_to_vmem [thread:$0]  (!%p2690_p6), %s3910_s3, 512, %s2694_s27, [#allocation9], %s2590_s12, %s2590_s12, %s2591_s13  }
  0x3d   : > { %s2423_s29 = scalar_lea.hbm %s3909_s2, 256 }
  0x3e   : > { %p2424_p11 = scmp.ne.s32.totalorder %s3909_s2, %s2423_s29  ;;  %p2430_p0 = scmp.lt.u32.totalorder %s2423_s29, %s3909_s2 }
  0x40   : > { %p2426_p12 = pnand %p2424_p11, %p2706_p8 }
  0x42   : > { %p2427_p13 = pneg %p2426_p12 }
  0x44   : > { %p2432_p2 = pnand %p2430_p0, %p2427_p13 }
  0x46   : > { %2435 = shalt.err (!%p2432_p2)
}
  0x47   : > { %s2436_s10 = scalar_lea.vmem %s190_s30, 256  ;;  %p2444_p4 = scmp.lt.s32.totalorder %s190_s30, %s190_s30 }
  0x48   : > { %p2437_p5 = scmp.ne.s32.totalorder %s190_s30, %s2436_s10  ;;  %p2445_p10 = scmp.lt.s32.totalorder %s2436_s10, %s2436_s10 }
  0x4a   : > { %p2439_p7 = pnand %p2437_p5, %p2706_p8  ;;  %p2446_p1 = por %p2445_p10, %p2444_p4 }
  0x4c   : > { %p2440_p9 = pneg %p2439_p7 }
  0x4e   : > { %p2447_p3 = pnand %p2446_p1, %p2440_p9 }
  0x50   : > { %2450 = shalt.err (!%p2447_p3)
}
  0x51   : > { %2194 = dma.hbm_to_vmem [thread:$0]  (!%p2690_p6), %s3909_s2, 256, %s190_s30, [#allocation6], %s2588_s15, %s2588_s15, %s2589_s16  }
  0x52   : > { %s2592_s12 = smov [#allocation10]   ;;  %s2451_s22 = scalar_lea.hbm %s3911_s4, 1024 }
  0x53   : > { %s215_s13 = sshll.u32 %s2592_s12, 4  ;;  %p2452_p1 = scmp.ne.s32.totalorder %s3911_s4, %s2451_s22  ;;  %s216_s13 = int_to_ptr.vmem [resolvable:$true] %s215_s13 }
  0x54   : > { %p2458_p12 = scmp.lt.u32.totalorder %s2451_s22, %s3911_s4 }
  0x55   : > { %p2454_p3 = pnand %p2452_p1, %p2706_p8 }
  0x57   : > { %p2455_p11 = pneg %p2454_p3 }
  0x59   : > { %p2460_p13 = pnand %p2458_p12, %p2455_p11 }
  0x5b   : > { %2463 = shalt.err (!%p2460_p13)
}
  0x5c   : > { %s2464_s30 = scalar_lea.vmem %s216_s13, 1024  ;;  %p2472_p7 = scmp.lt.s32.totalorder %s216_s13, %s216_s13 }
  0x5d   : > { %p2465_p0 = scmp.ne.s32.totalorder %s216_s13, %s2464_s30  ;;  %p2473_p9 = scmp.lt.s32.totalorder %s2464_s30, %s2464_s30 }
  0x5f   : > { %p2467_p2 = pnand %p2465_p0, %p2706_p8  ;;  %p2474_p4 = por %p2473_p9, %p2472_p7 }
  0x61   : > { %p2468_p5 = pneg %p2467_p2 }
  0x63   : > { %p2475_p10 = pnand %p2474_p4, %p2468_p5 }
  0x65   : > { %2478 = shalt.err (!%p2475_p10)
}
  0x66   : > { %s2593_s15 = smov 512   ;;  %s2594_s11 = smov 32  }
  0x67   : > { %2200 = dma.hbm_to_vmem [thread:$0]  (!%p2690_p6), %s3911_s4, 1024, %s216_s13, [#allocation9], %s2593_s15, %s2593_s15, %s2594_s11  }
  0x68   : > { %s2065_s9 = sadd.s32 4294967294, %s2583_s21   ;;  %s2795_s10 = sadd.s32 1, %s2583_s21  }
  0x69   : > { %s27_s27 = ssub.s32 %s2583_s21, %s2795_s10  ;;  %s30_s23 = sadd.s32 1, %s2579_s20 }
  0x6a   : > { %p28_p8 = scmp.eq.s32.totalorder %s27_s27, 0  ;;  %p37_p1 = scmp.ne.s32.totalorder %s2579_s20, %s2575_s19 }
  0x6b   : > { %p38_p3 = scmp.eq.s32.totalorder %s2583_s21, 0  ;;  %p43_p11 = scmp.ne.s32.totalorder %s2575_s19, %s2571_s18 }
  0x6c   : > { %s2806_s12 = scalar_select %p28_p8, %s2579_s20, %s30_s23  }
  0x6d   : > { %p2808_p12 = por %p38_p3, %p37_p1  ;;  %p3930_p13 = scmp.eq.s32.totalorder %s2674_s24, 0 }
  0x6e   : > { %p151_p0 = scmp.eq.s32.totalorder %s2674_s24, 1  ;;  %p157_p2 = scmp.eq.s32.totalorder %s2065_s9, 1 }
  0x6f   : > { %p2814_p6 = por %p3930_p13, %p43_p11  ;;  %p2213_p5 = scmp.lt.s32.totalorder %s2583_s21, 2 }
  0x70   : > { %s229_s14 = sand.u32 1, %s2579_s20   ;;  %p2821_p7 = por %p151_p0, %p37_p1 }
  0x71   : > { %p2825_p9 = por %p157_p2, %p43_p11  ;;  %s2072_s26 = sshll.u32 %s229_s14, 5 }
  0x72   : > { %s3932_s17 = scalar_select %p2821_p7, 1, 0 }
  0x73   : > { %s3933_s22 = scalar_select %p2825_p9, 1, 0 }
  0x74   : > { %s2115_s29 = sshll.u32 %s2583_s21, 9  ;;  %s233_s15 = scalar_lea.vmem [#allocation2], %s2072_s26 }
  0x75   : > { %s2833_s30 = scalar_lea.hbm %s3907_s0, %s2115_s29  ;;  %s241_s11 = sshll.u32 %s233_s15, 4  ;;  %s2835_s11 = int_to_ptr.vmem [resolvable:$true] %s241_s11 }
  0x76   : > { %p2839_p4 = pnand %p2213_p5, %p2808_p12  ;;  %s230_s8 = scalar_lea.sflag [#allocation3], %s229_s14 }
  0x77   : > { %s2479_s9 = scalar_lea.hbm %s2833_s30, 512  ;;  %s2484_s26 = scalar_lea.hbm %s3907_s0, 1024 }
  0x78   : > { %p2480_p10 = scmp.ne.s32.totalorder %s2833_s30, %s2479_s9  ;;  %p2481_p8 = pneg %p2839_p4 }
  0x79   : > { %p2485_p11 = scmp.lt.u32.totalorder %s2833_s30, %s3907_s0  ;;  %p2486_p12 = scmp.lt.u32.totalorder %s2484_s26, %s2479_s9 }
  0x7a   : > { %p2482_p1 = pnand %p2481_p8, %p2480_p10  ;;  %p2488_p0 = scmp.lt.u32.totalorder %s2479_s9, %s2833_s30 }
  0x7b   : > { %p2487_p13 = por %p2486_p12, %p2485_p11 }
  0x7c   : > { %p2483_p3 = pneg %p2482_p1 }
  0x7d   : > { %p2489_p2 = por %p2488_p0, %p2487_p13 }
  0x7f   : > { %p2490_p5 = pnand %p2489_p2, %p2483_p3 }
  0x81   : > { %2493 = shalt.err (!%p2490_p5)
}
  0x82   : > { %s2494_s14 = scalar_lea.vmem %s2835_s11, 512  ;;  %s2595_s6 = smov [#allocation2]  }
  0x83   : > { %p2495_p10 = scmp.ne.s32.totalorder %s2835_s11, %s2494_s14  ;;  %s2499_s7 = sshll.u32 %s2595_s6, 4  ;;  %s2500_s7 = int_to_ptr.vmem [resolvable:$false] %s2499_s7 }
  0x84   : > { %s2501_s15 = scalar_lea.vmem %s2500_s7, 1024  ;;  %p2502_p7 = scmp.lt.s32.totalorder %s2835_s11, %s2500_s7 }
  0x85   : > { %p2497_p1 = pnand %p2495_p10, %p2481_p8  ;;  %p2503_p11 = scmp.lt.s32.totalorder %s2501_s15, %s2494_s14 }
  0x87   : > { %p2498_p9 = pneg %p2497_p1  ;;  %p2504_p12 = por %p2503_p11, %p2502_p7 }
  0x89   : > { %p2505_p13 = pnand %p2504_p12, %p2498_p9 }
  0x8b   : > { %2508 = shalt.err (!%p2505_p13)
}
  0x8c   : > { %2204 = dma.hbm_to_vmem [thread:$0]  (!%p2839_p4), %s2833_s30, 512, %s2835_s11, %s230_s8  }
  0x8d   : > { %p3935_p3 = scmp.ne.s32.totalorder %s3926_s25, 0 }
  0x8f   : > { %250 = sbr.rel (%p3935_p3) target bundleno = 3489 (0xda1), region = 40 }
  0x96   : > { %s2871_s9 = sand.u32 1, %s2575_s19  }
  0x97   : > { %s2076_s27 = sshll.u32 %s2871_s9, 5  ;;  %s253_s23 = scalar_lea.sflag [#allocation3], %s2871_s9 }
  0x98   : > { %s256_s26 = scalar_lea.vmem [#allocation2], %s2076_s27 }
  0x99   : > { %2554 = dma.done.wait (%p2814_p6), %s253_s23, 512  }
  0x9a   : > { %2556 = vsyncadd (%p2814_p6), %s253_s23, 4294966784  ;;  %p3936_p7 = scmp.eq.s32.totalorder %s2674_s24, 0 }
  0x9c   : > { %2558 = dma.done.wait (%p3936_p7), [#allocation6], 512   ;;  %p3937_p9 = pmov %p3936_p7 }
  0x9d   : > { %p3938_p4 = pmov %p3936_p7 }
  0x9e   : > { %2560 = vsyncadd (%p3937_p9), [#allocation6], 4294966784 }
  0x9f   : > { %2562 = dma.done.wait (%p3938_p4), [#allocation9], 1536   ;;  %p3939_p8 = pmov %p3938_p4 }
  0xa0   : > { %v2887_v0 = vld [vmem:[%s256_s26] sm:$0xff]  ;;  %v2889_v1 = vld [vmem:[%s256_s26 + $0x8] sm:$0xff]  ;;  %v2891_v2 = vld [vmem:[%s256_s26 + $0x10] sm:$0xff]  ;;  %v3918_v6 = vmov 0   ;;  %vm450_vm0 = vcmask 7168   ;;  %v3916_v11 = vmov 1  }
  0xa1   : > { %2564 = vsyncadd (%p3939_p8), [#allocation9], 4294965760  ;;  %v444_v3 = vadd.f32 %v2889_v1, %v2887_v0  ;;  %v2895_v4 = vld [vmem:[%s256_s26 + $0x18] sm:$0xff]  ;;  %2287 = vset.pattern.permute.xlu1 %v3918_v6  ;;  %2289 = vset.pattern.permute.xlu0 %v3918_v6  ;;  %v2910_v24 = vld [vmem:[#allocation5] sm:$0xff]  ;;  %vm345_vm1 = vcmask 1043456   ;;  %s2598_s25 = smov 17  }
  0xa2   : > { %v447_v5 = vadd.f32 %v2895_v4, %v2891_v2  ;;  %390 = vmatprep.mubr.bf16.mxu0 %v3918_v6  ;;  %433 = vmatprep.mubr.bf16.mxu1 %v3918_v6  ;;  %vm341_vm2 = vcmask 64512   ;;  %s2599_s13 = smov 16   ;;  %s2600_s30 = smov 15   ;;  %vm841_vm11 = vcmask 588800   ;;  %vm963_vm12 = vcmask 130048  }
  0xa3   : > { %445 = vadd.xlane.f32.xlu0 %v444_v3  ;;  %s2601_s11 = smov 1   ;;  %s2602_s16 = smov 127   ;;  %vm2615_vm13 = vmmov 0   ;;  %vm1803_vm14 = vcmask 31744  }
  0xa4   : > { %s2603_s8 = smov 113   ;;  %s2604_s28 = smov 112  }
  0xa5   : > { %s2605_s29 = smov 111   ;;  %s2607_s14 = smov 120  }
  0xa6   : > { %s2612_s6 = smov 104   ;;  %s2613_s7 = smov 88  }
  0xa7   : > { %448 = vadd.xlane.f32.xlu0 %v447_v5  ;;  %s2081_s15 = sshll.u32 %s2871_s9, 6  ;;  %s2116_s26 = sshll.u32 %s2674_s24, 9 }
  0xa8   : > { %s298_s27 = scalar_lea.vmem [#allocation11], %s2081_s15  ;;  %s3863_s24 = scalar_lea.hbm %s3912_s5, %s2116_s26 }
  0xa9   : > { %s1954_s23 = sshll.u32 %s298_s27, 4  ;;  %p3968_p0 = scmp.ne.s32.totalorder %s3932_s17, 0  ;;  %s3854_s23 = int_to_ptr.vmem [resolvable:$true] %s1954_s23 }
 0x130   : > { %v446_v7 = vpop.xlane.xlu0 %445 }
 0x134   : > { %v449_v8 = vpop.xlane.xlu0 %448 }
 0x135   : > { %v451_v9 = vsel %vm450_vm0, %v446_v7, %v449_v8 }
 0x136   : > { %v452_v10 = vmul.f32 0.00390625, %v451_v9 }
 0x138   : > { %455 = vperm.xlu1 %2287, %v452_v10  }
 0x13c   : > { %2288 = vset.pattern.permute.xlu1 %v3916_v11 }
 0x13d   : > { %459 = vperm.xlu1 %2288, %v452_v10  }
 0x141   : > { %2290 = vset.pattern.permute.xlu1 %v3918_v6 }
 0x1b7   : > { %v456_v12 = vpop.permute.xlu1 %455 }
 0x1b8   : > { %v462_v13 = vsub.f32 %v2887_v0, %v456_v12  ;;  %v463_v14 = vsub.f32 %v2889_v1, %v456_v12 }
 0x1ba   : > { %v466_v15 = vmul.f32 %v462_v13, %v462_v13  ;;  %v467_v16 = vmul.f32 %v463_v14, %v463_v14 }
 0x1bc   : > { %v460_v17 = vpop.permute.xlu1 %459  ;;  %v470_v18 = vadd.f32 %v467_v16, %v466_v15  ;;  %v323_v16 = vpack.c.bf16 %v2889_v1, %v2889_v1 }
 0x1bd   : > { %v464_v19 = vsub.f32 %v2891_v2, %v460_v17  ;;  %v465_v20 = vsub.f32 %v2895_v4, %v460_v17 }
 0x1be   : > { %471 = vadd.xlane.f32.xlu0 %v470_v18  ;;  %2083 = vmatprep.subr.msk.bf16.mxu0 %vm345_vm1, %v323_v16 }
 0x1bf   : > { %v468_v21 = vmul.f32 %v464_v19, %v464_v19  ;;  %v469_v22 = vmul.f32 %v465_v20, %v465_v20 }
 0x1c1   : > { %v473_v23 = vadd.f32 %v469_v22, %v468_v21  ;;  %v322_v21 = vpack.c.bf16 %v2887_v0, %v2887_v0 }
 0x1c3   : > { %474 = vadd.xlane.f32.xlu1 %v473_v23  ;;  %v347_v1 = vsel %vm345_vm1, %v322_v21, 0  ;;  %v325_v23 = vpack.c.bf16 %v2895_v4, %v2895_v4  ;;  %v3003_v4 = vld [vmem:[#allocation5 + $0x8] sm:$0xff] }
 0x1c4   : > { %359 = vmatpush1.bf16.msra.mxu0 %v347_v1 }
 0x1c5   : > { %2085 = vmatprep.subr.msk.bf16.mxu1 %vm345_vm1, %v325_v23 }
 0x1d4   : > { %481 = vperm.xlu0 %2289, %v2910_v24  }
 0x1d8   : > { %2291 = vset.pattern.permute.xlu0 %v3916_v11 }
 0x24b   : > { %v472_v25 = vpop.xlane.xlu0 %471 }
 0x250   : > { %v475_v26 = vpop.xlane.xlu1 %474 }
 0x251   : > { %v476_v27 = vsel %vm450_vm0, %v472_v25, %v475_v26  ;;  %v324_v25 = vpack.c.bf16 %v2891_v2, %v2891_v2  ;;  %v2606_v2 = vmov 4  }
 0x252   : > { %v477_v28 = vmul.f32 0.00390625, %v476_v27  ;;  %v2313_v27 = vld [vmem:[#allocation8 + $0xc] ss:$16 sps:$4 sm:$0xff]  }
 0x253   : > { %v482_v30 = vpop.permute.xlu0 %481  ;;  %v353_v0 = vsel %vm345_vm1, %v324_v25, 0  ;;  %2084 = vmatmul.mubr.msk.bf16.vlgmr.msra.gmra.mrb[0].mxu0 %vm341_vm2, %v2313_v27 }
 0x254   : > { %v478_v29 = vadd.f32 1e-05, %v477_v28  ;;  %402 = vmatpush1.bf16.msra.mxu1 %v353_v0  ;;  %889 = vmatprep.mubr.bf16.mxu0 %v3918_v6  ;;  %v550_v28 = vlaneseq }
 0x256   : > { %2319 = vrsqrt.f32 %v478_v29  ;;  %v3009_v29 = vshrl.u32 %v550_v28, 7 }
 0x257   : > { %2086 = vmatmul.mubr.msk.bf16.vlgmr.msra.gmra.mrb[0].mxu1 %vm341_vm2, %v2313_v27 }
 0x258   : > { %932 = vmatprep.mubr.bf16.mxu1 %v3918_v6 }
 0x260   : > { %v2320_v31 = vpop.eup %2319 }
 0x261   : > { %v484_v32 = vmul.f32 %v2320_v31, %v482_v30 }
 0x263   : > { %491 = vperm.xlu0 %2291, %v484_v32   ;;  %487 = vperm.xlu1 %2290, %v484_v32   ;;  %v3011_v32 = vand.u32 127, %v550_v28 }
 0x265   : > { %vm552_vm3 = vcmp.lt.s32.totalorder %v3011_v32, 17  ;;  %vm585_vm4 = vcmp.lt.s32.totalorder %v3011_v32, 16  ;;  %vm618_vm5 = vcmp.lt.s32.totalorder %v3011_v32, 15  ;;  %vm651_vm6 = vcmp.lt.s32.totalorder %v3011_v32, 1 }
 0x266   : > { %vm684_vm7 = vcmp.lt.s32.totalorder %v3011_v32, 127  ;;  %vm717_vm8 = vcmp.lt.s32.totalorder %v3011_v32, 113  ;;  %vm750_vm9 = vcmp.lt.s32.totalorder %v3011_v32, 112  ;;  %vm783_vm10 = vcmp.lt.s32.totalorder %v3011_v32, 111 }
 0x267   : > { %2292 = vset.pattern.permute.xlu1 %v3916_v11  ;;  %2293 = vset.pattern.permute.xlu0 %v2606_v2 }
 0x268   : > { %499 = vperm.xlu1 %2292, %v2910_v24  }
 0x26c   : > { %2294 = vset.pattern.permute.xlu1 %v2606_v2 }
 0x2e2   : > { %v488_v33 = vpop.permute.xlu1 %487  ;;  %v492_v34 = vpop.permute.xlu0 %491 }
 0x2e3   : > { %v496_v35 = vmul.f32 %v492_v34, %v464_v19  ;;  %v497_v36 = vmul.f32 %v492_v34, %v465_v20  ;;  %v494_v37 = vmul.f32 %v488_v33, %v462_v13  ;;  %v495_v38 = vmul.f32 %v488_v33, %v463_v14 }
 0x2e4   : > { %v559_v33 = vsub.s32 0, %v3009_v29  ;;  %v592_v34 = vsub.s32 1, %v3009_v29 }
 0x2e7   : > { %v500_v39 = vpop.permute.xlu1 %499 }
 0x2e8   : > { %v502_v40 = vadd.f32 %v500_v39, %v494_v37  ;;  %v503_v41 = vadd.f32 %v500_v39, %v495_v38  ;;  %v504_v42 = vadd.f32 %v500_v39, %v496_v35  ;;  %v505_v43 = vadd.f32 %v500_v39, %v497_v36  ;;  %v3015_v35 = vld [vmem:[#allocation10 + $0x8] sm:$0xff]  ;;  %v3018_v38 = vld [vmem:[#allocation10] sm:$0xff]  ;;  %v3020_v39 = vld [vmem:[#allocation10 + $0x10] sm:$0xff] }
 0x2ea   : > { %v506_v44 = vmul.f32 %v502_v40, %v502_v40  ;;  %v507_v45 = vmul.f32 %v503_v41, %v503_v41  ;;  %v508_v46 = vmul.f32 %v504_v42, %v504_v42  ;;  %v509_v47 = vmul.f32 %v505_v43, %v505_v43 }
 0x2ec   : > { %v510_v48 = vmul.f32 %v506_v44, %v502_v40  ;;  %v511_v49 = vmul.f32 %v507_v45, %v503_v41  ;;  %v512_v50 = vmul.f32 %v508_v46, %v504_v42  ;;  %v513_v51 = vmul.f32 %v509_v47, %v505_v43 }
 0x2ed   : > { %v3034_v45 = vrot.slane %v3018_v38, %v559_v33  ;;  %v3037_v46 = vrot.slane %v3020_v39, %v559_v33 }
 0x2ee   : > { %v514_v52 = vmul.f32 0.044715, %v510_v48  ;;  %v515_v53 = vmul.f32 0.044715, %v511_v49  ;;  %v516_v54 = vmul.f32 0.044715, %v512_v50  ;;  %v3045_v50 = vrot.slane %v3018_v38, %v592_v34 }
 0x2ef   : > { %v517_v55 = vmul.f32 0.044715, %v513_v51  ;;  %v3048_v51 = vrot.slane %v3020_v39, %v592_v34 }
 0x2f0   : > { %v518_v56 = vadd.f32 %v514_v52, %v502_v40  ;;  %v519_v57 = vadd.f32 %v515_v53, %v503_v41  ;;  %v520_v58 = vadd.f32 %v516_v54, %v504_v42 }
 0x2f1   : > { %v521_v59 = vadd.f32 %v517_v55, %v505_v43 }
 0x2f2   : > { %v522_v60 = vmul.f32 0.7978846, %v518_v56  ;;  %v523_v61 = vmul.f32 0.7978846, %v519_v57  ;;  %v524_v62 = vmul.f32 0.7978846, %v520_v58 }
 0x2f3   : > { %v525_v63 = vmul.f32 0.7978846, %v521_v59 }
 0x2f4   : > { %2321 = vtanh.f32 %v522_v60 }
 0x2f5   : > { %2323 = vtanh.f32 %v523_v61 }
 0x2f6   : > { %2325 = vtanh.f32 %v524_v62 }
 0x2f7   : > { %2327 = vtanh.f32 %v525_v63 }
 0x2fe   : > { %v2322_v3 = vpop.eup %2321 }
 0x2ff   : > { %v2324_v5 = vpop.eup %2323  ;;  %v530_v7 = vadd.f32 1.0, %v2322_v3 }
 0x300   : > { %v2326_v8 = vpop.eup %2325  ;;  %v531_v9 = vadd.f32 1.0, %v2324_v5 }
 0x301   : > { %v2328_v10 = vpop.eup %2327  ;;  %v532_v12 = vadd.f32 1.0, %v2326_v8  ;;  %v534_v13 = vmul.f32 0.5, %v530_v7 }
 0x302   : > { %v533_v14 = vadd.f32 1.0, %v2328_v10  ;;  %v535_v15 = vmul.f32 0.5, %v531_v9 }
 0x303   : > { %v536_v17 = vmul.f32 0.5, %v532_v12  ;;  %v2919_v18 = vmul.f32 %v534_v13, %v502_v40  ;;  %v3023_v40 = vrot.slane %v3015_v35, %v559_v33 }
 0x304   : > { %v537_v19 = vmul.f32 0.5, %v533_v14  ;;  %v2921_v20 = vmul.f32 %v535_v15, %v503_v41  ;;  %v3025_v41 = vld [vmem:[#allocation10 + $0x18] sm:$0xff] }
 0x305   : > { %542 = vrot.lane.b32.xlu0 %v2919_v18, %s2598_s25  ;;  %v2931_v22 = vmul.f32 %v536_v17, %v504_v42  ;;  %v3029_v42 = vrot.slane %v3015_v35, %v592_v34  ;;  %v3040_v48 = vrot.slane %v3025_v41, %v559_v33  ;;  %v3055_v55 = vrot.slane %v3025_v41, %v592_v34 }
 0x306   : > { %544 = vrot.lane.b32.xlu1 %v2921_v20, %s2598_s25  ;;  %v2937_v26 = vmul.f32 %v537_v19, %v505_v43  ;;  %v625_v17 = vsub.s32 2, %v3009_v29  ;;  %v658_v19 = vsub.s32 3, %v3009_v29 }
 0x308   : > { %v3077_v23 = vrot.slane %v3015_v35, %v625_v17  ;;  %v3081_v25 = vrot.slane %v3015_v35, %v658_v19  ;;  %v3086_v2 = vrot.slane %v3018_v38, %v625_v17  ;;  %v3089_v28 = vrot.slane %v3020_v39, %v625_v17 }
 0x309   : > { %546 = vrot.lane.b32.xlu0 %v2931_v22, %s2598_s25  ;;  %v3097_v34 = vrot.slane %v3018_v38, %v658_v19 }
 0x30a   : > { %548 = vrot.lane.b32.xlu1 %v2937_v26, %s2598_s25 }
 0x30d   : > { %577 = vrot.lane.b32.xlu0 %v2919_v18, %s2599_s13 }
 0x30e   : > { %579 = vrot.lane.b32.xlu1 %v2921_v20, %s2599_s13 }
 0x311   : > { %581 = vrot.lane.b32.xlu0 %v2931_v22, %s2599_s13 }
 0x312   : > { %583 = vrot.lane.b32.xlu1 %v2937_v26, %s2599_s13 }
 0x315   : > { %610 = vrot.lane.b32.xlu0 %v2919_v18, %s2600_s30 }
 0x316   : > { %612 = vrot.lane.b32.xlu1 %v2921_v20, %s2600_s30 }
 0x319   : > { %614 = vrot.lane.b32.xlu0 %v2931_v22, %s2600_s30 }
 0x31a   : > { %616 = vrot.lane.b32.xlu1 %v2937_v26, %s2600_s30 }
 0x31d   : > { %643 = vrot.lane.b32.xlu0 %v2919_v18, %s2601_s11 }
 0x31e   : > { %645 = vrot.lane.b32.xlu1 %v2921_v20, %s2601_s11 }
 0x321   : > { %647 = vrot.lane.b32.xlu0 %v2931_v22, %s2601_s11 }
 0x322   : > { %649 = vrot.lane.b32.xlu1 %v2937_v26, %s2601_s11 }
 0x325   : > { %676 = vrot.lane.b32.xlu0 %v2919_v18, %s2602_s16 }
 0x326   : > { %678 = vrot.lane.b32.xlu1 %v2921_v20, %s2602_s16 }
 0x329   : > { %680 = vrot.lane.b32.xlu0 %v2931_v22, %s2602_s16 }
 0x32a   : > { %682 = vrot.lane.b32.xlu1 %v2937_v26, %s2602_s16 }
 0x32d   : > { %709 = vrot.lane.b32.xlu0 %v2919_v18, %s2603_s8 }
 0x32e   : > { %711 = vrot.lane.b32.xlu1 %v2921_v20, %s2603_s8 }
 0x331   : > { %713 = vrot.lane.b32.xlu0 %v2931_v22, %s2603_s8 }
 0x332   : > { %715 = vrot.lane.b32.xlu1 %v2937_v26, %s2603_s8 }
 0x335   : > { %742 = vrot.lane.b32.xlu0 %v2919_v18, %s2604_s28 }
 0x336   : > { %744 = vrot.lane.b32.xlu1 %v2921_v20, %s2604_s28 }
 0x339   : > { %746 = vrot.lane.b32.xlu0 %v2931_v22, %s2604_s28 }
 0x33a   : > { %748 = vrot.lane.b32.xlu1 %v2937_v26, %s2604_s28 }
 0x33d   : > { %775 = vrot.lane.b32.xlu0 %v2919_v18, %s2605_s29 }
 0x33e   : > { %777 = vrot.lane.b32.xlu1 %v2921_v20, %s2605_s29 }
 0x341   : > { %779 = vrot.lane.b32.xlu0 %v2931_v22, %s2605_s29 }
 0x342   : > { %781 = vrot.lane.b32.xlu1 %v2937_v26, %s2605_s29 }
 0x345   : > { %829 = vperm.xlu0 %2293, %v2910_v24  }
 0x346   : > { %833 = vperm.xlu1 %2294, %v3003_v4  }
 0x349   : > { %2295 = vset.pattern.permute.xlu0 %v3918_v6 }
 0x34a   : > { %2296 = vset.pattern.permute.xlu1 %v3918_v6 }
 0x377   : > { %v543_v30 = vpop.permute.xlu0 %542 }
 0x378   : > { %v545_v31 = vpop.permute.xlu1 %544 }
 0x379   : > { %v555_v43 = vsel %vm552_vm3, %v543_v30, %v545_v31 }
 0x37a   : > { %v574_v52 = vmul.f32 %v3023_v40, %v555_v43 }
 0x37b   : > { %v547_v36 = vpop.permute.xlu0 %546 }
 0x37c   : > { %v549_v37 = vpop.permute.xlu1 %548  ;;  %v554_v53 = vsel %vm552_vm3, %v545_v31, %v547_v36  ;;  %v3092_v31 = vrot.slane %v3025_v41, %v625_v17 }
 0x37d   : > { %v556_v56 = vsel %vm552_vm3, %v549_v37, %v543_v30  ;;  %v553_v57 = vsel %vm552_vm3, %v547_v36, %v549_v37  ;;  %v575_v62 = vmul.f32 %v3037_v46, %v554_v53  ;;  %v3100_v36 = vrot.slane %v3020_v39, %v658_v19 }
 0x37e   : > { %v573_v7 = vmul.f32 %v3034_v45, %v556_v56  ;;  %v576_v8 = vmul.f32 %v3040_v48, %v553_v57 }
 0x37f   : > { %v578_v44 = vpop.permute.xlu0 %577 }
 0x380   : > { %v580_v47 = vpop.permute.xlu1 %579 }
 0x381   : > { %v588_v49 = vsel %vm585_vm4, %v578_v44, %v580_v47 }
 0x382   : > { %v607_v54 = vmul.f32 %v3029_v42, %v588_v49 }
 0x383   : > { %v582_v58 = vpop.permute.xlu0 %581 }
 0x384   : > { %v584_v59 = vpop.permute.xlu1 %583  ;;  %v587_v60 = vsel %vm585_vm4, %v580_v47, %v582_v58  ;;  %v809_v61 = vpack.c.bf16 %v607_v54, %v574_v52  ;;  %v3107_v47 = vrot.slane %v3025_v41, %v658_v19 }
 0x385   : > { %v589_v63 = vsel %vm585_vm4, %v584_v59, %v578_v44  ;;  %v586_v3 = vsel %vm585_vm4, %v582_v58, %v584_v59  ;;  %v608_v5 = vmul.f32 %v3048_v51, %v587_v60  ;;  %v691_v58 = vsub.s32 5, %v3009_v29 }
 0x386   : > { %v606_v9 = vmul.f32 %v3045_v50, %v589_v63  ;;  %v609_v10 = vmul.f32 %v3055_v55, %v586_v3  ;;  %857 = vmatprep.subr.bf16.mxu0 %v809_v61 }
 0x387   : > { %v810_v12 = vpack.c.bf16 %v608_v5, %v575_v62  ;;  %v611_v13 = vpop.permute.xlu0 %610  ;;  %v3136_v17 = vrot.slane %v3025_v41, %v691_v58  ;;  %v3139_v19 = vrot.slane %v3020_v39, %v691_v58 }
 0x388   : > { %v808_v14 = vpack.c.bf16 %v606_v9, %v573_v7  ;;  %v613_v15 = vpop.permute.xlu1 %612  ;;  %v811_v16 = vpack.c.bf16 %v609_v10, %v576_v8 }
 0x389   : > { %v621_v0 = vsel %vm618_vm5, %v611_v13, %v613_v15 }
 0x38a   : > { %858 = vmatpush1.bf16.msra.mxu0 %v808_v14  ;;  %900 = vmatprep.subr.bf16.mxu1 %v811_v16  ;;  %v640_v37 = vmul.f32 %v3077_v23, %v621_v0  ;;  %v3133_v16 = vrot.slane %v3015_v35, %v691_v58 }
 0x38b   : > { %901 = vmatpush1.bf16.msra.mxu1 %v810_v12  ;;  %v615_v21 = vpop.permute.xlu0 %614 }
 0x38c   : > { %v617_v1 = vpop.permute.xlu1 %616  ;;  %v620_v43 = vsel %vm618_vm5, %v613_v15, %v615_v21 }
 0x38d   : > { %v622_v49 = vsel %vm618_vm5, %v617_v1, %v611_v13  ;;  %v619_v52 = vsel %vm618_vm5, %v615_v21, %v617_v1  ;;  %v641_v59 = vmul.f32 %v3089_v28, %v620_v43  ;;  %v3128_v13 = vrot.slane %v3018_v38, %v691_v58 }
 0x38e   : > { %v639_v63 = vmul.f32 %v3086_v2, %v622_v49  ;;  %v642_v3 = vmul.f32 %v3092_v31, %v619_v52 }
 0x38f   : > { %v644_v27 = vpop.permute.xlu0 %643 }
 0x390   : > { %v646_v30 = vpop.permute.xlu1 %645 }
 0x391   : > { %v654_v33 = vsel %vm651_vm6, %v644_v27, %v646_v30 }
 0x392   : > { %v673_v44 = vmul.f32 %v3081_v25, %v654_v33 }
 0x393   : > { %v648_v53 = vpop.permute.xlu0 %647 }
 0x394   : > { %v650_v54 = vpop.permute.xlu1 %649  ;;  %v653_v56 = vsel %vm651_vm6, %v646_v30, %v648_v53  ;;  %v813_v57 = vpack.c.bf16 %v673_v44, %v640_v37 }
 0x395   : > { %v655_v60 = vsel %vm651_vm6, %v650_v54, %v644_v27  ;;  %v652_v61 = vsel %vm651_vm6, %v648_v53, %v650_v54  ;;  %v674_v62 = vmul.f32 %v3100_v36, %v653_v56 }
 0x396   : > { %v672_v5 = vmul.f32 %v3097_v34, %v655_v60  ;;  %v675_v7 = vmul.f32 %v3107_v47, %v652_v61  ;;  %859 = vmatprep.subr.bf16.mxu0 %v813_v57  ;;  %v757_v61 = vsub.s32 7, %v3009_v29 }
 0x397   : > { %v814_v8 = vpack.c.bf16 %v674_v62, %v641_v59  ;;  %v677_v9 = vpop.permute.xlu0 %676  ;;  %v724_v59 = vsub.s32 6, %v3009_v29 }
 0x398   : > { %v812_v10 = vpack.c.bf16 %v672_v5, %v639_v63  ;;  %v679_v12 = vpop.permute.xlu1 %678  ;;  %v815_v14 = vpack.c.bf16 %v675_v7, %v642_v3  ;;  %v3166_v62 = vrot.slane %v3018_v38, %v757_v61  ;;  %v3176_v5 = vrot.slane %v3015_v35, %v757_v61 }
 0x399   : > { %v687_v15 = vsel %vm684_vm7, %v677_v9, %v679_v12  ;;  %v3171_v29 = vrot.slane %v3015_v35, %v724_v59  ;;  %v3179_v7 = vrot.slane %v3020_v39, %v724_v59 }
 0x39a   : > { %860 = vmatpush1.bf16.msra.mxu0 %v812_v10  ;;  %902 = vmatprep.subr.bf16.mxu1 %v815_v14  ;;  %v705_v1 = vmul.f32 %v3128_v13, %v687_v15  ;;  %3940 = vst [vmem:[#allocation16_spill] sm:$0xff] %v3166_v62 }
 0x39b   : > { %903 = vmatpush1.bf16.msra.mxu1 %v814_v8  ;;  %v681_v21 = vpop.permute.xlu0 %680 }
 0x39c   : > { %v683_v0 = vpop.permute.xlu1 %682  ;;  %v686_v27 = vsel %vm684_vm7, %v679_v12, %v681_v21  ;;  %v816_v53 = vpack.c.bf16 %v705_v1, %v2919_v18 }
 0x39d   : > { %v688_v30 = vsel %vm684_vm7, %v683_v0, %v677_v9  ;;  %v685_v33 = vsel %vm684_vm7, %v681_v21, %v683_v0  ;;  %v706_v37 = vmul.f32 %v3133_v16, %v686_v27  ;;  %v3187_v9 = vrot.slane %v3020_v39, %v757_v61 }
 0x39e   : > { %v708_v43 = vmul.f32 %v3136_v17, %v688_v30  ;;  %v707_v44 = vmul.f32 %v3139_v19, %v685_v33 }
 0x39f   : > { %v710_v49 = vpop.permute.xlu0 %709  ;;  %v817_v52 = vpack.c.bf16 %v706_v37, %v2921_v20  ;;  %v3160_v20 = vrot.slane %v3018_v38, %v724_v59  ;;  %v3184_v38 = vrot.slane %v3025_v41, %v757_v61  ;;  %v2090_v61 = vld [vmem:[#allocation10 + $0x38] ss:$0 sm:$0xff] }
 0x3a0   : > { %v818_v54 = vpack.c.bf16 %v707_v44, %v2931_v22  ;;  %v712_v56 = vpop.permute.xlu1 %711  ;;  %v819_v57 = vpack.c.bf16 %v708_v43, %v2937_v26  ;;  %v3163_v22 = vrot.slane %v3025_v41, %v724_v59  ;;  %v2087_v44 = vld [vmem:[#allocation10 + $0x20] ss:$0 sm:$0xff] }
 0x3a1   : > { %861 = vmatprep.subr.bf16.mxu0 %v817_v52  ;;  %v720_v63 = vsel %vm717_vm8, %v710_v49, %v712_v56 }
 0x3a2   : > { %904 = vmatprep.subr.bf16.mxu1 %v819_v57  ;;  %862 = vmatpush1.bf16.msra.mxu0 %v816_v53  ;;  %v738_v14 = vmul.f32 %v3160_v20, %v720_v63 }
 0x3a3   : > { %905 = vmatpush1.bf16.msra.mxu1 %v818_v54  ;;  %v714_v58 = vpop.permute.xlu0 %713 }
 0x3a4   : > { %v716_v60 = vpop.permute.xlu1 %715  ;;  %v719_v8 = vsel %vm717_vm8, %v712_v56, %v714_v58 }
 0x3a5   : > { %v721_v10 = vsel %vm717_vm8, %v716_v60, %v710_v49  ;;  %v718_v12 = vsel %vm717_vm8, %v714_v58, %v716_v60  ;;  %v739_v39 = vmul.f32 %v3171_v29, %v719_v8  ;;  %v2088_v60 = vld [vmem:[#allocation10 + $0x28] ss:$0 sm:$0xff] }
 0x3a6   : > { %v741_v30 = vmul.f32 %v3163_v22, %v721_v10  ;;  %v740_v33 = vmul.f32 %v3179_v7, %v718_v12 }
 0x3a7   : > { %v743_v18 = vpop.permute.xlu0 %742 }
 0x3a8   : > { %v745_v26 = vpop.permute.xlu1 %744 }
 0x3a9   : > { %v753_v3 = vsel %vm750_vm9, %v743_v18, %v745_v26 }
 0x3aa   : > { %v771_v15 = vmul.f32 %v3166_v62, %v753_v3 }
 0x3ab   : > { %v747_v35 = vpop.permute.xlu0 %746 }
 0x3ac   : > { %v749_v21 = vpop.permute.xlu1 %748  ;;  %v752_v1 = vsel %vm750_vm9, %v745_v26, %v747_v35  ;;  %v820_v53 = vpack.c.bf16 %v771_v15, %v738_v14 }
 0x3ad   : > { %v754_v41 = vsel %vm750_vm9, %v749_v21, %v743_v18  ;;  %v751_v0 = vsel %vm750_vm9, %v747_v35, %v749_v21  ;;  %v772_v27 = vmul.f32 %v3176_v5, %v752_v1  ;;  %v2089_v18 = vld [vmem:[#allocation10 + $0x30] ss:$0 sm:$0xff] }
 0x3ae   : > { %v774_v37 = vmul.f32 %v3184_v38, %v754_v41  ;;  %v773_v43 = vmul.f32 %v3187_v9, %v751_v0  ;;  %v2315_v0 = vld [vmem:[#allocation8] ss:$16 sps:$4 sm:$0xff]  }
 0x3af   : > { %v776_v49 = vpop.permute.xlu0 %775  ;;  %v821_v52 = vpack.c.bf16 %v772_v27, %v739_v39 }
 0x3b0   : > { %v822_v54 = vpack.c.bf16 %v773_v43, %v740_v33  ;;  %v778_v56 = vpop.permute.xlu1 %777  ;;  %v823_v57 = vpack.c.bf16 %v774_v37, %v741_v30  ;;  %v3220_v30 = vpop.f32.mrb[0].mxu0 }
 0x3b1   : > { %v786_v58 = vsel %vm783_vm10, %v776_v49, %v778_v56  ;;  %863 = vmatprep.subr.bf16.mxu0 %v821_v52  ;;  %3941 = vst [vmem:[#allocation17_spill] sm:$0xff] %v3220_v30  ;;  %v3222_v33 = vpop.f32.mrb[0].mxu1  ;;  %v3224_v37 = vpop.f32.mrb[1].mxu0 }
 0x3b2   : > { %v804_v59 = vmul.f32 %v2087_v44, %v786_v58  ;;  %906 = vmatprep.subr.bf16.mxu1 %v823_v57  ;;  %864 = vmatpush1.bf16.msra.mxu0 %v820_v53  ;;  %3942 = vst [vmem:[#allocation18_spill] sm:$0xff] %v3222_v33  ;;  %3943 = vst [vmem:[#allocation19_spill] sm:$0xff] %v3224_v37  ;;  %v3226_v43 = vpop.f32.mrb[1].mxu1  ;;  %v3228_v44 = vpop.f32.mrb[2].mxu0 }
 0x3b3   : > { %907 = vmatpush1.bf16.msra.mxu1 %v822_v54  ;;  %v780_v26 = vpop.permute.xlu0 %779  ;;  %3944 = vst [vmem:[#allocation20_spill] sm:$0xff] %v3226_v43  ;;  %3945 = vst [vmem:[#allocation21_spill] sm:$0xff] %v3228_v44  ;;  %v3232_v52 = vpop.f32.mrb[3].mxu0 }
 0x3b4   : > { %v782_v63 = vpop.permute.xlu1 %781  ;;  %v785_v3 = vsel %vm783_vm10, %v778_v56, %v780_v26  ;;  %v824_v8 = vpack.c.bf16 %v804_v59, %v804_v59  ;;  %3947 = vst [vmem:[#allocation23_spill] sm:$0xff] %v3232_v52 }
 0x3b5   : > { %v787_v10 = vsel %vm783_vm10, %v782_v63, %v776_v49  ;;  %v784_v12 = vsel %vm783_vm10, %v780_v26, %v782_v63  ;;  %v805_v35 = vmul.f32 %v2088_v60, %v785_v3  ;;  %v3230_v49 = vpop.f32.mrb[2].mxu1 }
 0x3b6   : > { %v807_v14 = vmul.f32 %v2090_v61, %v787_v10  ;;  %v806_v15 = vmul.f32 %v2089_v18, %v784_v12  ;;  %v846_v41 = vsel %vm345_vm1, %v824_v8, 0  ;;  %3946 = vst [vmem:[#allocation22_spill] sm:$0xff] %v3230_v49  ;;  %v3234_v53 = vpop.f32.mrb[3].mxu1 }
 0x3b7   : > { %v825_v21 = vpack.c.bf16 %v805_v35, %v805_v35  ;;  %3948 = vst [vmem:[#allocation24_spill] sm:$0xff] %v3234_v53 }
 0x3b8   : > { %v827_v1 = vpack.c.bf16 %v807_v14, %v807_v14  ;;  %v826_v39 = vpack.c.bf16 %v806_v15, %v806_v15 }
 0x3b9   : > { %2092 = vmatprep.subr.msk.bf16.mxu0 %vm345_vm1, %v825_v21 }
 0x3ba   : > { %2094 = vmatprep.subr.msk.bf16.mxu1 %vm345_vm1, %v827_v1  ;;  %866 = vmatpush1.bf16.msra.mxu0 %v846_v41  ;;  %v852_v27 = vsel %vm345_vm1, %v826_v39, 0 }
 0x3bb   : > { %909 = vmatpush1.bf16.msra.mxu1 %v852_v27  ;;  %v309_v27 = vld [vmem:[#allocation7 + $0x8] sm:$0xff] }
 0x3bd   : > { %2093 = vmatmul.mubr.msk.bf16.vlgmr.msra.gmra.mrb[4].mxu0 %vm841_vm11, %v2315_v0 }
 0x3be   : > { %2095 = vmatmul.mubr.msk.bf16.vlgmr.msra.gmra.mrb[4].mxu1 %vm841_vm11, %v2315_v0 }
 0x3c4   : > { %v830_v54 = vpop.permute.xlu0 %829 }
 0x3c5   : > { %v834_v57 = vpop.permute.xlu1 %833 }
 0x490   : > { %v891_v56 = vpop.f32.mrb[4].mxu0 }
 0x491   : > { %v934_v58 = vpop.f32.mrb[4].mxu1  ;;  %v892_v59 = vadd.f32 %v891_v56, %v830_v54  ;;  %v893_v60 = vpop.f32.mrb[5].mxu0  ;;  %v308_v56 = vld [vmem:[#allocation7] sm:$0xff] }
 0x492   : > { %v894_v61 = vadd.f32 %v893_v60, %v830_v54  ;;  %v936_v18 = vpop.f32.mrb[5].mxu1  ;;  %v895_v26 = vpop.f32.mrb[6].mxu0  ;;  %v935_v63 = vadd.f32 %v934_v58, %v830_v54 }
 0x493   : > { %v937_v3 = vadd.f32 %v936_v18, %v830_v54  ;;  %v938_v8 = vpop.f32.mrb[6].mxu1  ;;  %v897_v10 = vpop.f32.mrb[7].mxu0  ;;  %v896_v15 = vadd.f32 %v895_v26, %v834_v57 }
 0x494   : > { %v939_v12 = vadd.f32 %v938_v8, %v834_v57  ;;  %v940_v35 = vpop.f32.mrb[7].mxu1  ;;  %v943_v14 = vadd.f32 %v894_v61, %v892_v59  ;;  %v898_v21 = vadd.f32 %v897_v10, %v834_v57 }
 0x495   : > { %v941_v1 = vadd.f32 %v940_v35, %v834_v57  ;;  %v949_v39 = vadd.f32 %v937_v3, %v935_v63 }
 0x496   : > { %944 = vadd.xlane.f32.xlu1 %v943_v14  ;;  %v946_v0 = vadd.f32 %v898_v21, %v896_v15 }
 0x497   : > { %950 = vadd.xlane.f32.xlu0 %v949_v39  ;;  %v952_v41 = vadd.f32 %v941_v1, %v939_v12 }
 0x49a   : > { %953 = vadd.xlane.f32.xlu1 %v952_v41 }
 0x49b   : > { %947 = vadd.xlane.f32.xlu0 %v946_v0 }
 0x4ab   : > { %961 = vrot.lane.b32.xlu1 %v309_v27, %s2607_s14 }
 0x4b1   : > { %959 = vrot.lane.b32.xlu0 %v308_v56, %s2607_s14 }
 0x523   : > { %v945_v54 = vpop.xlane.xlu1 %944 }
 0x524   : > { %v951_v58 = vpop.xlane.xlu0 %950 }
 0x525   : > { %v955_v26 = vsel %vm450_vm0, %v945_v54, %v951_v58 }
 0x527   : > { %v954_v60 = vpop.xlane.xlu1 %953 }
 0x528   : > { %v948_v18 = vpop.xlane.xlu0 %947 }
 0x529   : > { %v956_v57 = vsel %vm450_vm0, %v948_v18, %v954_v60 }
 0x52a   : > { %v2157_v8 = vpack.c.bf16 %v956_v57, %v955_v26 }
 0x52b   : > { %v962_v35 = vpop.permute.xlu1 %961 }
 0x52c   : > { %2158 = vmatprep.subr.bf16.mxu0 %v2157_v8  ;;  %v960_v10 = vpop.permute.xlu0 %959 }
 0x52d   : > { %2160 = vmatpush3.bf16.msra.mxu0 %v2157_v8  ;;  %2135 = vmatprep.mubr.msk.f32.mxu0 %vm963_vm12, %v960_v10 }
 0x52e   : > { %2142 = vmatprep.mubr.msk.f32.mxu1 %vm963_vm12, %v960_v10 }
 0x530   : > { %2136 = vmatmul.mubr.msk.f32.vlgmr.msra.gmra.mrb[8].mxu0 %vm963_vm12, %v962_v35 }
 0x603   : > { %v2137_v14 = vpop.f32.mrb[8].mxu0 }
 0x604   : > { %1050 = vperm.xlu0 %2295, %v2137_v14   ;;  %v1034_v39 = vpop.f32.mrb[9].mxu0 }
 0x605   : > { %1045 = vperm.xlu1 %2296, %v1034_v39  }
 0x609   : > { %2297 = vset.pattern.permute.xlu1 %v3916_v11 }
 0x60a   : > { %1054 = vperm.xlu1 %2297, %v1034_v39  }
 0x60e   : > { %1058 = vperm.xlu1 %2297, %v2137_v14  }
 0x683   : > { %v1051_v41 = vpop.permute.xlu0 %1050 }
 0x684   : > { %v3242_v0 = vsub.f32 %v896_v15, %v1051_v41  ;;  %v3244_v27 = vsub.f32 %v898_v21, %v1051_v41  ;;  %v1046_v56 = vpop.permute.xlu1 %1045 }
 0x685   : > { %v3246_v54 = vsub.f32 %v892_v59, %v1046_v56  ;;  %v3248_v58 = vsub.f32 %v894_v61, %v1046_v56 }
 0x686   : > { %v1073_v60 = vmul.f32 %v3242_v0, %v3242_v0  ;;  %v1074_v18 = vmul.f32 %v3244_v27, %v3244_v27 }
 0x687   : > { %v1069_v26 = vmul.f32 %v3246_v54, %v3246_v54  ;;  %v1070_v15 = vmul.f32 %v3248_v58, %v3248_v58 }
 0x688   : > { %v1080_v57 = vadd.f32 %v1074_v18, %v1073_v60 }
 0x689   : > { %v1055_v21 = vpop.permute.xlu1 %1054  ;;  %v1077_v8 = vadd.f32 %v1070_v15, %v1069_v26 }
 0x68a   : > { %v3258_v10 = vsub.f32 %v935_v63, %v1055_v21  ;;  %v3260_v59 = vsub.f32 %v937_v3, %v1055_v21  ;;  %1081 = vadd.xlane.f32.xlu1 %v1080_v57  ;;  %v2608_v63 = vmov 2  }
 0x68b   : > { %1078 = vadd.xlane.f32.xlu0 %v1077_v8  ;;  %2298 = vset.pattern.permute.xlu1 %v2608_v63  ;;  %v2609_v8 = vmov 3  }
 0x68c   : > { %v1071_v61 = vmul.f32 %v3258_v10, %v3258_v10  ;;  %v1072_v14 = vmul.f32 %v3260_v59, %v3260_v59  ;;  %2299 = vset.pattern.permute.xlu0 %v2608_v63 }
 0x68d   : > { %v1059_v39 = vpop.permute.xlu1 %1058 }
 0x68e   : > { %v1067_v41 = vsub.f32 %v939_v12, %v1059_v39  ;;  %v1068_v56 = vsub.f32 %v941_v1, %v1059_v39  ;;  %v1083_v11 = vadd.f32 %v1072_v14, %v1071_v61 }
 0x690   : > { %1084 = vadd.xlane.f32.xlu0 %v1083_v11  ;;  %v1075_v60 = vmul.f32 %v1067_v41, %v1067_v41  ;;  %v1076_v18 = vmul.f32 %v1068_v56, %v1068_v56 }
 0x692   : > { %v1086_v26 = vadd.f32 %v1076_v18, %v1075_v60 }
 0x694   : > { %1087 = vadd.xlane.f32.xlu0 %v1086_v26 }
 0x69b   : > { %1169 = vperm.xlu1 %2298, %v2910_v24  }
 0x69f   : > { %2300 = vset.pattern.permute.xlu1 %v2609_v8 }
 0x6a0   : > { %1205 = vperm.xlu1 %2300, %v2910_v24  }
 0x6a4   : > { %1209 = vperm.xlu1 %2300, %v3003_v4  }
 0x6a8   : > { %2301 = vset.pattern.permute.xlu1 %v3918_v6 }
 0x6aa   : > { %1173 = vperm.xlu0 %2299, %v3003_v4  }
 0x717   : > { %v1082_v57 = vpop.xlane.xlu1 %1081 }
 0x718   : > { %v1079_v3 = vpop.xlane.xlu0 %1078 }
 0x71d   : > { %v1085_v15 = vpop.xlane.xlu0 %1084 }
 0x71e   : > { %v1089_v12 = vsel %vm450_vm0, %v1079_v3, %v1085_v15  ;;  %v3949_v3 = vmov 1   ;;  %v1170_v15 = vpop.permute.xlu1 %1169 }
 0x721   : > { %v1088_v21 = vpop.xlane.xlu0 %1087 }
 0x722   : > { %v1090_v1 = vsel %vm450_vm0, %v1082_v57, %v1088_v21  ;;  %v1206_v4 = vpop.permute.xlu1 %1205 }
 0x723   : > { %v2161_v11 = vpack.c.bf16 %v1090_v1, %v1089_v12 }
 0x725   : > { %2162 = vmatprep.subr.bf16.mxu1 %v2161_v11 }
 0x726   : > { %2164 = vmatpush3.bf16.msra.mxu1 %v2161_v11  ;;  %v1210_v57 = vpop.permute.xlu1 %1209 }
 0x729   : > { %2143 = vmatmul.mubr.msk.f32.vlgmr.msra.gmra.mrb[8].mxu1 %vm963_vm12, %v962_v35  ;;  %v1174_v18 = vpop.permute.xlu0 %1173 }
 0x7fc   : > { %v2144_v61 = vpop.f32.mrb[8].mxu1 }
 0x7fd   : > { %v1163_v14 = vadd.f32 1e-05, %v2144_v61  ;;  %v1157_v39 = vpop.f32.mrb[9].mxu1 }
 0x7fe   : > { %v1158_v60 = vadd.f32 1e-05, %v1157_v39 }
 0x7ff   : > { %2329 = vrsqrt.f32 %v1163_v14 }
 0x800   : > { %2331 = vrsqrt.f32 %v1158_v60 }
 0x809   : > { %v2330_v26 = vpop.eup %2329 }
 0x80a   : > { %v1177_v63 = vmul.f32 %v2330_v26, %v1174_v18  ;;  %v2332_v35 = vpop.eup %2331 }
 0x80b   : > { %v1176_v24 = vmul.f32 %v2332_v35, %v1170_v15 }
 0x80c   : > { %1185 = vperm.xlu1 %2301, %v1177_v63  }
 0x810   : > { %2302 = vset.pattern.permute.xlu1 %v3949_v3 }
 0x811   : > { %1193 = vperm.xlu1 %2302, %v1177_v63  }
 0x815   : > { %2303 = vset.pattern.permute.xlu1 %v3918_v6 }
 0x816   : > { %1180 = vperm.xlu1 %2303, %v1176_v24  }
 0x81a   : > { %2304 = vset.pattern.permute.xlu1 %v3949_v3 }
 0x81b   : > { %1189 = vperm.xlu1 %2304, %v1176_v24  }
 0x88b   : > { %v1186_v21 = vpop.permute.xlu1 %1185 }
 0x88c   : > { %v1200_v12 = vmul.f32 %v1186_v21, %v3242_v0  ;;  %v1201_v1 = vmul.f32 %v1186_v21, %v3244_v27 }
 0x88e   : > { %v3279_v11 = vadd.f32 %v1210_v57, %v1200_v12  ;;  %v3281_v8 = vadd.f32 %v1210_v57, %v1201_v1 }
 0x890   : > { %v1224_v61 = vmul.f32 %v3279_v11, %v3279_v11  ;;  %v1225_v14 = vmul.f32 %v3281_v8, %v3281_v8  ;;  %v1194_v39 = vpop.permute.xlu1 %1193 }
 0x891   : > { %v1202_v60 = vmul.f32 %v1194_v39, %v1067_v41  ;;  %v1203_v18 = vmul.f32 %v1194_v39, %v1068_v56 }
 0x892   : > { %v1232_v26 = vmul.f32 %v1224_v61, %v3279_v11  ;;  %v1233_v63 = vmul.f32 %v1225_v14, %v3281_v8 }
 0x893   : > { %v3289_v0 = vadd.f32 %v1210_v57, %v1202_v60  ;;  %v3291_v27 = vadd.f32 %v1210_v57, %v1203_v18 }
 0x894   : > { %v1240_v35 = vmul.f32 0.044715, %v1232_v26  ;;  %v1241_v15 = vmul.f32 0.044715, %v1233_v63 }
 0x895   : > { %v1226_v24 = vmul.f32 %v3289_v0, %v3289_v0  ;;  %v1227_v21 = vmul.f32 %v3291_v27, %v3291_v27  ;;  %v1181_v12 = vpop.permute.xlu1 %1180 }
 0x896   : > { %v1248_v41 = vadd.f32 %v1240_v35, %v3279_v11  ;;  %v1249_v56 = vadd.f32 %v1241_v15, %v3281_v8  ;;  %v1196_v1 = vmul.f32 %v1181_v12, %v3246_v54  ;;  %v1197_v61 = vmul.f32 %v1181_v12, %v3248_v58 }
 0x897   : > { %v1234_v57 = vmul.f32 %v1226_v24, %v3289_v0  ;;  %v1235_v14 = vmul.f32 %v1227_v21, %v3291_v27 }
 0x898   : > { %v1256_v39 = vmul.f32 0.7978846, %v1248_v41  ;;  %v1257_v60 = vmul.f32 0.7978846, %v1249_v56  ;;  %v3303_v18 = vadd.f32 %v1206_v4, %v1196_v1  ;;  %v3305_v26 = vadd.f32 %v1206_v4, %v1197_v61 }
 0x899   : > { %v1242_v63 = vmul.f32 0.044715, %v1234_v57  ;;  %v1243_v6 = vmul.f32 0.044715, %v1235_v14 }
 0x89a   : > { %2333 = vtanh.f32 %v1256_v39  ;;  %v1220_v35 = vmul.f32 %v3303_v18, %v3303_v18  ;;  %v1221_v54 = vmul.f32 %v3305_v26, %v3305_v26  ;;  %v1190_v58 = vpop.permute.xlu1 %1189 }
 0x89b   : > { %2335 = vtanh.f32 %v1257_v60  ;;  %v1250_v15 = vadd.f32 %v1242_v63, %v3289_v0  ;;  %v1251_v24 = vadd.f32 %v1243_v6, %v3291_v27  ;;  %v1198_v21 = vmul.f32 %v1190_v58, %v3258_v10 }
 0x89c   : > { %v1228_v12 = vmul.f32 %v1220_v35, %v3303_v18  ;;  %v1229_v41 = vmul.f32 %v1221_v54, %v3305_v26  ;;  %v1199_v56 = vmul.f32 %v1190_v58, %v3260_v59 }
 0x89d   : > { %v1258_v1 = vmul.f32 0.7978846, %v1250_v15  ;;  %v1259_v61 = vmul.f32 0.7978846, %v1251_v24  ;;  %v1214_v57 = vadd.f32 %v1206_v4, %v1198_v21 }
 0x89e   : > { %v1237_v14 = vmul.f32 0.044715, %v1229_v41  ;;  %v1215_v39 = vadd.f32 %v1206_v4, %v1199_v56  ;;  %v1236_v53 = vmul.f32 0.044715, %v1228_v12 }
 0x89f   : > { %2337 = vtanh.f32 %v1258_v1  ;;  %v1222_v60 = vmul.f32 %v1214_v57, %v1214_v57 }
 0x8a0   : > { %2339 = vtanh.f32 %v1259_v61  ;;  %v1245_v63 = vadd.f32 %v1237_v14, %v3305_v26  ;;  %v1223_v6 = vmul.f32 %v1215_v39, %v1215_v39  ;;  %v1244_v35 = vadd.f32 %v1236_v53, %v3303_v18 }
 0x8a1   : > { %v1230_v49 = vmul.f32 %v1222_v60, %v1214_v57 }
 0x8a2   : > { %v1253_v10 = vmul.f32 0.7978846, %v1245_v63  ;;  %v1231_v37 = vmul.f32 %v1223_v6, %v1215_v39  ;;  %v1252_v41 = vmul.f32 0.7978846, %v1244_v35 }
 0x8a3   : > { %v1238_v54 = vmul.f32 0.044715, %v1230_v49 }
 0x8a4   : > { %v2334_v30 = vpop.eup %2333  ;;  %v1239_v59 = vmul.f32 0.044715, %v1231_v37  ;;  %2341 = vtanh.f32 %v1253_v10 }
 0x8a5   : > { %v2336_v58 = vpop.eup %2335  ;;  %v1272_v15 = vadd.f32 1.0, %v2334_v30  ;;  %v1246_v24 = vadd.f32 %v1238_v54, %v1214_v57 }
 0x8a6   : > { %v1273_v4 = vadd.f32 1.0, %v2336_v58  ;;  %v1247_v21 = vadd.f32 %v1239_v59, %v1215_v39 }
 0x8a7   : > { %v1280_v12 = vmul.f32 0.5, %v1272_v15  ;;  %v1254_v56 = vmul.f32 0.7978846, %v1246_v24 }
 0x8a8   : > { %v1255_v1 = vmul.f32 0.7978846, %v1247_v21  ;;  %v1281_v14 = vmul.f32 0.5, %v1273_v4 }
 0x8a9   : > { %v2338_v61 = vpop.eup %2337  ;;  %v3320_v60 = vmul.f32 %v1280_v12, %v3279_v11  ;;  %2343 = vtanh.f32 %v1254_v56 }
 0x8aa   : > { %v2340_v53 = vpop.eup %2339  ;;  %v1274_v49 = vadd.f32 1.0, %v2338_v61  ;;  %2345 = vtanh.f32 %v1255_v1  ;;  %v3325_v30 = vmul.f32 %v1281_v14, %v3281_v8  ;;  %v2317_v61 = vld [vmem:[#allocation8 + $0x8] ss:$16 sps:$4 sm:$0xff]  }
 0x8ab   : > { %2347 = vtanh.f32 %v1252_v41  ;;  %1294 = vrot.lane.b32.xlu1 %v3320_v60, %s2598_s25  ;;  %v1275_v37 = vadd.f32 1.0, %v2340_v53  ;;  %2102 = vmatprep.mubr.msk.bf16.mxu0 %vm963_vm12, %v2317_v61 }
 0x8ac   : > { %v1282_v63 = vmul.f32 0.5, %v1274_v49  ;;  %2103 = vmatprep.mubr.msk.bf16.mxu1 %vm963_vm12, %v2317_v61 }
 0x8ad   : > { %v1283_v11 = vmul.f32 0.5, %v1275_v37 }
 0x8ae   : > { %v2342_v6 = vpop.eup %2341  ;;  %v3330_v35 = vmul.f32 %v1282_v63, %v3289_v0  ;;  %v2610_v63 = vmov 5  }
 0x8af   : > { %1298 = vrot.lane.b32.xlu1 %v3325_v30, %s2598_s25  ;;  %v1269_v10 = vadd.f32 1.0, %v2342_v6  ;;  %v3338_v4 = vmul.f32 %v1283_v11, %v3291_v27  ;;  %2305 = vset.pattern.permute.xlu0 %v2610_v63 }
 0x8b0   : > { %2306 = vset.pattern.permute.xlu1 %v2610_v63 }
 0x8b1   : > { %v1277_v54 = vmul.f32 0.5, %v1269_v10 }
 0x8b3   : > { %v2344_v59 = vpop.eup %2343  ;;  %1302 = vrot.lane.b32.xlu1 %v3330_v35, %s2598_s25  ;;  %v3335_v8 = vmul.f32 %v1277_v54, %v3305_v26 }
 0x8b4   : > { %v2346_v58 = vpop.eup %2345  ;;  %v1270_v15 = vadd.f32 1.0, %v2344_v59  ;;  %v3486_v59 = vld [vmem:[#allocation5 + $0x8] sm:$0xff] }
 0x8b5   : > { %v2348_v24 = vpop.eup %2347  ;;  %v1271_v21 = vadd.f32 1.0, %v2346_v58  ;;  %1296 = vrot.lane.b32.xlu0 %v3335_v8, %s2598_s25  ;;  %3950 = vst [vmem:[#allocation25_spill] sm:$0xff] %v3486_v59 }
 0x8b6   : > { %v1278_v12 = vmul.f32 0.5, %v1270_v15  ;;  %v1268_v0 = vadd.f32 1.0, %v2348_v24 }
 0x8b7   : > { %1306 = vrot.lane.b32.xlu1 %v3338_v4, %s2598_s25  ;;  %v1279_v41 = vmul.f32 0.5, %v1271_v21 }
 0x8b8   : > { %v3344_v56 = vmul.f32 %v1278_v12, %v1214_v57  ;;  %v1276_v27 = vmul.f32 0.5, %v1268_v0 }
 0x8b9   : > { %v3350_v26 = vmul.f32 %v1279_v41, %v1215_v39 }
 0x8ba   : > { %1300 = vrot.lane.b32.xlu0 %v3344_v56, %s2598_s25  ;;  %v3357_v1 = vmul.f32 %v1276_v27, %v3303_v18 }
 0x8bb   : > { %1326 = vrot.lane.b32.xlu1 %v3320_v60, %s2599_s13 }
 0x8be   : > { %1304 = vrot.lane.b32.xlu0 %v3350_v26, %s2598_s25 }
 0x8bf   : > { %1330 = vrot.lane.b32.xlu1 %v3325_v30, %s2599_s13 }
 0x8c2   : > { %1324 = vrot.lane.b32.xlu0 %v3357_v1, %s2599_s13 }
 0x8c3   : > { %1334 = vrot.lane.b32.xlu1 %v3330_v35, %s2599_s13 }
 0x8c6   : > { %1328 = vrot.lane.b32.xlu0 %v3335_v8, %s2599_s13 }
 0x8c7   : > { %1338 = vrot.lane.b32.xlu1 %v3338_v4, %s2599_s13 }
 0x8ca   : > { %1332 = vrot.lane.b32.xlu0 %v3344_v56, %s2599_s13 }
 0x8cb   : > { %1358 = vrot.lane.b32.xlu1 %v3320_v60, %s2600_s30 }
 0x8ce   : > { %1336 = vrot.lane.b32.xlu0 %v3350_v26, %s2599_s13 }
 0x8cf   : > { %1362 = vrot.lane.b32.xlu1 %v3325_v30, %s2600_s30 }
 0x8d2   : > { %1356 = vrot.lane.b32.xlu0 %v3357_v1, %s2600_s30 }
 0x8d3   : > { %1366 = vrot.lane.b32.xlu1 %v3330_v35, %s2600_s30 }
 0x8d6   : > { %1360 = vrot.lane.b32.xlu0 %v3335_v8, %s2600_s30 }
 0x8d7   : > { %1370 = vrot.lane.b32.xlu1 %v3338_v4, %s2600_s30 }
 0x8da   : > { %1364 = vrot.lane.b32.xlu0 %v3344_v56, %s2600_s30 }
 0x8db   : > { %1390 = vrot.lane.b32.xlu1 %v3320_v60, %s2601_s11 }
 0x8de   : > { %1368 = vrot.lane.b32.xlu0 %v3350_v26, %s2600_s30  ;;  %s1941_s30 = scalar_lea.sflag [#allocation4], %s2871_s9 }
 0x8df   : > { %1394 = vrot.lane.b32.xlu1 %v3325_v30, %s2601_s11 }
 0x8e2   : > { %1388 = vrot.lane.b32.xlu0 %v3357_v1, %s2601_s11 }
 0x8e3   : > { %1398 = vrot.lane.b32.xlu1 %v3330_v35, %s2601_s11 }
 0x8e6   : > { %1392 = vrot.lane.b32.xlu0 %v3335_v8, %s2601_s11 }
 0x8e7   : > { %1402 = vrot.lane.b32.xlu1 %v3338_v4, %s2601_s11 }
 0x8ea   : > { %1396 = vrot.lane.b32.xlu0 %v3344_v56, %s2601_s11 }
 0x8eb   : > { %1422 = vrot.lane.b32.xlu1 %v3320_v60, %s2602_s16 }
 0x8ee   : > { %1400 = vrot.lane.b32.xlu0 %v3350_v26, %s2601_s11  ;;  %s2509_s11 = scalar_lea.vmem %s3854_s23, 1024 }
 0x8ef   : > { %1426 = vrot.lane.b32.xlu1 %v3325_v30, %s2602_s16  ;;  %p2510_p6 = scmp.ne.s32.totalorder %s3854_s23, %s2509_s11 }
 0x8f1   : > { %p2511_p2 = pnand %p2510_p6, %p3968_p0 }
 0x8f2   : > { %1420 = vrot.lane.b32.xlu0 %v3357_v1, %s2602_s16 }
 0x8f3   : > { %1430 = vrot.lane.b32.xlu1 %v3330_v35, %s2602_s16  ;;  %p2512_p5 = pneg %p2511_p2 }
 0x8f6   : > { %1424 = vrot.lane.b32.xlu0 %v3335_v8, %s2602_s16 }
 0x8f7   : > { %1434 = vrot.lane.b32.xlu1 %v3338_v4, %s2602_s16 }
 0x8fa   : > { %1428 = vrot.lane.b32.xlu0 %v3344_v56, %s2602_s16 }
 0x8fb   : > { %1454 = vrot.lane.b32.xlu1 %v3320_v60, %s2603_s8 }
 0x8fe   : > { %1432 = vrot.lane.b32.xlu0 %v3350_v26, %s2602_s16  ;;  %s2619_s16 = smov [#allocation11]  }
 0x8ff   : > { %1458 = vrot.lane.b32.xlu1 %v3325_v30, %s2603_s8 }
 0x902   : > { %1452 = vrot.lane.b32.xlu0 %v3357_v1, %s2603_s8 }
 0x903   : > { %1462 = vrot.lane.b32.xlu1 %v3330_v35, %s2603_s8 }
 0x906   : > { %1456 = vrot.lane.b32.xlu0 %v3335_v8, %s2603_s8 }
 0x907   : > { %1466 = vrot.lane.b32.xlu1 %v3338_v4, %s2603_s8 }
 0x90a   : > { %1460 = vrot.lane.b32.xlu0 %v3344_v56, %s2603_s8 }
 0x90b   : > { %1292 = vrot.lane.b32.xlu1 %v3357_v1, %s2598_s25 }
 0x90e   : > { %1464 = vrot.lane.b32.xlu0 %v3350_v26, %s2603_s8  ;;  %s2513_s8 = sshll.u32 %s2619_s16, 4  ;;  %s2514_s8 = int_to_ptr.vmem [resolvable:$false] %s2513_s8 }
 0x90f   : > { %1486 = vrot.lane.b32.xlu1 %v3320_v60, %s2604_s28  ;;  %p2516_p10 = scmp.lt.s32.totalorder %s3854_s23, %s2514_s8 }
 0x912   : > { %1484 = vrot.lane.b32.xlu0 %v3357_v1, %s2604_s28 }
 0x913   : > { %1490 = vrot.lane.b32.xlu1 %v3325_v30, %s2604_s28 }
 0x916   : > { %1488 = vrot.lane.b32.xlu0 %v3335_v8, %s2604_s28 }
 0x917   : > { %1494 = vrot.lane.b32.xlu1 %v3330_v35, %s2604_s28 }
 0x91a   : > { %1492 = vrot.lane.b32.xlu0 %v3344_v56, %s2604_s28 }
 0x91b   : > { %1498 = vrot.lane.b32.xlu1 %v3338_v4, %s2604_s28 }
 0x91d   : > { %v1295_v18 = vpop.permute.xlu1 %1294 }
 0x91e   : > { %1496 = vrot.lane.b32.xlu0 %v3350_v26, %s2604_s28  ;;  %s2515_s28 = scalar_lea.vmem %s2514_s8, 2048 }
 0x91f   : > { %1518 = vrot.lane.b32.xlu1 %v3320_v60, %s2605_s29  ;;  %p2517_p1 = scmp.lt.s32.totalorder %s2515_s28, %s2509_s11 }
 0x921   : > { %v1299_v57 = vpop.permute.xlu1 %1298  ;;  %p2518_p11 = por %p2517_p1, %p2516_p10 }
 0x922   : > { %v3457_v39 = vsel %vm552_vm3, %v1295_v18, %v1299_v57  ;;  %1516 = vrot.lane.b32.xlu0 %v3357_v1, %s2605_s29 }
 0x923   : > { %1522 = vrot.lane.b32.xlu1 %v3325_v30, %s2605_s29  ;;  %p2519_p12 = pnand %p2518_p11, %p2512_p5 }
 0x925   : > { %v1303_v14 = vpop.permute.xlu1 %1302 }
 0x926   : > { %1520 = vrot.lane.b32.xlu0 %v3335_v8, %s2605_s29  ;;  %v1311_v58 = vsel %vm552_vm3, %v1299_v57, %v1303_v14 }
 0x927   : > { %1526 = vrot.lane.b32.xlu1 %v3330_v35, %s2605_s29  ;;  %v3469_v53 = vpop.permute.xlu0 %1296  ;;  %v1322_v57 = vmul.f32 %v1311_v58, %v3037_v46 }
 0x929   : > { %v1307_v49 = vpop.permute.xlu1 %1306 }
 0x92a   : > { %v3473_v37 = vsel %vm552_vm3, %v1307_v49, %v1295_v18  ;;  %1524 = vrot.lane.b32.xlu0 %v3344_v56, %s2605_s29  ;;  %v1309_v54 = vsel %vm552_vm3, %v1303_v14, %v1307_v49  ;;  %v3501_v18 = vld [vmem:[#allocation5] sm:$0xff] }
 0x92b   : > { %1530 = vrot.lane.b32.xlu1 %v3338_v4, %s2605_s29  ;;  %v1323_v0 = vmul.f32 %v1309_v54, %v3040_v48  ;;  %3951 = vst [vmem:[#allocation26_spill] sm:$0xff] %v3501_v18 }
 0x92c   : > { %v1301_v6 = vpop.permute.xlu0 %1300 }
 0x92d   : > { %v1327_v10 = vpop.permute.xlu1 %1326  ;;  %v1310_v11 = vsel %vm552_vm3, %v3469_v53, %v1301_v6 }
 0x92e   : > { %1528 = vrot.lane.b32.xlu0 %v3350_v26, %s2605_s29  ;;  %v1318_v24 = vmul.f32 %v1310_v11, %v3037_v46 }
 0x92f   : > { %1589 = vperm.xlu1 %2306, %v3486_v59  }
 0x930   : > { %v3491_v15 = vpop.permute.xlu0 %1304  ;;  %v1550_v49 = vpack.c.bf16 %v1322_v57, %v1318_v24 }
 0x931   : > { %v1308_v21 = vsel %vm552_vm3, %v1301_v6, %v3491_v15  ;;  %v1331_v12 = vpop.permute.xlu1 %1330 }
 0x932   : > { %v1319_v41 = vmul.f32 %v1308_v21, %v3040_v48  ;;  %v1345_v27 = vsel %vm585_vm4, %v1327_v10, %v1331_v12  ;;  %1585 = vperm.xlu0 %2305, %v3501_v18  }
 0x933   : > { %v3508_v54 = vmul.f32 %v1345_v27, %v3029_v42 }
 0x934   : > { %v1325_v61 = vpop.permute.xlu0 %1324  ;;  %v1551_v14 = vpack.c.bf16 %v1323_v0, %v1319_v41 }
 0x935   : > { %v1335_v63 = vpop.permute.xlu1 %1334 }
 0x936   : > { %1645 = vmatprep.subr.bf16.mxu1 %v1551_v14  ;;  %v1343_v27 = vsel %vm585_vm4, %v1331_v12, %v1335_v63 }
 0x937   : > { %1646 = vmatpush1.bf16.msra.mxu1 %v1550_v49 }
 0x938   : > { %v1329_v6 = vpop.permute.xlu0 %1328 }
 0x939   : > { %v1344_v11 = vsel %vm585_vm4, %v1325_v61, %v1329_v6  ;;  %v1339_v48 = vpop.permute.xlu1 %1338 }
 0x93a   : > { %v3511_v21 = vmul.f32 %v1344_v11, %v3029_v42  ;;  %v1347_v46 = vsel %vm585_vm4, %v1339_v48, %v1327_v10  ;;  %v1341_v57 = vsel %vm585_vm4, %v1335_v63, %v1339_v48 }
 0x93b   : > { %v3524_v42 = vmul.f32 %v1347_v46, %v3045_v50  ;;  %v1354_v46 = vmul.f32 %v1343_v27, %v3048_v51 }
 0x93c   : > { %v1333_v58 = vpop.permute.xlu0 %1332 }
 0x93d   : > { %v1359_v0 = vpop.permute.xlu1 %1358  ;;  %v1342_v41 = vsel %vm585_vm4, %v1329_v6, %v1333_v58  ;;  %v1355_v6 = vmul.f32 %v1341_v57, %v3055_v55 }
 0x93e   : > { %v1350_v10 = vmul.f32 %v1342_v41, %v3048_v51 }
 0x940   : > { %v1337_v14 = vpop.permute.xlu0 %1336 }
 0x941   : > { %v1340_v49 = vsel %vm585_vm4, %v1333_v58, %v1337_v14  ;;  %v1346_v11 = vsel %vm585_vm4, %v1337_v14, %v1325_v61  ;;  %v1363_v24 = vpop.permute.xlu1 %1362  ;;  %v1554_v14 = vpack.c.bf16 %v1354_v46, %v1350_v10 }
 0x942   : > { %v3533_v48 = vmul.f32 %v1346_v11, %v3045_v50  ;;  %v1351_v12 = vmul.f32 %v1340_v49, %v3055_v55  ;;  %v3538_v63 = vsel %vm618_vm5, %v1359_v0, %v1363_v24 }
 0x944   : > { %v3543_v41 = vpop.permute.xlu0 %1356  ;;  %v1555_v61 = vpack.c.bf16 %v1355_v6, %v1351_v12 }
 0x945   : > { %v1367_v43 = vpop.permute.xlu1 %1366 }
 0x946   : > { %1647 = vmatprep.subr.bf16.mxu1 %v1555_v61  ;;  %v1375_v10 = vsel %vm618_vm5, %v1363_v24, %v1367_v43 }
 0x947   : > { %1648 = vmatpush1.bf16.msra.mxu1 %v1554_v14  ;;  %v1386_v24 = vmul.f32 %v1375_v10, %v3089_v28 }
 0x948   : > { %v3545_v50 = vpop.permute.xlu0 %1360 }
 0x949   : > { %v1371_v57 = vpop.permute.xlu1 %1370 }
 0x94a   : > { %v1373_v27 = vsel %vm618_vm5, %v1367_v43, %v1371_v57  ;;  %v1379_v11 = vsel %vm618_vm5, %v1371_v57, %v1359_v0 }
 0x94b   : > { %v3567_v58 = vmul.f32 %v1379_v11, %v3086_v2  ;;  %v1387_v0 = vmul.f32 %v1373_v27, %v3092_v31 }
 0x94c   : > { %v1365_v55 = vpop.permute.xlu0 %1364 }
 0x94d   : > { %v3547_v49 = vpop.permute.xlu1 %1390  ;;  %v1374_v51 = vsel %vm618_vm5, %v3545_v50, %v1365_v55 }
 0x94e   : > { %v1382_v12 = vmul.f32 %v1374_v51, %v3089_v28 }
 0x950   : > { %v1369_v6 = vpop.permute.xlu0 %1368  ;;  %v1558_v33 = vpack.c.bf16 %v1386_v24, %v1382_v12 }
 0x951   : > { %v1372_v46 = vsel %vm618_vm5, %v1365_v55, %v1369_v6  ;;  %v1378_v61 = vsel %vm618_vm5, %v1369_v6, %v3543_v41  ;;  %v3564_v14 = vpop.permute.xlu1 %1394 }
 0x952   : > { %v3571_v57 = vmul.f32 %v1378_v61, %v3086_v2  ;;  %v1383_v43 = vmul.f32 %v1372_v46, %v3092_v31 }
 0x954   : > { %v3577_v51 = vpop.permute.xlu0 %1388  ;;  %v1559_v6 = vpack.c.bf16 %v1387_v0, %v1383_v43 }
 0x955   : > { %v1399_v52 = vpop.permute.xlu1 %1398 }
 0x956   : > { %1649 = vmatprep.subr.bf16.mxu1 %v1559_v6  ;;  %v1407_v10 = vsel %vm651_vm6, %v3564_v14, %v1399_v52 }
 0x957   : > { %1650 = vmatpush1.bf16.msra.mxu1 %v1558_v33  ;;  %v1418_v6 = vmul.f32 %v1407_v10, %v3100_v36 }
 0x958   : > { %v3579_v11 = vpop.permute.xlu0 %1392 }
 0x959   : > { %v3581_v27 = vpop.permute.xlu1 %1402 }
 0x95a   : > { %v1405_v31 = vsel %vm651_vm6, %v1399_v52, %v3581_v27 }
 0x95b   : > { %v1419_v43 = vmul.f32 %v1405_v31, %v3107_v47 }
 0x95c   : > { %v1397_v2 = vpop.permute.xlu0 %1396 }
 0x95d   : > { %v3583_v61 = vpop.permute.xlu1 %1422  ;;  %v1406_v28 = vsel %vm651_vm6, %v3579_v11, %v1397_v2 }
 0x95e   : > { %v1414_v12 = vmul.f32 %v1406_v28, %v3100_v36  ;;  %v1567_v28 = vpack.c.bf16 %v3338_v4, %v3350_v26 }
 0x960   : > { %v3594_v33 = vpop.permute.xlu0 %1400  ;;  %v1562_v52 = vpack.c.bf16 %v1418_v6, %v1414_v12 }
 0x961   : > { %v1404_v46 = vsel %vm651_vm6, %v1397_v2, %v3594_v33  ;;  %v3600_v0 = vpop.permute.xlu1 %1426 }
 0x962   : > { %v1415_v24 = vmul.f32 %v1404_v46, %v3107_v47  ;;  %v1566_v47 = vpack.c.bf16 %v3330_v35, %v3344_v56 }
 0x964   : > { %v3605_v55 = vpop.permute.xlu0 %1420  ;;  %v1563_v44 = vpack.c.bf16 %v1419_v43, %v1415_v24 }
 0x965   : > { %v3607_v3 = vpop.permute.xlu1 %1430 }
 0x966   : > { %1651 = vmatprep.subr.bf16.mxu1 %v1563_v44 }
 0x967   : > { %1652 = vmatpush1.bf16.msra.mxu1 %v1562_v52 }
 0x968   : > { %v3611_v2 = vpop.permute.xlu0 %1424  ;;  %1653 = vmatprep.subr.bf16.mxu1 %v1567_v28 }
 0x969   : > { %v1435_v59 = vpop.permute.xlu1 %1434 }
 0x96a   : > { %v1437_v44 = vsel %vm684_vm7, %v3607_v3, %v1435_v59  ;;  %v1443_v4 = vsel %vm684_vm7, %v1435_v59, %v3583_v61 }
 0x96b   : > { %1654 = vmatpush1.bf16.msra.mxu1 %v1566_v47  ;;  %v1450_v12 = vmul.f32 %v1437_v44, %v3139_v19  ;;  %v1451_v46 = vmul.f32 %v1443_v4, %v3136_v17  ;;  %v1321_v44 = vmul.f32 %v3457_v39, %v3023_v40 }
 0x96c   : > { %v3615_v36 = vpop.permute.xlu0 %1428 }
 0x96d   : > { %v3617_v31 = vpop.permute.xlu1 %1454 }
 0x970   : > { %v1433_v26 = vpop.permute.xlu0 %1432 }
 0x971   : > { %v1436_v10 = vsel %vm684_vm7, %v3615_v36, %v1433_v26  ;;  %v1442_v35 = vsel %vm684_vm7, %v1433_v26, %v3605_v55  ;;  %v3631_v56 = vpop.permute.xlu1 %1458 }
 0x972   : > { %v1446_v43 = vmul.f32 %v1436_v10, %v3139_v19  ;;  %v1447_v24 = vmul.f32 %v1442_v35, %v3136_v17  ;;  %v1320_v19 = vmul.f32 %v3473_v37, %v3034_v45 }
 0x974   : > { %v1570_v59 = vpack.c.bf16 %v1450_v12, %v1446_v43  ;;  %v3637_v6 = vpop.permute.xlu0 %1452  ;;  %v1571_v52 = vpack.c.bf16 %v1451_v46, %v1447_v24 }
 0x975   : > { %v3639_v28 = vpop.permute.xlu1 %1462 }
 0x976   : > { %1655 = vmatprep.subr.bf16.mxu1 %v1571_v52  ;;  %v1408_v52 = vsel %vm651_vm6, %v3577_v51, %v3579_v11 }
 0x977   : > { %1656 = vmatpush1.bf16.msra.mxu1 %v1570_v59  ;;  %v1413_v11 = vmul.f32 %v1408_v52, %v3081_v25 }
 0x978   : > { %v3641_v47 = vpop.permute.xlu0 %1456 }
 0x979   : > { %v1467_v26 = vpop.permute.xlu1 %1466 }
 0x97a   : > { %v1469_v10 = vsel %vm717_vm8, %v3639_v28, %v1467_v26  ;;  %v1475_v35 = vsel %vm717_vm8, %v1467_v26, %v3617_v31 }
 0x97c   : > { %v1461_v18 = vpop.permute.xlu0 %1460 }
 0x97d   : > { %v1293_v62 = vpop.permute.xlu1 %1292 }
 0x97e   : > { %v1312_v17 = vsel %vm552_vm3, %v1293_v62, %v3469_v53  ;;  %v1314_v4 = vsel %vm552_vm3, %v3491_v15, %v1293_v62  ;;  %v1376_v53 = vsel %vm618_vm5, %v3543_v41, %v3545_v50 }
 0x97f   : > { %v1316_v39 = vmul.f32 %v1314_v4, %v3034_v45  ;;  %v1317_v37 = vmul.f32 %v1312_v17, %v3023_v40  ;;  %v1482_v45 = vmul.f32 %v1469_v10, %v3179_v7  ;;  %v1483_v40 = vmul.f32 %v1475_v35, %v3163_v22 }
 0x980   : > { %v1465_v12 = vpop.permute.xlu0 %1464  ;;  %v1381_v50 = vmul.f32 %v1376_v53, %v3077_v23  ;;  %v1385_v17 = vmul.f32 %v3538_v63, %v3077_v23  ;;  %v1409_v4 = vsel %vm651_vm6, %v3547_v49, %v3564_v14  ;;  %v1410_v10 = vsel %vm651_vm6, %v3594_v33, %v3577_v51 }
 0x981   : > { %v1548_v46 = vpack.c.bf16 %v1320_v19, %v1316_v39  ;;  %v1468_v62 = vsel %vm717_vm8, %v1461_v18, %v1465_v12  ;;  %v1474_v15 = vsel %vm717_vm8, %v1465_v12, %v3637_v6  ;;  %v3670_v43 = vpop.permute.xlu1 %1486  ;;  %v1549_v24 = vpack.c.bf16 %v1321_v44, %v1317_v37 }
 0x982   : > { %v1478_v59 = vmul.f32 %v1468_v62, %v3179_v7  ;;  %v1479_v41 = vmul.f32 %v1474_v15, %v3163_v22  ;;  %v3952_v7 = vpack.c.bf16 %v3508_v54, %v3511_v21  ;;  %v1557_v23 = vpack.c.bf16 %v1385_v17, %v1381_v50 }
 0x983   : > { %1602 = vmatprep.subr.bf16.mxu0 %v1549_v24  ;;  %v3953_v54 = vpack.c.bf16 %v3524_v42, %v3533_v48  ;;  %v1417_v21 = vmul.f32 %v1409_v4, %v3081_v25  ;;  %v1411_v14 = vsel %vm651_vm6, %v3581_v27, %v3547_v49  ;;  %v1412_v39 = vmul.f32 %v1410_v10, %v3097_v34  ;;  %v3955_v10 = vld [vmem:[#allocation16_spill] sm:$0xff] }
 0x984   : > { %v1574_v26 = vpack.c.bf16 %v1482_v45, %v1478_v59  ;;  %v3681_v19 = vpop.permute.xlu0 %1484  ;;  %1603 = vmatpush1.bf16.msra.mxu0 %v1548_v46  ;;  %v1575_v44 = vpack.c.bf16 %v1483_v40, %v1479_v41  ;;  %v1416_v51 = vmul.f32 %v1411_v14, %v3097_v34  ;;  %v1438_v42 = vsel %vm684_vm7, %v3611_v2, %v3615_v36 }
 0x985   : > { %1604 = vmatprep.subr.bf16.mxu0 %v3952_v7  ;;  %v3688_v22 = vpop.permute.xlu1 %1490  ;;  %v1561_v37 = vpack.c.bf16 %v1417_v21, %v1413_v11  ;;  %v3954_v25 = vpack.c.bf16 %v3567_v58, %v3571_v57  ;;  %v1439_v49 = vsel %vm684_vm7, %v3600_v0, %v3607_v3  ;;  %v1440_v34 = vsel %vm684_vm7, %v3605_v55, %v3611_v2 }
 0x986   : > { %1657 = vmatprep.subr.bf16.mxu1 %v1575_v44  ;;  %v1560_v33 = vpack.c.bf16 %v1416_v51, %v1412_v39  ;;  %v1445_v36 = vmul.f32 %v1438_v42, %v3133_v16  ;;  %v1565_v3 = vpack.c.bf16 %v3325_v30, %v3335_v8  ;;  %v1441_v57 = vsel %vm684_vm7, %v3583_v61, %v3600_v0 }
 0x987   : > { %1658 = vmatpush1.bf16.msra.mxu1 %v1574_v26  ;;  %v1449_v12 = vmul.f32 %v1439_v49, %v3133_v16  ;;  %v1470_v55 = vsel %vm717_vm8, %v3641_v47, %v1461_v18  ;;  %v1564_v46 = vpack.c.bf16 %v3320_v60, %v3357_v1  ;;  %v1444_v62 = vmul.f32 %v1440_v34, %v3128_v13 }
 0x988   : > { %v1489_v63 = vpop.permute.xlu0 %1488  ;;  %1605 = vmatpush1.bf16.msra.mxu0 %v3953_v54  ;;  %v1471_v30 = vsel %vm717_vm8, %v3631_v56, %v3639_v28  ;;  %v1472_v28 = vsel %vm717_vm8, %v3637_v6, %v3641_v47  ;;  %v1477_v15 = vmul.f32 %v1470_v55, %v3171_v29  ;;  %v1448_v45 = vmul.f32 %v1441_v57, %v3128_v13  ;;  %v2364_v57 = vld [vmem:[#allocation10 + $0x38] ss:$0 sm:$0xff] }
 0x989   : > { %1606 = vmatprep.subr.bf16.mxu0 %v1557_v23  ;;  %v1495_v35 = vpop.permute.xlu1 %1494  ;;  %v1569_v24 = vpack.c.bf16 %v1449_v12, %v1445_v36  ;;  %v1476_v52 = vmul.f32 %v1472_v28, %v3160_v20  ;;  %v1504_v26 = vsel %vm750_vm9, %v3681_v19, %v1489_v63  ;;  %v1505_v17 = vsel %vm750_vm9, %v3670_v43, %v3688_v22 }
 0x98a   : > { %v1568_v47 = vpack.c.bf16 %v1448_v45, %v1444_v62  ;;  %v1503_v13 = vsel %vm750_vm9, %v3688_v22, %v1495_v35  ;;  %v1512_v54 = vmul.f32 %v1505_v17, %v3955_v10  ;;  %v2616_v17 = vmov 0.0  }
 0x98b   : > { %v1513_v7 = vmul.f32 %v1503_v13, %v3176_v5 }
 0x98c   : > { %v1493_v48 = vpop.permute.xlu0 %1492  ;;  %1607 = vmatpush1.bf16.msra.mxu0 %v3954_v25 }
 0x98d   : > { %1608 = vmatprep.subr.bf16.mxu0 %v1561_v37  ;;  %v1499_v27 = vpop.permute.xlu1 %1498  ;;  %v1502_v40 = vsel %vm750_vm9, %v1489_v63, %v1493_v48  ;;  %v2362_v37 = vld [vmem:[#allocation10 + $0x28] ss:$0 sm:$0xff] }
 0x98e   : > { %v1501_v53 = vsel %vm750_vm9, %v1495_v35, %v1499_v27  ;;  %v1507_v58 = vsel %vm750_vm9, %v1499_v27, %v3670_v43  ;;  %v1509_v44 = vmul.f32 %v1502_v40, %v3176_v5  ;;  %v2361_v5 = vld [vmem:[#allocation10 + $0x20] ss:$0 sm:$0xff] }
 0x98f   : > { %v1514_v61 = vmul.f32 %v1501_v53, %v3187_v9  ;;  %v1515_v60 = vmul.f32 %v1507_v58, %v3184_v38  ;;  %v2363_v58 = vld [vmem:[#allocation10 + $0x30] ss:$0 sm:$0xff] }
 0x990   : > { %v1497_v2 = vpop.permute.xlu0 %1496  ;;  %1609 = vmatpush1.bf16.msra.mxu0 %v1560_v33  ;;  %v1577_v63 = vpack.c.bf16 %v1513_v7, %v1509_v44  ;;  %v2365_v44 = vld [vmem:[#allocation7] sm:$0xff]  ;;  %v3957_v7 = vld [vmem:[#allocation25_spill] sm:$0xff] }
 0x991   : > { %v1500_v8 = vsel %vm750_vm9, %v1493_v48, %v1497_v2  ;;  %v1506_v16 = vsel %vm750_vm9, %v1497_v2, %v3681_v19  ;;  %1610 = vmatprep.subr.bf16.mxu0 %v1565_v3  ;;  %v1519_v18 = vpop.permute.xlu1 %1518  ;;  %v1508_v19 = vmul.f32 %v1504_v26, %v3955_v10  ;;  %v3958_v10 = vmov 0  }
 0x992   : > { %v1510_v1 = vmul.f32 %v1500_v8, %v3187_v9  ;;  %v1511_v0 = vmul.f32 %v1506_v16, %v3184_v38  ;;  %v1473_v38 = vsel %vm717_vm8, %v3617_v31, %v3631_v56  ;;  %v1481_v9 = vmul.f32 %v1471_v30, %v3171_v29 }
 0x993   : > { %v1480_v29 = vmul.f32 %v1473_v38, %v3160_v20  ;;  %v1576_v39 = vpack.c.bf16 %v1512_v54, %v1508_v19  ;;  %v2611_v8 = vmov 8   ;;  %v3959_v19 = vmov 1  }
 0x994   : > { %v1578_v59 = vpack.c.bf16 %v1514_v61, %v1510_v1  ;;  %v1517_v41 = vpop.permute.xlu0 %1516  ;;  %1611 = vmatpush1.bf16.msra.mxu0 %v1564_v46  ;;  %v1579_v50 = vpack.c.bf16 %v1515_v60, %v1511_v0  ;;  %v1573_v31 = vpack.c.bf16 %v1481_v9, %v1477_v15  ;;  %v2318_v46 = vld [vmem:[#allocation8 + $0x4] ss:$16 sps:$4 sm:$0xff]   ;;  %2308 = vset.pattern.permute.xlu1 %v2611_v8 }
 0x995   : > { %1612 = vmatprep.subr.bf16.mxu0 %v1569_v24  ;;  %v1523_v6 = vpop.permute.xlu1 %1522  ;;  %v1572_v11 = vpack.c.bf16 %v1480_v29, %v1476_v52  ;;  %v3956_v29 = vld [vmem:[#allocation26_spill] sm:$0xff] }
 0x996   : > { %1659 = vmatprep.subr.bf16.mxu1 %v1579_v50  ;;  %v1537_v21 = vsel %vm783_vm10, %v1519_v18, %v1523_v6 }
 0x997   : > { %1660 = vmatpush1.bf16.msra.mxu1 %v1578_v59  ;;  %v1544_v48 = vmul.f32 %v2361_v5, %v1537_v21 }
 0x998   : > { %v1521_v56 = vpop.permute.xlu0 %1520  ;;  %1613 = vmatpush1.bf16.msra.mxu0 %v1568_v47 }
 0x999   : > { %1614 = vmatprep.subr.bf16.mxu0 %v1573_v31  ;;  %v1527_v4 = vpop.permute.xlu1 %1526  ;;  %v1536_v23 = vsel %vm783_vm10, %v1517_v41, %v1521_v56  ;;  %v2366_v31 = vld [vmem:[#allocation7 + $0x8] sm:$0xff] }
 0x99a   : > { %v1535_v20 = vsel %vm783_vm10, %v1523_v6, %v1527_v4  ;;  %v1540_v22 = vmul.f32 %v2361_v5, %v1536_v23 }
 0x99b   : > { %v1545_v51 = vmul.f32 %v2362_v37, %v1535_v20 }
 0x99c   : > { %v1525_v43 = vpop.permute.xlu0 %1524  ;;  %1615 = vmatpush1.bf16.msra.mxu0 %v1572_v11  ;;  %v1580_v34 = vpack.c.bf16 %v1544_v48, %v1540_v22  ;;  %v2618_v11 = vmov 7  }
 0x99d   : > { %v1534_v14 = vsel %vm783_vm10, %v1521_v56, %v1525_v43  ;;  %1616 = vmatprep.subr.bf16.mxu0 %v1577_v63  ;;  %v1531_v35 = vpop.permute.xlu1 %1530  ;;  %v2614_v56 = vmov 0.0|0.0   ;;  %2307 = vset.pattern.permute.xlu0 %v2618_v11 }
 0x99e   : > { %v1541_v42 = vmul.f32 %v2362_v37, %v1534_v14  ;;  %v1533_v25 = vsel %vm783_vm10, %v1527_v4, %v1531_v35  ;;  %v1539_v49 = vsel %vm783_vm10, %v1531_v35, %v1519_v18  ;;  %v2617_v4 = vmov 6  }
 0x99f   : > { %v1546_v3 = vmul.f32 %v2363_v58, %v1533_v25  ;;  %v1547_v12 = vmul.f32 %v2364_v57, %v1539_v49 }
 0x9a0   : > { %v1529_v27 = vpop.permute.xlu0 %1528  ;;  %1617 = vmatpush1.bf16.msra.mxu0 %v1576_v39  ;;  %v1581_v33 = vpack.c.bf16 %v1545_v51, %v1541_v42 }
 0x9a1   : > { %v1532_v36 = vsel %vm783_vm10, %v1525_v43, %v1529_v27  ;;  %v1538_v53 = vsel %vm783_vm10, %v1529_v27, %v1517_v41 }
 0x9a2   : > { %v1542_v55 = vmul.f32 %v2363_v58, %v1532_v36  ;;  %v1543_v2 = vmul.f32 %v2364_v57, %v1538_v53  ;;  %1618 = vmatprep.subr.bf16.mxu0 %v1581_v33 }
 0x9a4   : > { %v1582_v62 = vpack.c.bf16 %v1546_v3, %v1542_v55  ;;  %1619 = vmatpush1.bf16.msra.mxu0 %v1580_v34  ;;  %v1583_v30 = vpack.c.bf16 %v1547_v12, %v1543_v2 }
 0x9a5   : > { %2165 = vmatprep.subr.bf16.mxu0 %v2614_v56  ;;  %v3962_v56 = vld [vmem:[#allocation18_spill] sm:$0xff] }
 0x9a6   : > { %1661 = vmatprep.subr.bf16.mxu1 %v1583_v30 }
 0x9a7   : > { %1635 = vmatmul.mubr.bf16.vlgmr.msra.gmra.mrb[12].mxu0 %v2318_v46  ;;  %1662 = vmatpush1.bf16.msra.mxu1 %v1582_v62 }
 0x9a8   : > { %2149 = vmatprep.mubr.msk.f32.mxu0 %vm2615_vm13, %v2616_v17 }
 0x9aa   : > { %1678 = vmatmul.mubr.bf16.vlgmr.msra.gmra.mrb[12].mxu1 %v2318_v46 }
 0x9ae   : > { %v1590_v40 = vpop.permute.xlu1 %1589 }
 0x9b1   : > { %v1586_v16 = vpop.permute.xlu0 %1585 }
 0xa7a   : > { %v1636_v32 = vpop.f32.mrb[12].mxu0 }
 0xa7b   : > { %v3801_v18 = vadd.f32 %v1636_v32, %v1586_v16  ;;  %v1638_v61 = vpop.f32.mrb[13].mxu0 }
 0xa7c   : > { %v3803_v60 = vadd.f32 %v1638_v61, %v1586_v16  ;;  %v1640_v1 = vpop.f32.mrb[14].mxu0 }
 0xa7d   : > { %v1679_v0 = vpop.f32.mrb[12].mxu1  ;;  %v1642_v28 = vpop.f32.mrb[15].mxu0  ;;  %v3813_v9 = vadd.f32 %v1640_v1, %v1590_v40 }
 0xa7e   : > { %v1688_v15 = vadd.f32 %v3803_v60, %v3801_v18  ;;  %v3807_v24 = vadd.f32 %v1679_v0, %v1586_v16  ;;  %v1681_v45 = vpop.f32.mrb[13].mxu1  ;;  %v3815_v6 = vadd.f32 %v1642_v28, %v1590_v40 }
 0xa7f   : > { %v3809_v59 = vadd.f32 %v1681_v45, %v1586_v16  ;;  %v1683_v41 = vpop.f32.mrb[14].mxu1 }
 0xa80   : > { %1689 = vadd.xlane.f32.xlu1 %v1688_v15  ;;  %v1685_v50 = vpop.f32.mrb[15].mxu1  ;;  %v3817_v47 = vadd.f32 %v1683_v41, %v1590_v40  ;;  %v1691_v13 = vadd.f32 %v3815_v6, %v3813_v9 }
 0xa81   : > { %v1694_v38 = vadd.f32 %v3809_v59, %v3807_v24  ;;  %v3819_v52 = vadd.f32 %v1685_v50, %v1590_v40  ;;  %v3960_v50 = vld [vmem:[#allocation21_spill] sm:$0xff] }
 0xa83   : > { %1695 = vadd.xlane.f32.xlu0 %v1694_v38  ;;  %v1697_v26 = vadd.f32 %v3819_v52, %v3817_v47 }
 0xa87   : > { %1692 = vadd.xlane.f32.xlu0 %v1691_v13  ;;  %v3961_v13 = vld [vmem:[#allocation23_spill] sm:$0xff] }
 0xa8b   : > { %1698 = vadd.xlane.f32.xlu0 %v1697_v26 }
 0xa91   : > { %1708 = vrot.lane.b32.xlu1 %v2365_v44, %s2612_s6 }
 0xa95   : > { %1799 = vrot.lane.b32.xlu1 %v2365_v44, %s2613_s7 }
 0xa99   : > { %1801 = vrot.lane.b32.xlu1 %v2366_v31, %s2613_s7 }
 0xa9d   : > { %1792 = vperm.xlu1 %2308, %v3956_v29  }
 0xaa1   : > { %1796 = vperm.xlu1 %2308, %v3957_v7   ;;  %1705 = vperm.xlu0 %2307, %v3956_v29  }
 0xaa5   : > { %2309 = vset.pattern.permute.xlu1 %v2617_v4  ;;  %2311 = vset.pattern.permute.xlu0 %v3959_v19 }
 0xaa6   : > { %328 = vperm.xlu1 %2309, %v3956_v29  }
 0xaaa   : > { %333 = vperm.xlu1 %2309, %v3957_v7   ;;  %v3963_v7 = vld [vmem:[#allocation20_spill] sm:$0xff] }
 0xaae   : > { %2310 = vset.pattern.permute.xlu1 %v3958_v10 }
 0xb0d   : > { %v1690_v63 = vpop.xlane.xlu1 %1689 }
 0xb10   : > { %v1696_v23 = vpop.xlane.xlu0 %1695 }
 0xb11   : > { %v1700_v54 = vsel %vm450_vm0, %v1690_v63, %v1696_v23  ;;  %v1709_v35 = vpop.permute.xlu1 %1708 }
 0xb12   : > { %v1702_v5 = vmul.f32 0.00390625, %v1700_v54 }
 0xb14   : > { %v1693_v20 = vpop.xlane.xlu0 %1692 }
 0xb15   : > { %v1800_v39 = vpop.permute.xlu1 %1799 }
 0xb16   : > { %2154 = vmatprep.mubr.msk.f32.mxu1 %vm1803_vm14, %v1800_v39 }
 0xb18   : > { %v1699_v21 = vpop.xlane.xlu0 %1698 }
 0xb19   : > { %v1701_v43 = vsel %vm450_vm0, %v1693_v20, %v1699_v21  ;;  %v1802_v57 = vpop.permute.xlu1 %1801  ;;  %v3965_v21 = vld [vmem:[#allocation19_spill] sm:$0xff] }
 0xb1a   : > { %v1703_v22 = vmul.f32 0.00390625, %v1701_v43 }
 0xb1c   : > { %v2166_v14 = vpack.c.bf16 %v1703_v22, %v1702_v5 }
 0xb1d   : > { %v1793_v12 = vpop.permute.xlu1 %1792 }
 0xb1e   : > { %2167 = vmatpush3.bf16.msra.mxu0 %v2166_v14 }
 0xb20   : > { %v1706_v37 = vpop.permute.xlu0 %1705 }
 0xb21   : > { %2150 = vmatmul.mubr.msk.f32.vlgmr.msra.gmra.mrb[10].mxu0 %vm963_vm12, %v1709_v35  ;;  %v1797_v55 = vpop.permute.xlu1 %1796  ;;  %v3966_v35 = vld [vmem:[#allocation22_spill] sm:$0xff] }
 0xb25   : > { %v329_v45 = vpop.permute.xlu1 %328 }
 0xb26   : > { %v436_v17 = vadd.f32 %v3962_v56, %v329_v45  ;;  %v438_v4 = vadd.f32 %v3963_v7, %v329_v45  ;;  %v395_v43 = vadd.f32 %v3965_v21, %v329_v45 }
 0xb29   : > { %v334_v40 = vpop.permute.xlu1 %333 }
 0xb2a   : > { %v397_v38 = vadd.f32 %v3960_v50, %v334_v40  ;;  %v399_v26 = vadd.f32 %v3961_v13, %v334_v40  ;;  %v440_v39 = vadd.f32 %v3966_v35, %v334_v40 }
 0xbf4   : > { %v1778_v51 = vpop.f32.mrb[10].mxu0 }
 0xbf5   : > { %v1779_v42 = vadd.f32 %v1778_v51, %v1706_v37  ;;  %v2151_v48 = vpop.f32.mrb[11].mxu0 }
 0xbf7   : > { %v1782_v25 = vmul.f32 %v1779_v42, %v1779_v42 }
 0xbf9   : > { %v1783_v49 = vmul.f32 %v1782_v25, %v1779_v42 }
 0xbfb   : > { %v1784_v27 = vmul.f32 0.044715, %v1783_v49 }
 0xbfd   : > { %v1785_v33 = vadd.f32 %v1784_v27, %v1779_v42 }
 0xbff   : > { %v1786_v34 = vmul.f32 0.7978846, %v1785_v33 }
 0xc01   : > { %2349 = vtanh.f32 %v1786_v34 }
 0xc0b   : > { %v2350_v36 = vpop.eup %2349 }
 0xc0c   : > { %v1788_v53 = vadd.f32 1.0, %v2350_v36 }
 0xc0e   : > { %v1789_v58 = vmul.f32 0.5, %v1788_v53 }
 0xc10   : > { %v1790_v3 = vmul.f32 %v1789_v58, %v1779_v42 }
 0xc12   : > { %2152 = vmatprep.subr.msk.mxu1 %vm345_vm1, %v1790_v3 }
 0xc13   : > { %2153 = vmatpush3.msk.msra.mxu1 %vm345_vm1, %v1790_v3 }
 0xc14   : > { %2155 = vmatmul.mubr.msk.f32.vlgmr.msra.gmra.mrb[10].mxu1 %vm1803_vm14, %v1802_v57 }
 0xce7   : > { %v2156_v2 = vpop.f32.mrb[10].mxu1 }
 0xce8   : > { %v1883_v46 = vadd.f32 %v2156_v2, %v1797_v55  ;;  %v1877_v62 = vpop.f32.mrb[11].mxu1 }
 0xce9   : > { %v1878_v30 = vadd.f32 %v1877_v62, %v1793_v12 }
 0xcea   : > { %v2109_v8 = vmul.f32 -1.442695, %v1883_v46 }
 0xceb   : > { %v2108_v16 = vmul.f32 -1.442695, %v1878_v30 }
 0xcec   : > { %2351 = vpow2.f32 %v2109_v8 }
 0xced   : > { %2353 = vpow2.f32 %v2108_v16 }
 0xcf6   : > { %v2352_v32 = vpop.eup %2351 }
 0xcf7   : > { %v2354_v61 = vpop.eup %2353  ;;  %v1893_v1 = vadd.f32 1.0, %v2352_v32 }
 0xcf8   : > { %v1892_v0 = vadd.f32 1.0, %v2354_v61 }
 0xcf9   : > { %2355 = vrcp.f32 %v1893_v1 }
 0xcfa   : > { %2357 = vrcp.f32 %v1892_v0 }
 0xd03   : > { %v2356_v28 = vpop.eup %2355 }
 0xd04   : > { %v2358_v15 = vpop.eup %2357  ;;  %1905 = vperm.xlu1 %2310, %v2356_v28  }
 0xd05   : > { %1909 = vperm.xlu0 %2311, %v2358_v15  }
 0xd08   : > { %1900 = vperm.xlu1 %2310, %v2358_v15  }
 0xd0c   : > { %2312 = vset.pattern.permute.xlu1 %v3959_v19 }
 0xd0d   : > { %1913 = vperm.xlu1 %2312, %v2356_v28  }
 0xd83   : > { %v1906_v41 = vpop.permute.xlu1 %1905 }
 0xd84   : > { %v1920_v44 = vmul.f32 %v1906_v41, %v3813_v9  ;;  %v1921_v31 = vmul.f32 %v1906_v41, %v3815_v6  ;;  %v1910_v29 = vpop.permute.xlu0 %1909  ;;  %v3964_v9 = vld [vmem:[#allocation17_spill] sm:$0xff] }
 0xd85   : > { %v1918_v11 = vmul.f32 %v1910_v29, %v3807_v24  ;;  %v1919_v10 = vmul.f32 %v1910_v29, %v3809_v59  ;;  %v393_v6 = vadd.f32 %v3964_v9, %v329_v45 }
 0xd86   : > { %v1928_v19 = vadd.f32 %v1920_v44, %v397_v38  ;;  %v1929_v23 = vadd.f32 %v1921_v31, %v399_v26 }
 0xd87   : > { %v1926_v20 = vadd.f32 %v1918_v11, %v436_v17  ;;  %v1927_v63 = vadd.f32 %v1919_v10, %v438_v4  ;;  %v1901_v54 = vpop.permute.xlu1 %1900 }
 0xd88   : > { %1936 = vst [vmem:[%s298_s27 + $0x20] sm:$0xff] %v1928_v19  ;;  %1937 = vst [vmem:[%s298_s27 + $0x28] sm:$0xff] %v1929_v23  ;;  %v1916_v5 = vmul.f32 %v1901_v54, %v3801_v18  ;;  %v1917_v22 = vmul.f32 %v1901_v54, %v3803_v60  ;;  %v3967_v18 = vld [vmem:[#allocation24_spill] sm:$0xff] }
 0xd89   : > { %1934 = vst [vmem:[%s298_s27 + $0x10] sm:$0xff] %v1926_v20  ;;  %1935 = vst [vmem:[%s298_s27 + $0x18] sm:$0xff] %v1927_v63  ;;  %v442_v37 = vadd.f32 %v3967_v18, %v334_v40 }
 0xd8a   : > { %v1924_v24 = vadd.f32 %v1916_v5, %v393_v6  ;;  %v1925_v59 = vadd.f32 %v1917_v22, %v395_v43 }
 0xd8c   : > { %1932 = vst [vmem:[%s298_s27] sm:$0xff] %v1924_v24  ;;  %1933 = vst [vmem:[%s298_s27 + $0x8] sm:$0xff] %v1925_v59  ;;  %v1914_v14 = vpop.permute.xlu1 %1913 }
 0xd8d   : > { %v1922_v60 = vmul.f32 %v1914_v14, %v3817_v47  ;;  %v1923_v51 = vmul.f32 %v1914_v14, %v3819_v52 }
 0xd8f   : > { %v1930_v42 = vadd.f32 %v1922_v60, %v440_v39  ;;  %v1931_v48 = vadd.f32 %v1923_v51, %v442_v37 }
 0xd91   : > { %1938 = vst [vmem:[%s298_s27 + $0x30] sm:$0xff] %v1930_v42  ;;  %1939 = vst [vmem:[%s298_s27 + $0x38] sm:$0xff] %v1931_v48 }
 0xd92   : > { %2522 = shalt.err (!%p2519_p12)
}
 0xd93   : > { %s2523_s29 = scalar_lea.hbm %s3863_s24, 1024  ;;  %s2527_s7 = scalar_lea.hbm %s3912_s5, 2048 }
 0xd94   : > { %p2524_p13 = scmp.ne.s32.totalorder %s3863_s24, %s2523_s29  ;;  %p2528_p9 = scmp.lt.u32.totalorder %s3863_s24, %s3912_s5 }
 0xd95   : > { %p2529_p4 = scmp.lt.u32.totalorder %s2527_s7, %s2523_s29  ;;  %p2531_p6 = scmp.lt.u32.totalorder %s2523_s29, %s3863_s24 }
 0xd96   : > { %p2525_p3 = pnand %p2524_p13, %p3968_p0 }
 0xd97   : > { %p2530_p8 = por %p2529_p4, %p2528_p9 }
 0xd98   : > { %p2526_p7 = pneg %p2525_p3 }
 0xd99   : > { %p2532_p2 = por %p2531_p6, %p2530_p8 }
 0xd9b   : > { %p2533_p5 = pnand %p2532_p2, %p2526_p7 }
 0xd9d   : > { %2536 = shalt.err (!%p2533_p5)
}
 0xd9e   : > { %s2620_s26 = smov 512   ;;  %s2621_s25 = smov 1024  }
 0xd9f   : > { %s2622_s13 = smov 32  }
 0xda0   : > { %2186 = dma.vmem_to_hbm [thread:$0]  (%p3968_p0), %s3854_s23, 1024, %s3863_s24, %s1941_s30, %s2620_s26, %s2621_s25, %s2622_s13  }
 0xda1 PF: > { %s1969_s11 = sand.u32 1, %s2571_s18   ;;  %p3969_p10 = scmp.ne.s32.totalorder %s3933_s22, 0 }
 0xda2   : > { %p3970_p1 = scmp.ge.s32.totalorder %s2583_s21, 2  ;;  %s1970_s16 = scalar_lea.sflag [#allocation4], %s1969_s11 }
 0xda4   : > { %p2206_p11 = pnand %p3970_p1, %p3969_p10 }
 0xda6   : > { %2566 = dma.done.wait (!%p2206_p11), %s1970_s16, 1024  }
 0xda7   : > { %2568 = vsyncadd (!%p2206_p11), %s1970_s16, 4294966272  ;;  %p20_p12 = scmp.ge.s32.totalorder %s2795_s10, 4   ;;  %s3971_s18 = smov %s2575_s19 }
 0xda8   : > { %s3972_s19 = smov %s2579_s20  ;;  %s3973_s20 = smov %s2806_s12 }
 0xda9   : > { %s3974_s21 = smov %s2795_s10  ;;  %22 = sbr.rel (!%p20_p12) target bundleno = 7 (0x7), region = 101 }
 0xdb0   :  { %1975 = vsyncpa [#allocation3], 1 }
 0xdb1   :  { %1977 = vsyncpa [#allocation3 + $0x1], 1 }
 0xdb2   :  { %1978 = vsyncpa [#allocation6], 1 }
 0xdb3   :  { %1979 = vsyncpa [#allocation9], 1 }
 0xdb4   :  { %1980 = vsyncpa [#allocation4], 1 }
 0xdb5   :  { %1982 = vsyncpa [#allocation4 + $0x1], 1 }

</bundles_post_ra>
